<compile_context>
chip_gen: v5e
topology: v5e:2x2
jax: 0.10.0
libtpu: 0.0.40
codegen_flags: <defaults>
</compile_context>

<pallas_src>
import jax
import jax.numpy as jnp
from jax.experimental import pallas as pl
from jax.experimental.pallas import tpu as pltpu


# ----------------------------- weight packing -------------------------------

def _tap(p, s):
    """Per-dimension tap for output parity p and input shift s (k=3, stride=2, pad=1, out_pad=1).

    y[2m]   = x[m]   * w[1]
    y[2m+1] = x[m+1] * w[0] + x[m] * w[2]
    Returns (valid, kernel_index)."""
    if p == 0:
        return s == 0, 1
    return True, (0 if s == 1 else 2)


def _build_wmat(w):
    """Pack PyTorch ConvTranspose3d weight (Cin, Cout, 3, 3, 3) into the subpixel matmul
    matrix of shape (8*Cin, 8*Cout).  Row order: (sd, sh, sw, ci); col order: (pd, ph, pw, co)."""
    cin, cout = w.shape[0], w.shape[1]
    zeros = jnp.zeros((cin, cout), w.dtype)
    row_blocks = []
    for sd in (0, 1):
        for sh in (0, 1):
            for sw in (0, 1):
                cols = []
                for pd in (0, 1):
                    for ph in (0, 1):
                        for pw in (0, 1):
                            vd, kd = _tap(pd, sd)
                            vh, kh = _tap(ph, sh)
                            vw, kw = _tap(pw, sw)
                            cols.append(w[:, :, kd, kh, kw] if (vd and vh and vw) else zeros)
                row_blocks.append(jnp.concatenate(cols, axis=1))    # (Cin, 8*Cout)
    return jnp.concatenate(row_blocks, axis=0)                      # (8*Cin, 8*Cout)


# ------------------------------ Pallas kernel -------------------------------

def _make_kernel(td, h, w, cin, cout):
    tm = td * h * w
    nout = 8 * cout

    def kernel(main_ref, halo_ref, w_ref, o_ref):
        # main: (td, H+1, W+1, Cin) depth slab (bf16 in HBM/VMEM, f32 for layout/compute);
        # halo: the single extra depth row needed by the sd=1 taps of the slab's last row.
        main = main_ref[0].astype(jnp.float32)                       # (td, H+1, W+1, Cin)
        halo = halo_ref[0].astype(jnp.float32)                       # (1,  H+1, W+1, Cin)
        if td == 1:
            slab1 = halo
        else:
            slab1 = jnp.concatenate([main[1:], halo], axis=0)        # depth-shifted slab

        acc = jnp.zeros((tm, nout), jnp.float32)
        s = 0
        for src in (main, slab1):                                    # sd = 0, 1
            for sh in (0, 1):
                for sw in (0, 1):
                    p = src[:, sh:sh + h, sw:sw + w, :].reshape(tm, cin)
                    acc = acc + jnp.dot(p, w_ref[s * cin:(s + 1) * cin, :],
                                        preferred_element_type=jnp.float32)
                    s += 1
        o_ref[...] = acc.reshape(1, td, h, w, nout).astype(o_ref.dtype)

    return kernel


# ------------------------------ forward pass --------------------------------

def sconv_up(x, w, *, block_m=2048):
    """SConvUp forward.

    x: (N, Cin, D, H, W) NCDHW (PyTorch layout); w: (Cin, Cout, 3, 3, 3) (ConvTranspose3d).
    Returns (N, Cout, 2D, 2H, 2W).  Module default dropout=0.0 -> no dropout layer."""
    n, cin, d, h, wd = x.shape
    cout = w.shape[1]
    hp, wp = h + 1, wd + 1
    nout = 8 * cout

    # Channels-last + one trailing zero voxel per spatial dim (covers the x[m+1] taps at
    # the border, incl. output_padding=1).  The big operand is streamed to the kernel as
    # bf16 to halve its HBM traffic; accumulation stays f32 inside the kernel.
    xc = jnp.transpose(x, (0, 2, 3, 4, 1)).astype(jnp.bfloat16)          # (N, D, H, W, Cin)
    xp = jnp.pad(xc, ((0, 0), (0, 1), (0, 1), (0, 1), (0, 0)))           # (N, D+1, H+1, W+1, Cin)

    wmat = _build_wmat(w).astype(jnp.float32)                            # (8*Cin, 8*Cout)

    # Depth tile: a divisor of D targeting ~block_m output rows per step, reduced if
    # needed so the grid has >=2 steps (keeps both v7x TensorCores busy).
    divisors = [c for c in range(1, d + 1) if d % c == 0]
    td = max([c for c in divisors if c * h * wd <= block_m] or [1])
    if n * (d // td) < 2:
        smaller = [c for c in divisors if c < td]
        if smaller:
            td = max(smaller)

    m_total = n * d * h * wd
    cost = pl.CostEstimate(
        flops=2 * m_total * (8 * cin) * nout,
        transcendentals=0,
        bytes_accessed=(xp.size * xp.dtype.itemsize
                        + wmat.size * wmat.dtype.itemsize
                        + m_total * nout * 4),
    )

    kernel = _make_kernel(td, h, wd, cin, cout)
    y = pl.pallas_call(
        kernel,
        grid=(n, d // td),
        in_specs=[
            # depth slab: td padded-input rows of batch element i.
            pl.BlockSpec((1, td, hp, wp, cin), lambda i, j: (i, j, 0, 0, 0)),
            # one-row depth halo: same array, element row (j+1)*td (block size 1 along D).
            pl.BlockSpec((1, 1, hp, wp, cin), lambda i, j: (i, (j + 1) * td, 0, 0, 0)),
            # packed weight: constant block index -> stays resident in VMEM across steps
            # (pl.Buffered(1) would save one K x Nout buffer; negligible at these sizes).
            pl.BlockSpec((8 * cin, nout), lambda i, j: (0, 0)),
        ],
        out_specs=pl.BlockSpec((1, td, h, wd, nout), lambda i, j: (i, j, 0, 0, 0)),
        out_shape=jax.ShapeDtypeStruct((n, d, h, wd, nout), jnp.float32),
        compiler_params=pltpu.CompilerParams(
            dimension_semantics=("parallel", "parallel")),
        cost_estimate=cost,
    )(xp, xp, wmat)

    # TODO(synk): training-mode nn.Dropout masking is not modeled (default dropout=0.0 -> identity).

    # Depth-to-space + NDHWC->NCDHW collapsed into ONE transpose pass.
    y = y.reshape(n, d, h, wd, 2, 2, 2, cout)
    y = jnp.transpose(y, (0, 7, 1, 4, 2, 5, 3, 6))                       # (N, Cout, D,2, H,2, W,2)
    return y.reshape(n, cout, 2 * d, 2 * h, 2 * wd)


# ------------------------- pure-JAX reference check -------------------------

def sconv_up_reference(x, w):
    """ConvTranspose3d(k=3, s=2, p=1, op=1, bias=False) via lax.conv_general_dilated."""
    w_conv = jnp.transpose(w[:, :, ::-1, ::-1, ::-1], (1, 0, 2, 3, 4))   # (Cout, Cin, 3, 3, 3)
    return jax.lax.conv_general_dilated(
        x, w_conv, window_strides=(1, 1, 1), padding=[(1, 2)] * 3,
        lhs_dilation=(2, 2, 2), rhs_dilation=(1, 1, 1),
        dimension_numbers=("NCDHW", "OIDHW", "NCDHW"),
        precision=jax.lax.Precision.HIGHEST)


# ---------------------------------- main -------------------------------------

if __name__ == "__main__":
    key = jax.random.PRNGKey(0)
    kx, kw = jax.random.split(key)

    N, CIN, COUT, D, H, W = 2, 32, 16, 8, 8, 8
    x = jax.random.normal(kx, (N, CIN, D, H, W), jnp.float32)
    w = jax.random.normal(kw, (CIN, COUT, 3, 3, 3), jnp.float32) * (2.0 / (27 * CIN)) ** 0.5

    fwd = jax.jit(sconv_up)
    out = jax.block_until_ready(fwd(x, w))

    assert out.shape == (N, COUT, 2 * D, 2 * H, 2 * W), out.shape
    assert bool(jnp.all(jnp.isfinite(out)))

    ref = jax.block_until_ready(sconv_up_reference(x, w))
    assert bool(jnp.allclose(out, ref, rtol=2e-2, atol=2e-2)), float(jnp.max(jnp.abs(out - ref)))

    print("KERNEL_OK")
</pallas_src>

<mosaic_0001>
module attributes {stable_mosaic.version = 11 : i64} {
  func.func @kernel(%arg0: i32, %arg1: i32, %arg2: memref<1x8x9x9x32xbf16, #tpu.memory_space<vmem>>, %arg3: memref<1x1x9x9x32xbf16, #tpu.memory_space<vmem>>, %arg4: memref<256x128xf32, #tpu.memory_space<vmem>>, %arg5: memref<1x8x8x8x128xf32, #tpu.memory_space<vmem>>) attributes {dimension_semantics = [#tpu.dimension_semantics<parallel>, #tpu.dimension_semantics<parallel>], iteration_bounds = array<i64: 2, 1>, scalar_prefetch = 0 : i64, scratch_operands = 0 : i64, tpu.core_type = #tpu.core_type<tc>, window_params = [{transform_indices = @transform_0, window_bounds = array<i64: 1, 8, 9, 9, 32>}, {transform_indices = @transform_1, window_bounds = array<i64: 1, 1, 9, 9, 32>}, {pipeline_mode = #tpu.pipeline_mode<synchronous>, transform_indices = @transform_2, window_bounds = array<i64: 256, 128>}, {transform_indices = @transform_3, window_bounds = array<i64: 1, 8, 8, 8, 128>}]} {
    %c0 = arith.constant 0 : index
    %c0_0 = arith.constant 0 : index
    %c0_1 = arith.constant 0 : index
    %c0_2 = arith.constant 0 : index
    %c0_3 = arith.constant 0 : index
    %0 = vector.load %arg2[%c0, %c0_0, %c0_1, %c0_2, %c0_3] : memref<1x8x9x9x32xbf16, #tpu.memory_space<vmem>>, vector<1x8x9x9x32xbf16>
    %1 = vector.shape_cast %0 : vector<1x8x9x9x32xbf16> to vector<8x9x9x32xbf16>
    %2 = arith.extf %1 : vector<8x9x9x32xbf16> to vector<8x9x9x32xf32>
    %c0_4 = arith.constant 0 : index
    %c0_5 = arith.constant 0 : index
    %c0_6 = arith.constant 0 : index
    %c0_7 = arith.constant 0 : index
    %c0_8 = arith.constant 0 : index
    %3 = vector.load %arg3[%c0_4, %c0_5, %c0_6, %c0_7, %c0_8] : memref<1x1x9x9x32xbf16, #tpu.memory_space<vmem>>, vector<1x1x9x9x32xbf16>
    %4 = vector.shape_cast %3 : vector<1x1x9x9x32xbf16> to vector<1x9x9x32xbf16>
    %5 = arith.extf %4 : vector<1x9x9x32xbf16> to vector<1x9x9x32xf32>
    %6 = vector.extract_strided_slice %2 {offsets = [1, 0, 0, 0], sizes = [7, 9, 9, 32], strides = [1, 1, 1, 1]} : vector<8x9x9x32xf32> to vector<7x9x9x32xf32>
    %7 = tpu.concatenate %6, %5 in 0 : vector<7x9x9x32xf32>, vector<1x9x9x32xf32> -> vector<8x9x9x32xf32>
    %cst = arith.constant 0.000000e+00 : f32
    %8 = vector.broadcast %cst : f32 to vector<512x128xf32>
    %9 = vector.extract_strided_slice %2 {offsets = [0, 0, 0, 0], sizes = [8, 8, 8, 32], strides = [1, 1, 1, 1]} : vector<8x9x9x32xf32> to vector<8x8x8x32xf32>
    %10 = vector.shape_cast %9 : vector<8x8x8x32xf32> to vector<512x32xf32>
    %c0_9 = arith.constant 0 : index
    %c0_10 = arith.constant 0 : index
    %11 = vector.load %arg4[%c0_9, %c0_10] : memref<256x128xf32, #tpu.memory_space<vmem>>, vector<32x128xf32>
    %cst_11 = arith.constant dense<0.000000e+00> : vector<512x128xf32>
    %12 = tpu.matmul %10, %11, %cst_11 {dimension_numbers = #tpu.dot_dimension_numbers<[1], [0], [0], [1], [0, 0, 1, 1], [], []>} : vector<512x32xf32>, vector<32x128xf32>, vector<512x128xf32> -> vector<512x128xf32>
    %13 = arith.addf %8, %12 : vector<512x128xf32>
    %14 = vector.extract_strided_slice %2 {offsets = [0, 0, 1, 0], sizes = [8, 8, 8, 32], strides = [1, 1, 1, 1]} : vector<8x9x9x32xf32> to vector<8x8x8x32xf32>
    %15 = vector.shape_cast %14 : vector<8x8x8x32xf32> to vector<512x32xf32>
    %c32 = arith.constant 32 : index
    %c0_12 = arith.constant 0 : index
    %16 = vector.load %arg4[%c32, %c0_12] : memref<256x128xf32, #tpu.memory_space<vmem>>, vector<32x128xf32>
    %cst_13 = arith.constant dense<0.000000e+00> : vector<512x128xf32>
    %17 = tpu.matmul %15, %16, %cst_13 {dimension_numbers = #tpu.dot_dimension_numbers<[1], [0], [0], [1], [0, 0, 1, 1], [], []>} : vector<512x32xf32>, vector<32x128xf32>, vector<512x128xf32> -> vector<512x128xf32>
    %18 = arith.addf %13, %17 : vector<512x128xf32>
    %19 = vector.extract_strided_slice %2 {offsets = [0, 1, 0, 0], sizes = [8, 8, 8, 32], strides = [1, 1, 1, 1]} : vector<8x9x9x32xf32> to vector<8x8x8x32xf32>
    %20 = vector.shape_cast %19 : vector<8x8x8x32xf32> to vector<512x32xf32>
    %c64 = arith.constant 64 : index
    %c0_14 = arith.constant 0 : index
    %21 = vector.load %arg4[%c64, %c0_14] : memref<256x128xf32, #tpu.memory_space<vmem>>, vector<32x128xf32>
    %cst_15 = arith.constant dense<0.000000e+00> : vector<512x128xf32>
    %22 = tpu.matmul %20, %21, %cst_15 {dimension_numbers = #tpu.dot_dimension_numbers<[1], [0], [0], [1], [0, 0, 1, 1], [], []>} : vector<512x32xf32>, vector<32x128xf32>, vector<512x128xf32> -> vector<512x128xf32>
    %23 = arith.addf %18, %22 : vector<512x128xf32>
    %24 = vector.extract_strided_slice %2 {offsets = [0, 1, 1, 0], sizes = [8, 8, 8, 32], strides = [1, 1, 1, 1]} : vector<8x9x9x32xf32> to vector<8x8x8x32xf32>
    %25 = vector.shape_cast %24 : vector<8x8x8x32xf32> to vector<512x32xf32>
    %c96 = arith.constant 96 : index
    %c0_16 = arith.constant 0 : index
    %26 = vector.load %arg4[%c96, %c0_16] : memref<256x128xf32, #tpu.memory_space<vmem>>, vector<32x128xf32>
    %cst_17 = arith.constant dense<0.000000e+00> : vector<512x128xf32>
    %27 = tpu.matmul %25, %26, %cst_17 {dimension_numbers = #tpu.dot_dimension_numbers<[1], [0], [0], [1], [0, 0, 1, 1], [], []>} : vector<512x32xf32>, vector<32x128xf32>, vector<512x128xf32> -> vector<512x128xf32>
    %28 = arith.addf %23, %27 : vector<512x128xf32>
    %29 = vector.extract_strided_slice %7 {offsets = [0, 0, 0, 0], sizes = [8, 8, 8, 32], strides = [1, 1, 1, 1]} : vector<8x9x9x32xf32> to vector<8x8x8x32xf32>
    %30 = vector.shape_cast %29 : vector<8x8x8x32xf32> to vector<512x32xf32>
    %c128 = arith.constant 128 : index
    %c0_18 = arith.constant 0 : index
    %31 = vector.load %arg4[%c128, %c0_18] : memref<256x128xf32, #tpu.memory_space<vmem>>, vector<32x128xf32>
    %cst_19 = arith.constant dense<0.000000e+00> : vector<512x128xf32>
    %32 = tpu.matmul %30, %31, %cst_19 {dimension_numbers = #tpu.dot_dimension_numbers<[1], [0], [0], [1], [0, 0, 1, 1], [], []>} : vector<512x32xf32>, vector<32x128xf32>, vector<512x128xf32> -> vector<512x128xf32>
    %33 = arith.addf %28, %32 : vector<512x128xf32>
    %34 = vector.extract_strided_slice %7 {offsets = [0, 0, 1, 0], sizes = [8, 8, 8, 32], strides = [1, 1, 1, 1]} : vector<8x9x9x32xf32> to vector<8x8x8x32xf32>
    %35 = vector.shape_cast %34 : vector<8x8x8x32xf32> to vector<512x32xf32>
    %c160 = arith.constant 160 : index
    %c0_20 = arith.constant 0 : index
    %36 = vector.load %arg4[%c160, %c0_20] : memref<256x128xf32, #tpu.memory_space<vmem>>, vector<32x128xf32>
    %cst_21 = arith.constant dense<0.000000e+00> : vector<512x128xf32>
    %37 = tpu.matmul %35, %36, %cst_21 {dimension_numbers = #tpu.dot_dimension_numbers<[1], [0], [0], [1], [0, 0, 1, 1], [], []>} : vector<512x32xf32>, vector<32x128xf32>, vector<512x128xf32> -> vector<512x128xf32>
    %38 = arith.addf %33, %37 : vector<512x128xf32>
    %39 = vector.extract_strided_slice %7 {offsets = [0, 1, 0, 0], sizes = [8, 8, 8, 32], strides = [1, 1, 1, 1]} : vector<8x9x9x32xf32> to vector<8x8x8x32xf32>
    %40 = vector.shape_cast %39 : vector<8x8x8x32xf32> to vector<512x32xf32>
    %c192 = arith.constant 192 : index
    %c0_22 = arith.constant 0 : index
    %41 = vector.load %arg4[%c192, %c0_22] : memref<256x128xf32, #tpu.memory_space<vmem>>, vector<32x128xf32>
    %cst_23 = arith.constant dense<0.000000e+00> : vector<512x128xf32>
    %42 = tpu.matmul %40, %41, %cst_23 {dimension_numbers = #tpu.dot_dimension_numbers<[1], [0], [0], [1], [0, 0, 1, 1], [], []>} : vector<512x32xf32>, vector<32x128xf32>, vector<512x128xf32> -> vector<512x128xf32>
    %43 = arith.addf %38, %42 : vector<512x128xf32>
    %44 = vector.extract_strided_slice %7 {offsets = [0, 1, 1, 0], sizes = [8, 8, 8, 32], strides = [1, 1, 1, 1]} : vector<8x9x9x32xf32> to vector<8x8x8x32xf32>
    %45 = vector.shape_cast %44 : vector<8x8x8x32xf32> to vector<512x32xf32>
    %c224 = arith.constant 224 : index
    %c0_24 = arith.constant 0 : index
    %46 = vector.load %arg4[%c224, %c0_24] : memref<256x128xf32, #tpu.memory_space<vmem>>, vector<32x128xf32>
    %cst_25 = arith.constant dense<0.000000e+00> : vector<512x128xf32>
    %47 = tpu.matmul %45, %46, %cst_25 {dimension_numbers = #tpu.dot_dimension_numbers<[1], [0], [0], [1], [0, 0, 1, 1], [], []>} : vector<512x32xf32>, vector<32x128xf32>, vector<512x128xf32> -> vector<512x128xf32>
    %48 = arith.addf %43, %47 : vector<512x128xf32>
    %49 = vector.shape_cast %48 : vector<512x128xf32> to vector<1x8x8x8x128xf32>
    %c0_26 = arith.constant 0 : index
    %c0_27 = arith.constant 0 : index
    %c0_28 = arith.constant 0 : index
    %c0_29 = arith.constant 0 : index
    %c0_30 = arith.constant 0 : index
    %50 = vector.load %arg5[%c0_26, %c0_27, %c0_28, %c0_29, %c0_30] : memref<1x8x8x8x128xf32, #tpu.memory_space<vmem>>, vector<1x8x8x8x128xf32>
    tpu.vector_store %arg5[%c0_26, %c0_27, %c0_28, %c0_29, %c0_30], %49 {strides = array<i32>} : memref<1x8x8x8x128xf32, #tpu.memory_space<vmem>>, vector<1x8x8x8x128xf32>,
    return
  }
  func.func @transform_0(%arg0: i32, %arg1: i32) -> (i32, i32, i32, i32, i32) {
    %c0_i32 = arith.constant 0 : i32
    %c0_i32_0 = arith.constant 0 : i32
    %c0_i32_1 = arith.constant 0 : i32
    %c0_i32_2 = arith.constant 0 : i32
    return %arg0, %arg1, %c0_i32, %c0_i32_0, %c0_i32_1 : i32, i32, i32, i32, i32
  }
  func.func @transform_1(%arg0: i32, %arg1: i32) -> (i32, i32, i32, i32, i32) {
    %c1_i32 = arith.constant 1 : i32
    %0 = arith.addi %arg1, %c1_i32 : i32
    %c8_i32 = arith.constant 8 : i32
    %1 = arith.muli %0, %c8_i32 : i32
    %c0_i32 = arith.constant 0 : i32
    %c0_i32_0 = arith.constant 0 : i32
    %c0_i32_1 = arith.constant 0 : i32
    %c0_i32_2 = arith.constant 0 : i32
    return %arg0, %1, %c0_i32, %c0_i32_0, %c0_i32_1 : i32, i32, i32, i32, i32
  }
  func.func @transform_2(%arg0: i32, %arg1: i32) -> (i32, i32) {
    %c0_i32 = arith.constant 0 : i32
    %c0_i32_0 = arith.constant 0 : i32
    %c0_i32_1 = arith.constant 0 : i32
    return %c0_i32, %c0_i32_0 : i32, i32
  }
  func.func @transform_3(%arg0: i32, %arg1: i32) -> (i32, i32, i32, i32, i32) {
    %c0_i32 = arith.constant 0 : i32
    %c0_i32_0 = arith.constant 0 : i32
    %c0_i32_1 = arith.constant 0 : i32
    %c0_i32_2 = arith.constant 0 : i32
    return %arg0, %arg1, %c0_i32, %c0_i32_0, %c0_i32_1 : i32, i32, i32, i32, i32
  }
}

</mosaic_0001>

<bundles_post_ra>
// kernel: sconv_up.1
= control target key start
LH: loop header
LB: loop body
LE: loop exit
PB: predicated region body
PF: predicated region fallthrough
CT: control target
= control target key end

     0   :  { %s4214_s12 = smov 0   ;;  %s4216_s13 = smov 0   ;;  %s6134_s0 = inlined_call_operand.vmem [shape: bf16[2,9,9,9,32], index: 0, kind: input, shape index: {}, may-alias: {0,1}]   ;;  %s6135_s1 = inlined_call_operand.vmem [shape: bf16[2,9,9,9,32], index: 1, kind: input, shape index: {}, may-alias: {0,1}]   ;;  %s6136_s2 = inlined_call_operand.vmem [shape: f32[256,128], index: 2, kind: input, shape index: {}]   ;;  %s6137_s3 = inlined_call_operand.vmem [shape: f32[2,8,8,8,128], index: 3, kind: output, shape index: {}]  }
   0x1   :  { %s4218_s14 = smov 0  }
   0x2 LB: > { %s25_s15 = sadd.s32 1, %s4188_s13  ;;  %p3621_p0 = scmp.ge.s32.totalorder %s4192_s14, 1  ;;  %s4192_s14 = sphi %s4218_s14, %s13_s14   ;;  %s4188_s13 = sphi %s4216_s13, %s6519_s13   ;;  %s4184_s12 = sphi %s4214_s12, %s6518_s12  }
   0x3   : > { %p27_p1 = scmp.ge.s32.totalorder %s25_s15, 2  ;;  %p195_p2 = scmp.lt.s32.totalorder %s4192_s14, 3 }
   0x5   : > { %s6521_s15 = smov (%p27_p1, %s25_s15), 0  ;;  %p196_p3 = pnand %p3621_p0, %p195_p2 }
   0x7   : > { %199 = sbr.rel (%p196_p3) target bundleno = 1177 (0x499), region = 32 }
   0xc   : > { %v1624_v0 = vld [vmem:[%s6136_s2 + $0x58] sm:$0xff]  ;;  %v1623_v1 = vld [vmem:[%s6136_s2 + $0x50] sm:$0xff]  ;;  %p253_p4 = scmp.lt.s32.totalorder %s4184_s12, 1  ;;  %v1622_v5 = vld [vmem:[%s6136_s2 + $0x48] sm:$0xff]  ;;  %vm946_vm0 = vcmask 261120   ;;  %vm749_vm1 = vcmask 1046528  }
   0xd   : > { %v945_v2 = vld [vmem:[%s6136_s2 + $0x38] sm:$0xff]  ;;  %1661 = vmatpush.msra.mxu2 %v1624_v0  ;;  %v944_v6 = vld [vmem:[%s6136_s2 + $0x30] sm:$0xff]  ;;  %v943_v9 = vld [vmem:[%s6136_s2 + $0x28] sm:$0xff] }
   0xe   : > { %1087 = vmatpush.msra.mxu0 %v945_v2  ;;  %v620_v3 = vld [vmem:[%s6136_s2 + $0x18] sm:$0xff]  ;;  %v619_v7 = vld [vmem:[%s6136_s2 + $0x10] sm:$0xff]  ;;  %s6523_s12 = smov (!%p253_p4, %s4184_s12), 1  ;;  %v618_v10 = vld [vmem:[%s6136_s2 + $0x8] sm:$0xff] }
   0xf   : > { %v1957_v4 = vld [vmem:[%s6136_s2 + $0x78] sm:$0xff]  ;;  %1424 = vmatpush.msra.mxu1 %v620_v3  ;;  %v1956_v8 = vld [vmem:[%s6136_s2 + $0x70] sm:$0xff]  ;;  %1662 = vmatpush.msra.mxu2 %v1623_v1  ;;  %v1621_v11 = vld [vmem:[%s6136_s2 + $0x40] sm:$0xff]  ;;  %s4143_s17 = smul.u32 648, %s6523_s12 }
  0x10   : > { %1986 = vmatpush.msra.mxu3 %v1957_v4  ;;  %1088 = vmatpush.msra.mxu0 %v944_v6  ;;  %v1955_v12 = vld [vmem:[%s6136_s2 + $0x68] sm:$0xff]  ;;  %v942_v13 = vld [vmem:[%s6136_s2 + $0x20] sm:$0xff]  ;;  %v2876_v14 = vld [vmem:[%s6136_s2 + $0xd8] sm:$0xff] }
  0x11   : > { %1425 = vmatpush.msra.mxu1 %v619_v7  ;;  %1663 = vmatpush.msra.mxu2 %v1622_v5  ;;  %v617_v15 = vld [vmem:[%s6136_s2] sm:$0xff]  ;;  %s4291_s30 = scalar_lea.vmem %s6134_s0, %s4143_s17  ;;  %v2250_v17 = vld [vmem:[%s6136_s2 + $0x98] sm:$0xff]  ;;  %s4141_s21 = sadd.s32 576, %s4143_s17 }
  0x12   : > { %1987 = vmatpush.msra.mxu3 %v1956_v8  ;;  %1089 = vmatpush.msra.mxu0 %v943_v9  ;;  %v1954_v16 = vld [vmem:[%s6136_s2 + $0x60] sm:$0xff]  ;;  %v3160_v18 = vld [vmem:[%s6136_s2 + $0xf8] sm:$0xff]  ;;  %v295_v20 = vld [vmem:[%s4291_s30 + $0x8] sm:$0xf]  ;;  %s6000_s24 = scalar_lea.vmem %s6135_s1, %s4141_s21 }
  0x13   : > { %1426 = vmatpush.msra.mxu1 %v618_v10  ;;  %v2583_v19 = vld [vmem:[%s6136_s2 + $0xb8] sm:$0xff]  ;;  %1664 = vmatpush.msra.mxu2 %v1621_v11  ;;  %v293_v21 = vld [vmem:[%s4291_s30] sm:$0xf]  ;;  %v294_v22 = vld [vmem:[%s4291_s30 + $0x4] sm:$0x1]  ;;  %v439_v23 = vunpack.c.l.bf16 %v295_v20 }
  0x14   : > { %1988 = vmatpush.msra.mxu3 %v1955_v12  ;;  %1090 = vmatpush.msra.mxu0 %v942_v13  ;;  %v437_v24 = vunpack.c.l.bf16 %v293_v21  ;;  %v438_v25 = vunpack.c.l.bf16 %v294_v22  ;;  %v296_v26 = vld [vmem:[%s4291_s30 + $0xc] sm:$0x1]  ;;  %v297_v27 = vld [vmem:[%s4291_s30 + $0x10] sm:$0xf]  ;;  %v298_v28 = vld [vmem:[%s4291_s30 + $0x14] sm:$0x1] }
  0x15   : > { %2892 = vmatpush.msrb.mxu2 %v2876_v14  ;;  %1427 = vmatpush.msra.mxu1 %v617_v15  ;;  %v440_v29 = vunpack.c.l.bf16 %v296_v26  ;;  %v753_v32 = vrot.slane %v439_v23, 1  ;;  %v441_v34 = vunpack.c.l.bf16 %v297_v27  ;;  %v442_v35 = vunpack.c.l.bf16 %v298_v28  ;;  %v299_v40 = vld [vmem:[%s4291_s30 + $0x18] sm:$0xf]  ;;  %v300_v41 = vld [vmem:[%s4291_s30 + $0x1c] sm:$0x1] }
  0x16   : > { %1989 = vmatpush.msra.mxu3 %v1954_v16  ;;  %2287 = vmatpush.msrb.mxu0 %v2250_v17  ;;  %v750_v30 = vrot.slane %v437_v24, 1  ;;  %v751_v31 = vrot.slane %v438_v25, 1  ;;  %v443_v43 = vunpack.c.l.bf16 %v299_v40  ;;  %v444_v44 = vunpack.c.l.bf16 %v300_v41  ;;  %v301_v47 = vld [vmem:[%s4291_s30 + $0x20] sm:$0xf]  ;;  %v302_v48 = vld [vmem:[%s4291_s30 + $0x24] sm:$0x1] }
  0x17   : > { %3754 = vmatmul.msk.f32.vlgmr.msra.gmra.mxu2 %vm946_vm0, %v439_v23  ;;  %3690 = vmatmul.msk.f32.vlgmr.msra.gmra.mxu1 %vm946_vm0, %v437_v24  ;;  %v754_v33 = vrot.slane %v440_v29, 1  ;;  %v756_v38 = vrot.slane %v441_v34, 1  ;;  %v757_v39 = vrot.slane %v442_v35, 1  ;;  %v445_v50 = vunpack.c.l.bf16 %v301_v47  ;;  %v303_v54 = vld [vmem:[%s4291_s30 + $0x28] sm:$0xf] }
  0x18   : > { %3175 = vmatpush.msrb.mxu3 %v3160_v18  ;;  %2612 = vmatpush.msrb.mxu1 %v2583_v19  ;;  %v752_v36 = vsel %vm749_vm1, %v750_v30, %v751_v31  ;;  %v759_v45 = vrot.slane %v443_v43, 1  ;;  %v760_v46 = vrot.slane %v444_v44, 1  ;;  %v446_v51 = vunpack.c.l.bf16 %v302_v48  ;;  %v304_v55 = vld [vmem:[%s4291_s30 + $0x2c] sm:$0x1]  ;;  %v305_v61 = vld [vmem:[%s4291_s30 + $0x30] sm:$0xf] }
  0x19   : > { %3626 = vmatmul.msk.f32.vlgmr.msra.gmra.mxu0 %vm946_vm0, %v752_v36  ;;  %v755_v37 = vsel %vm749_vm1, %v753_v32, %v754_v33  ;;  %v758_v42 = vsel %vm749_vm1, %v756_v38, %v757_v39  ;;  %v762_v52 = vrot.slane %v445_v50, 1  ;;  %v447_v57 = vunpack.c.l.bf16 %v303_v54  ;;  %v306_v62 = vld [vmem:[%s4291_s30 + $0x34] sm:$0x1]  ;;  %v307_v4 = vld [vmem:[%s4291_s30 + $0x38] sm:$0xf] }
  0x1a   : > { %3818 = vmatmul.msk.f32.vlgmr.msra.gmra.mxu3 %vm946_vm0, %v755_v37  ;;  %v761_v49 = vsel %vm749_vm1, %v759_v45, %v760_v46  ;;  %v763_v53 = vrot.slane %v446_v51, 1  ;;  %v448_v58 = vunpack.c.l.bf16 %v304_v55  ;;  %v449_v0 = vunpack.c.l.bf16 %v305_v61  ;;  %v308_v5 = vld [vmem:[%s4291_s30 + $0x3c] sm:$0x1]  ;;  %v309_v11 = vld [vmem:[%s4291_s30 + $0x40] sm:$0xf] }
  0x1b   : > { %v765_v59 = vrot.slane %v447_v57, 1  ;;  %v450_v1 = vunpack.c.l.bf16 %v306_v62  ;;  %v451_v7 = vunpack.c.l.bf16 %v307_v4  ;;  %v452_v8 = vunpack.c.l.bf16 %v308_v5  ;;  %v310_v12 = vld [vmem:[%s4291_s30 + $0x44] sm:$0x1]  ;;  %v311_v18 = vld [vmem:[%s4291_s30 + $0x48] sm:$0xf]  ;;  %v2582_v4 = vld [vmem:[%s6136_s2 + $0xb0] sm:$0xff] }
  0x1c   : > { %v764_v56 = vsel %vm749_vm1, %v762_v52, %v763_v53  ;;  %v766_v60 = vrot.slane %v448_v58, 1  ;;  %v768_v2 = vrot.slane %v449_v0, 1  ;;  %v453_v14 = vunpack.c.l.bf16 %v309_v11  ;;  %v312_v19 = vld [vmem:[%s4291_s30 + $0x4c] sm:$0x1]  ;;  %v313_v20 = vld [vmem:[%s4291_s30 + $0x50] sm:$0xf]  ;;  %2613 = vmatpush.msrb.mxu1 %v2582_v4 }
  0x1d   : > { %v769_v3 = vrot.slane %v450_v1, 1  ;;  %v771_v9 = vrot.slane %v451_v7, 1  ;;  %v772_v10 = vrot.slane %v452_v8, 1  ;;  %v454_v15 = vunpack.c.l.bf16 %v310_v12  ;;  %v314_v21 = vld [vmem:[%s4291_s30 + $0x54] sm:$0x1] }
  0x1e   : > { %v767_v63 = vsel %vm749_vm1, %v765_v59, %v766_v60  ;;  %v1930_v16 = vrot.slane %v453_v14, 1  ;;  %v4362_v22 = vunpack.c.l.bf16 %v311_v18  ;;  %v4365_v25 = vunpack.c.l.bf16 %v313_v20  ;;  %v315_v31 = vld [vmem:[%s4291_s30 + $0x58] sm:$0xf]  ;;  %v316_v32 = vld [vmem:[%s4291_s30 + $0x5c] sm:$0x1]  ;;  %v2875_v1 = vld [vmem:[%s6136_s2 + $0xd0] sm:$0xff] }
  0x1f   : > { %3755 = vmatmul.msk.f32.gmra.mxu2 %vm946_vm0, %v441_v34  ;;  %3691 = vmatmul.msk.f32.gmra.mxu1 %vm946_vm0, %v439_v23  ;;  %v770_v6 = vsel %vm749_vm1, %v768_v2, %v769_v3  ;;  %v773_v13 = vsel %vm749_vm1, %v771_v9, %v772_v10  ;;  %v1931_v17 = vrot.slane %v454_v15, 1  ;;  %v456_v23 = vunpack.c.l.bf16 %v312_v19  ;;  %v317_v39 = vld [vmem:[%s4291_s30 + $0x60] sm:$0xf]  ;;  %v318_v40 = vld [vmem:[%s4291_s30 + $0x64] sm:$0x1]  ;;  %v2249_v2 = vld [vmem:[%s6136_s2 + $0x90] sm:$0xff] }
  0x20   : > { %v458_v26 = vunpack.c.l.bf16 %v314_v21  ;;  %v774_v27 = vrot.slane %v4362_v22, 1  ;;  %v777_v29 = vrot.slane %v4365_v25, 1  ;;  %v4383_v35 = vunpack.c.l.bf16 %v315_v31  ;;  %v319_v46 = vld [vmem:[%s4291_s30 + $0x68] sm:$0xf]  ;;  %v320_v47 = vld [vmem:[%s4291_s30 + $0x6c] sm:$0x1]  ;;  %2893 = vmatpush.msrb.mxu2 %v2875_v1  ;;  %2288 = vmatpush.msrb.mxu0 %v2249_v2 }
  0x21   : > { %3627 = vmatmul.msk.f32.gmra.mxu0 %vm946_vm0, %v755_v37  ;;  %v1932_v24 = vsel %vm749_vm1, %v1930_v16, %v1931_v17  ;;  %v775_v28 = vrot.slane %v456_v23, 1  ;;  %v460_v36 = vunpack.c.l.bf16 %v316_v32  ;;  %v321_v53 = vld [vmem:[%s4291_s30 + $0x70] sm:$0xf]  ;;  %v322_v54 = vld [vmem:[%s4291_s30 + $0x74] sm:$0x1] }
  0x22   : > { %3819 = vmatmul.msk.f32.gmra.mxu3 %vm946_vm0, %v758_v42  ;;  %v778_v30 = vrot.slane %v458_v26, 1  ;;  %v780_v37 = vrot.slane %v4383_v35, 1  ;;  %v323_v60 = vld [vmem:[%s4291_s30 + $0x78] sm:$0xf]  ;;  %v324_v61 = vld [vmem:[%s4291_s30 + $0x7c] sm:$0x1] }
  0x23   : > { %v4376_v33 = vsel %vm749_vm1, %v774_v27, %v775_v28  ;;  %v781_v38 = vrot.slane %v460_v36, 1  ;;  %v3159_v3 = vld [vmem:[%s6136_s2 + $0xf0] sm:$0xff]  ;;  %v326_v8 = vld [vmem:[%s4291_s30 + $0x84] sm:$0x1]  ;;  %v328_v15 = vld [vmem:[%s4291_s30 + $0x8c] sm:$0x1] }
  0x24   : > { %3176 = vmatpush.msrb.mxu3 %v3159_v3  ;;  %v470_v11 = vunpack.c.l.bf16 %v326_v8  ;;  %v472_v18 = vunpack.c.l.bf16 %v328_v15  ;;  %v329_v21 = vld [vmem:[%s4291_s30 + $0x90] sm:$0xf]  ;;  %v330_v23 = vld [vmem:[%s4291_s30 + $0x94] sm:$0x1]  ;;  %v332_v26 = vld [vmem:[%s4291_s30 + $0x9c] sm:$0x1] }
  0x25   : > { %v4397_v41 = vsel %vm749_vm1, %v780_v37, %v781_v38  ;;  %v4506_v27 = vunpack.c.l.bf16 %v329_v21  ;;  %v474_v28 = vunpack.c.l.bf16 %v330_v23  ;;  %v476_v31 = vunpack.c.l.bf16 %v332_v26 }
  0x26   : > { %v1934_v20 = vrot.slane %v472_v18, 1 }
  0x27   : > { %3756 = vmatmul.msk.f32.gmra.mxu2 %vm946_vm0, %v443_v43  ;;  %3692 = vmatmul.msk.f32.gmra.mxu1 %vm946_vm0, %v441_v34  ;;  %v4381_v34 = vsel %vm749_vm1, %v777_v29, %v778_v30  ;;  %v798_v32 = vrot.slane %v4506_v27, 1  ;;  %v799_v36 = vrot.slane %v474_v28, 1 }
  0x29   : > { %3628 = vmatmul.msk.f32.gmra.mxu0 %vm946_vm0, %v758_v42  ;;  %v4399_v42 = vunpack.c.l.bf16 %v317_v39  ;;  %v802_v39 = vrot.slane %v476_v31, 1 }
  0x2a   : > { %3820 = vmatmul.msk.f32.gmra.mxu3 %vm946_vm0, %v761_v49 }
  0x2b   : > { %v783_v44 = vrot.slane %v4399_v42, 1 }
  0x2f   : > { %3757 = vmatmul.msk.f32.gmra.mxu2 %vm946_vm0, %v445_v50  ;;  %3693 = vmatmul.msk.f32.gmra.mxu1 %vm946_vm0, %v443_v43  ;;  %v462_v43 = vunpack.c.l.bf16 %v318_v40  ;;  %v333_v40 = vld [vmem:[%s4291_s30 + $0xa0] sm:$0xf] }
  0x31   : > { %3629 = vmatmul.msk.f32.gmra.mxu0 %vm946_vm0, %v761_v49  ;;  %v784_v45 = vrot.slane %v462_v43, 1  ;;  %v4415_v49 = vunpack.c.l.bf16 %v319_v46  ;;  %v334_v43 = vld [vmem:[%s4291_s30 + $0xa4] sm:$0x1] }
  0x32   : > { %3821 = vmatmul.msk.f32.gmra.mxu3 %vm946_vm0, %v764_v56 }
  0x33   : > { %v4413_v48 = vsel %vm749_vm1, %v783_v44, %v784_v45  ;;  %v786_v51 = vrot.slane %v4415_v49, 1  ;;  %v4524_v45 = vsel %vm749_vm1, %v798_v32, %v799_v36 }
  0x37   : > { %3758 = vmatmul.msk.f32.gmra.mxu2 %vm946_vm0, %v447_v57  ;;  %3694 = vmatmul.msk.f32.gmra.mxu1 %vm946_vm0, %v445_v50  ;;  %v464_v50 = vunpack.c.l.bf16 %v320_v47 }
  0x39   : > { %3630 = vmatmul.msk.f32.gmra.mxu0 %vm946_vm0, %v764_v56  ;;  %v787_v52 = vrot.slane %v464_v50, 1  ;;  %v4431_v56 = vunpack.c.l.bf16 %v321_v53  ;;  %v4531_v50 = vunpack.c.l.bf16 %v333_v40 }
  0x3a   : > { %3822 = vmatmul.msk.f32.gmra.mxu3 %vm946_vm0, %v767_v63 }
  0x3b   : > { %v4429_v55 = vsel %vm749_vm1, %v786_v51, %v787_v52  ;;  %v789_v58 = vrot.slane %v4431_v56, 1  ;;  %v478_v51 = vunpack.c.l.bf16 %v334_v43 }
  0x3f   : > { %3759 = vmatmul.msk.f32.gmra.mxu2 %vm946_vm0, %v449_v0  ;;  %3695 = vmatmul.msk.f32.gmra.mxu1 %vm946_vm0, %v447_v57  ;;  %v466_v57 = vunpack.c.l.bf16 %v322_v54 }
  0x41   : > { %3631 = vmatmul.msk.f32.gmra.mxu0 %vm946_vm0, %v767_v63  ;;  %v790_v59 = vrot.slane %v466_v57, 1  ;;  %v4447_v63 = vunpack.c.l.bf16 %v323_v60  ;;  %v804_v57 = vrot.slane %v4531_v50, 1  ;;  %v336_v60 = vld [vmem:[%s4291_s30 + $0xac] sm:$0x1] }
  0x42   : > { %3823 = vmatmul.msk.f32.gmra.mxu3 %vm946_vm0, %v770_v6 }
  0x43   : > { %v4445_v62 = vsel %vm749_vm1, %v789_v58, %v790_v59  ;;  %v792_v5 = vrot.slane %v4447_v63, 1  ;;  %v805_v58 = vrot.slane %v478_v51, 1  ;;  %v335_v59 = vld [vmem:[%s4291_s30 + $0xa8] sm:$0xf] }
  0x44   : > { %v4549_v4 = vunpack.c.l.bf16 %v335_v59 }
  0x45   : > { %v4547_v3 = vsel %vm749_vm1, %v804_v57, %v805_v58 }
  0x47   : > { %3760 = vmatmul.msk.f32.gmra.mxu2 %vm946_vm0, %v451_v7  ;;  %3696 = vmatmul.msk.f32.gmra.mxu1 %vm946_vm0, %v449_v0  ;;  %v468_v0 = vunpack.c.l.bf16 %v324_v61 }
  0x49   : > { %3632 = vmatmul.msk.f32.gmra.mxu0 %vm946_vm0, %v770_v6  ;;  %v793_v6 = vrot.slane %v468_v0, 1 }
  0x4a   : > { %3824 = vmatmul.msk.f32.gmra.mxu3 %vm946_vm0, %v773_v13 }
  0x4b   : > { %v4473_v9 = vsel %vm749_vm1, %v792_v5, %v793_v6  ;;  %v480_v5 = vunpack.c.l.bf16 %v336_v60  ;;  %v341_v60 = vld [vmem:[%s4291_s30 + $0xc0] sm:$0xf] }
  0x4f   : > { %3761 = vmatmul.msk.f32.gmra.mxu2 %vm946_vm0, %v453_v14  ;;  %3697 = vmatmul.msk.f32.gmra.mxu1 %vm946_vm0, %v451_v7  ;;  %v325_v7 = vld [vmem:[%s4291_s30 + $0x80] sm:$0xf]  ;;  %v327_v14 = vld [vmem:[%s4291_s30 + $0x88] sm:$0xf] }
  0x50   : > { %v4475_v10 = vunpack.c.l.bf16 %v325_v7  ;;  %v4491_v17 = vunpack.c.l.bf16 %v327_v14  ;;  %v338_v14 = vld [vmem:[%s4291_s30 + $0xb4] sm:$0x1] }
  0x51   : > { %3633 = vmatmul.msk.f32.gmra.mxu0 %vm946_vm0, %v773_v13  ;;  %v796_v13 = vrot.slane %v470_v11, 1  ;;  %v807_v11 = vrot.slane %v4549_v4, 1 }
  0x52   : > { %3825 = vmatmul.msk.f32.gmra.mxu3 %vm946_vm0, %v1932_v24  ;;  %v795_v12 = vrot.slane %v4475_v10, 1  ;;  %v1933_v19 = vrot.slane %v4491_v17, 1  ;;  %v331_v24 = vld [vmem:[%s4291_s30 + $0x98] sm:$0xf] }
  0x53   : > { %v4511_v30 = vunpack.c.l.bf16 %v331_v24  ;;  %v482_v24 = vunpack.c.l.bf16 %v338_v14 }
  0x54   : > { %v4489_v16 = vsel %vm749_vm1, %v795_v12, %v796_v13  ;;  %v4509_v29 = vsel %vm749_vm1, %v1933_v19, %v1934_v20  ;;  %v808_v12 = vrot.slane %v480_v5, 1  ;;  %v337_v13 = vld [vmem:[%s4291_s30 + $0xb0] sm:$0xf] }
  0x55   : > { %v801_v38 = vrot.slane %v4511_v30, 1  ;;  %v4567_v23 = vunpack.c.l.bf16 %v337_v13  ;;  %v811_v36 = vrot.slane %v482_v24, 1  ;;  %v344_v24 = vld [vmem:[%s4291_s30 + $0xcc] sm:$0x1] }
  0x56   : > { %v4565_v21 = vsel %vm749_vm1, %v807_v11, %v808_v12 }
  0x57   : > { %3762 = vmatmul.msk.f32.gmra.mxu2 %vm946_vm0, %v4365_v25  ;;  %3698 = vmatmul.msk.f32.gmra.mxu1 %vm946_vm0, %v4362_v22  ;;  %v4529_v47 = vsel %vm749_vm1, %v801_v38, %v802_v39  ;;  %v810_v32 = vrot.slane %v4567_v23, 1  ;;  %v340_v38 = vld [vmem:[%s4291_s30 + $0xbc] sm:$0x1] }
  0x59   : > { %3634 = vmatmul.msk.f32.gmra.mxu0 %vm946_vm0, %v4376_v33 }
  0x5a   : > { %3826 = vmatmul.msk.f32.gmra.mxu3 %vm946_vm0, %v4381_v34 }
  0x5f   : > { %3763 = vmatmul.msk.f32.gmra.mxu2 %vm946_vm0, %v4383_v35  ;;  %3699 = vmatmul.msk.f32.gmra.mxu1 %vm946_vm0, %v4365_v25 }
  0x61   : > { %3635 = vmatmul.msk.f32.gmra.mxu0 %vm946_vm0, %v4381_v34 }
  0x62   : > { %3827 = vmatmul.msk.f32.gmra.mxu3 %vm946_vm0, %v4397_v41 }
  0x67   : > { %3764 = vmatmul.msk.f32.gmra.mxu2 %vm946_vm0, %v4399_v42  ;;  %3700 = vmatmul.msk.f32.gmra.mxu1 %vm946_vm0, %v4383_v35 }
  0x69   : > { %3636 = vmatmul.msk.f32.gmra.mxu0 %vm946_vm0, %v4397_v41 }
  0x6a   : > { %3828 = vmatmul.msk.f32.gmra.mxu3 %vm946_vm0, %v4413_v48 }
  0x6f   : > { %3765 = vmatmul.msk.f32.gmra.mxu2 %vm946_vm0, %v4415_v49  ;;  %3701 = vmatmul.msk.f32.gmra.mxu1 %vm946_vm0, %v4399_v42 }
  0x71   : > { %3637 = vmatmul.msk.f32.gmra.mxu0 %vm946_vm0, %v4413_v48 }
  0x72   : > { %3829 = vmatmul.msk.f32.gmra.mxu3 %vm946_vm0, %v4429_v55 }
  0x77   : > { %3766 = vmatmul.msk.f32.gmra.mxu2 %vm946_vm0, %v4431_v56  ;;  %3702 = vmatmul.msk.f32.gmra.mxu1 %vm946_vm0, %v4415_v49 }
  0x79   : > { %3638 = vmatmul.msk.f32.gmra.mxu0 %vm946_vm0, %v4429_v55 }
  0x7a   : > { %3830 = vmatmul.msk.f32.gmra.mxu3 %vm946_vm0, %v4445_v62 }
  0x7f   : > { %3767 = vmatmul.msk.f32.gmra.mxu2 %vm946_vm0, %v4447_v63  ;;  %3703 = vmatmul.msk.f32.gmra.mxu1 %vm946_vm0, %v4431_v56 }
  0x81   : > { %3639 = vmatmul.msk.f32.gmra.mxu0 %vm946_vm0, %v4445_v62 }
  0x82   : > { %3831 = vmatmul.msk.f32.gmra.mxu3 %vm946_vm0, %v4473_v9 }
  0x87   : > { %3768 = vmatmul.msk.f32.gmra.mxu2 %vm946_vm0, %v4475_v10  ;;  %3704 = vmatmul.msk.f32.gmra.mxu1 %vm946_vm0, %v4447_v63 }
  0x89   : > { %3640 = vmatmul.msk.f32.gmra.mxu0 %vm946_vm0, %v4473_v9 }
  0x8a   : > { %3832 = vmatmul.msk.f32.gmra.mxu3 %vm946_vm0, %v4489_v16 }
  0x8f   : > { %3769 = vmatmul.msk.f32.gmra.mxu2 %vm946_vm0, %v4491_v17  ;;  %3705 = vmatmul.msk.f32.gmra.mxu1 %vm946_vm0, %v4475_v10 }
  0x91   : > { %3641 = vmatmul.msk.f32.gmra.mxu0 %vm946_vm0, %v4489_v16 }
  0x92   : > { %3833 = vmatmul.msk.f32.gmra.mxu3 %vm946_vm0, %v4509_v29 }
  0x94   : > { %v1429_v37 = vpop.f32.mrf.mxu1 }
  0x96   : > { %v1092_v44 = vpop.f32.mrf.mxu0 }
  0x97   : > { %3770 = vmatmul.msk.f32.gmra.mxu2 %vm946_vm0, %v4511_v30  ;;  %3706 = vmatmul.msk.f32.gmra.mxu1 %vm946_vm0, %v4506_v27  ;;  %v1430_v46 = vadd.f32 %v1429_v37, %v1092_v44  ;;  %v339_v37 = vld [vmem:[%s4291_s30 + $0xb8] sm:$0xf] }
  0x98   : > { %v4585_v51 = vunpack.c.l.bf16 %v339_v37 }
  0x99   : > { %3642 = vmatmul.msk.f32.gmra.mxu0 %vm946_vm0, %v4524_v45 }
  0x9a   : > { %v1666_v52 = vpop.f32.mrf.mxu2  ;;  %3834 = vmatmul.msk.f32.gmra.mxu3 %vm946_vm0, %v4529_v47  ;;  %v813_v58 = vrot.slane %v4585_v51, 1 }
  0x9b   : > { %v1858_v53 = vadd.f32 %v1666_v52, %v1430_v46  ;;  %v4583_v46 = vsel %vm749_vm1, %v810_v32, %v811_v36  ;;  %v484_v52 = vunpack.c.l.bf16 %v340_v38  ;;  %v488_v38 = vunpack.c.l.bf16 %v344_v24  ;;  %v349_v24 = vld [vmem:[%s4291_s30 + $0xe0] sm:$0xf] }
  0x9c   : > { %v1432_v54 = vpop.f32.mrf.mxu1 }
  0x9d   : > { %v1991_v61 = vpop.f32.mrf.mxu3  ;;  %v814_v59 = vrot.slane %v484_v52, 1 }
  0x9e   : > { %v4540_v0 = vadd.f32 %v1991_v61, %v1858_v53  ;;  %v1095_v1 = vpop.f32.mrf.mxu0  ;;  %v342_v61 = vld [vmem:[%s4291_s30 + $0xc4] sm:$0x1] }
  0x9f   : > { %3771 = vmatmul.msk.f32.gmra.mxu2 %vm946_vm0, %v4531_v50  ;;  %3707 = vmatmul.msk.f32.gmra.mxu1 %vm946_vm0, %v4511_v30  ;;  %v1433_v2 = vadd.f32 %v1432_v54, %v1095_v1  ;;  %v486_v11 = vunpack.c.l.bf16 %v342_v61 }
  0xa1   : > { %3643 = vmatmul.msk.f32.gmra.mxu0 %vm946_vm0, %v4529_v47 }
  0xa2   : > { %v1669_v6 = vpop.f32.mrf.mxu2  ;;  %3835 = vmatmul.msk.f32.gmra.mxu3 %vm946_vm0, %v4547_v3 }
  0xa3   : > { %v1859_v7 = vadd.f32 %v1669_v6, %v1433_v2 }
  0xa4   : > { %v1435_v8 = vpop.f32.mrf.mxu1 }
  0xa5   : > { %v1994_v15 = vpop.f32.mrf.mxu3 }
  0xa6   : > { %v4558_v18 = vadd.f32 %v1994_v15, %v1859_v7  ;;  %v1098_v19 = vpop.f32.mrf.mxu0  ;;  %v4601_v7 = vsel %vm749_vm1, %v813_v58, %v814_v59 }
  0xa7   : > { %3772 = vmatmul.msk.f32.gmra.mxu2 %vm946_vm0, %v4549_v4  ;;  %3708 = vmatmul.msk.f32.gmra.mxu1 %vm946_vm0, %v4531_v50  ;;  %v1436_v20 = vadd.f32 %v1435_v8, %v1098_v19  ;;  %v4603_v8 = vunpack.c.l.bf16 %v341_v60  ;;  %v817_v19 = vrot.slane %v486_v11, 1 }
  0xa9   : > { %3644 = vmatmul.msk.f32.gmra.mxu0 %vm946_vm0, %v4547_v3  ;;  %v816_v15 = vrot.slane %v4603_v8, 1 }
  0xaa   : > { %v1672_v26 = vpop.f32.mrf.mxu2  ;;  %3836 = vmatmul.msk.f32.gmra.mxu3 %vm946_vm0, %v4565_v21 }
  0xab   : > { %v1860_v28 = vadd.f32 %v1672_v26, %v1436_v20  ;;  %v343_v20 = vld [vmem:[%s4291_s30 + $0xc8] sm:$0xf]  ;;  %v4619_v36 = vsel %vm749_vm1, %v816_v15, %v817_v19  ;;  %v347_v19 = vld [vmem:[%s4291_s30 + $0xd8] sm:$0xf] }
  0xac   : > { %v1438_v31 = vpop.f32.mrf.mxu1  ;;  %v4621_v37 = vunpack.c.l.bf16 %v343_v20  ;;  %v348_v20 = vld [vmem:[%s4291_s30 + $0xdc] sm:$0x1] }
  0xad   : > { %v1997_v39 = vpop.f32.mrf.mxu3 }
  0xae   : > { %v4576_v40 = vadd.f32 %v1997_v39, %v1860_v28  ;;  %v1101_v43 = vpop.f32.mrf.mxu0  ;;  %v819_v52 = vrot.slane %v4621_v37, 1 }
  0xaf   : > { %3773 = vmatmul.msk.f32.gmra.mxu2 %vm946_vm0, %v4567_v23  ;;  %3709 = vmatmul.msk.f32.gmra.mxu1 %vm946_vm0, %v4549_v4  ;;  %v1439_v44 = vadd.f32 %v1438_v31, %v1101_v43 }
  0xb0   : > { %6276 = vst [vmem:[#allocation2_spill] sm:$0xff] %v4576_v40 }
  0xb1   : > { %3645 = vmatmul.msk.f32.gmra.mxu0 %vm946_vm0, %v4565_v21 }
  0xb2   : > { %v1675_v53 = vpop.f32.mrf.mxu2  ;;  %3837 = vmatmul.msk.f32.gmra.mxu3 %vm946_vm0, %v4583_v46 }
  0xb3   : > { %v1861_v54 = vadd.f32 %v1675_v53, %v1439_v44  ;;  %v820_v53 = vrot.slane %v488_v38, 1 }
  0xb4   : > { %v1441_v57 = vpop.f32.mrf.mxu1 }
  0xb5   : > { %v2000_v1 = vpop.f32.mrf.mxu3 }
  0xb6   : > { %v4594_v2 = vadd.f32 %v2000_v1, %v1861_v54  ;;  %v1104_v5 = vpop.f32.mrf.mxu0  ;;  %v345_v54 = vld [vmem:[%s4291_s30 + $0xd0] sm:$0xf]  ;;  %v4637_v1 = vsel %vm749_vm1, %v819_v52, %v820_v53  ;;  %v4661_v53 = vunpack.c.l.bf16 %v349_v24 }
  0xb7   : > { %3774 = vmatmul.msk.f32.gmra.mxu2 %vm946_vm0, %v4585_v51  ;;  %3710 = vmatmul.msk.f32.gmra.mxu1 %vm946_vm0, %v4567_v23  ;;  %v1442_v6 = vadd.f32 %v1441_v57, %v1104_v5  ;;  %v346_v57 = vld [vmem:[%s4291_s30 + $0xd4] sm:$0x1]  ;;  %v4639_v5 = vunpack.c.l.bf16 %v345_v54 }
  0xb8   : > { %6277 = vst [vmem:[#allocation3_spill] sm:$0xff] %v4594_v2  ;;  %v359_v2 = vld [vmem:[%s4291_s30 + $0x108] sm:$0xf] }
  0xb9   : > { %3646 = vmatmul.msk.f32.gmra.mxu0 %vm946_vm0, %v4583_v46 }
  0xba   : > { %v1678_v12 = vpop.f32.mrf.mxu2  ;;  %3838 = vmatmul.msk.f32.gmra.mxu3 %vm946_vm0, %v4601_v7 }
  0xbb   : > { %v1862_v13 = vadd.f32 %v1678_v12, %v1442_v6  ;;  %v490_v6 = vunpack.c.l.bf16 %v346_v57 }
  0xbc   : > { %v1444_v14 = vpop.f32.mrf.mxu1 }
  0xbd   : > { %v2003_v26 = vpop.f32.mrf.mxu3  ;;  %v1937_v15 = vrot.slane %v490_v6, 1 }
  0xbe   : > { %v4612_v28 = vadd.f32 %v2003_v26, %v1862_v13  ;;  %v1107_v31 = vpop.f32.mrf.mxu0  ;;  %v350_v26 = vld [vmem:[%s4291_s30 + $0xe4] sm:$0x1] }
  0xbf   : > { %3775 = vmatmul.msk.f32.gmra.mxu2 %vm946_vm0, %v4603_v8  ;;  %3711 = vmatmul.msk.f32.gmra.mxu1 %vm946_vm0, %v4585_v51  ;;  %v1445_v32 = vadd.f32 %v1444_v14, %v1107_v31  ;;  %v1936_v14 = vrot.slane %v4639_v5, 1  ;;  %v494_v54 = vunpack.c.l.bf16 %v350_v26 }
  0xc0   : > { %6278 = vst [vmem:[#allocation4_spill] sm:$0xff] %v4612_v28 }
  0xc1   : > { %3647 = vmatmul.msk.f32.gmra.mxu0 %vm946_vm0, %v4601_v7  ;;  %v4659_v52 = vsel %vm749_vm1, %v1936_v14, %v1937_v15  ;;  %v352_v14 = vld [vmem:[%s4291_s30 + $0xec] sm:$0x1] }
  0xc2   : > { %v1681_v39 = vpop.f32.mrf.mxu2  ;;  %3839 = vmatmul.msk.f32.gmra.mxu3 %vm946_vm0, %v4619_v36 }
  0xc3   : > { %v1863_v43 = vadd.f32 %v1681_v39, %v1445_v32  ;;  %v4656_v39 = vunpack.c.l.bf16 %v347_v19 }
  0xc4   : > { %v1447_v44 = vpop.f32.mrf.mxu1 }
  0xc5   : > { %v2006_v58 = vpop.f32.mrf.mxu3 }
  0xc6   : > { %v4630_v59 = vadd.f32 %v2006_v58, %v1863_v43  ;;  %v1110_v60 = vpop.f32.mrf.mxu0  ;;  %v492_v43 = vunpack.c.l.bf16 %v348_v20 }
  0xc7   : > { %3776 = vmatmul.msk.f32.gmra.mxu2 %vm946_vm0, %v4621_v37  ;;  %3712 = vmatmul.msk.f32.gmra.mxu1 %vm946_vm0, %v4603_v8  ;;  %v1448_v61 = vadd.f32 %v1447_v44, %v1110_v60  ;;  %v822_v60 = vrot.slane %v4656_v39, 1 }
  0xc8   : > { %6279 = vst [vmem:[#allocation5_spill] sm:$0xff] %v4630_v59  ;;  %v357_v59 = vld [vmem:[%s4291_s30 + $0x100] sm:$0xf] }
  0xc9   : > { %3648 = vmatmul.msk.f32.gmra.mxu0 %vm946_vm0, %v4619_v36 }
  0xca   : > { %v1684_v11 = vpop.f32.mrf.mxu2  ;;  %3840 = vmatmul.msk.f32.gmra.mxu3 %vm946_vm0, %v4637_v1 }
  0xcb   : > { %v1864_v12 = vadd.f32 %v1684_v11, %v1448_v61  ;;  %v823_v61 = vrot.slane %v492_v43, 1  ;;  %v825_v11 = vrot.slane %v4661_v53, 1  ;;  %v496_v43 = vunpack.c.l.bf16 %v352_v14 }
  0xcc   : > { %v1450_v13 = vpop.f32.mrf.mxu1 }
  0xcd   : > { %v2009_v31 = vpop.f32.mrf.mxu3  ;;  %v4676_v24 = vsel %vm749_vm1, %v822_v60, %v823_v61  ;;  %v829_v60 = vrot.slane %v496_v43, 1  ;;  %v353_v61 = vld [vmem:[%s4291_s30 + $0xf0] sm:$0xf] }
  0xce   : > { %v4650_v32 = vadd.f32 %v2009_v31, %v1864_v12  ;;  %v1113_v38 = vpop.f32.mrf.mxu0  ;;  %v826_v12 = vrot.slane %v494_v54, 1 }
  0xcf   : > { %3777 = vmatmul.msk.f32.gmra.mxu2 %vm946_vm0, %v4639_v5  ;;  %3713 = vmatmul.msk.f32.gmra.mxu1 %vm946_vm0, %v4621_v37  ;;  %v1451_v44 = vadd.f32 %v1450_v13, %v1113_v38  ;;  %v351_v13 = vld [vmem:[%s4291_s30 + $0xe8] sm:$0xf] }
  0xd0   : > { %6280 = vst [vmem:[#allocation6_spill] sm:$0xff] %v4650_v32  ;;  %v4681_v31 = vsel %vm749_vm1, %v825_v11, %v826_v12  ;;  %v4683_v38 = vunpack.c.l.bf16 %v351_v13 }
  0xd1   : > { %3649 = vmatmul.msk.f32.gmra.mxu0 %vm946_vm0, %v4637_v1 }
  0xd2   : > { %v1687_v57 = vpop.f32.mrf.mxu2  ;;  %3841 = vmatmul.msk.f32.gmra.mxu3 %vm946_vm0, %v4659_v52 }
  0xd3   : > { %v1865_v58 = vadd.f32 %v1687_v57, %v1451_v44 }
  0xd4   : > { %v1453_v6 = vpop.f32.mrf.mxu1 }
  0xd5   : > { %v2012_v15 = vpop.f32.mrf.mxu3 }
  0xd6   : > { %v4671_v19 = vadd.f32 %v2012_v15, %v1865_v58  ;;  %v1116_v20 = vpop.f32.mrf.mxu0  ;;  %v828_v58 = vrot.slane %v4683_v38, 1 }
  0xd7   : > { %3778 = vmatmul.msk.f32.gmra.mxu2 %vm946_vm0, %v4661_v53  ;;  %3714 = vmatmul.msk.f32.gmra.mxu1 %vm946_vm0, %v4656_v39  ;;  %v1454_v26 = vadd.f32 %v1453_v6, %v1116_v20  ;;  %v354_v6 = vld [vmem:[%s4291_s30 + $0xf4] sm:$0x1]  ;;  %v4701_v20 = vunpack.c.l.bf16 %v353_v61 }
  0xd8   : > { %6281 = vst [vmem:[#allocation7_spill] sm:$0xff] %v4671_v19  ;;  %v4699_v14 = vsel %vm749_vm1, %v828_v58, %v829_v60  ;;  %v355_v19 = vld [vmem:[%s4291_s30 + $0xf8] sm:$0xf] }
  0xd9   : > { %3650 = vmatmul.msk.f32.gmra.mxu0 %vm946_vm0, %v4676_v24 }
  0xda   : > { %v1690_v44 = vpop.f32.mrf.mxu2  ;;  %3842 = vmatmul.msk.f32.gmra.mxu3 %vm946_vm0, %v4681_v31 }
  0xdb   : > { %v1866_v54 = vadd.f32 %v1690_v44, %v1454_v26  ;;  %v498_v26 = vunpack.c.l.bf16 %v354_v6 }
  0xdc   : > { %v1456_v57 = vpop.f32.mrf.mxu1 }
  0xdd   : > { %v2015_v15 = vpop.f32.mrf.mxu3 }
  0xde   : > { %v4692_v11 = vadd.f32 %v2015_v15, %v1866_v54  ;;  %v1119_v12 = vpop.f32.mrf.mxu0  ;;  %v831_v15 = vrot.slane %v4701_v20, 1 }
  0xdf   : > { %3779 = vmatmul.msk.f32.gmra.mxu2 %vm946_vm0, %v4683_v38  ;;  %3715 = vmatmul.msk.f32.gmra.mxu1 %vm946_vm0, %v4661_v53  ;;  %v1457_v13 = vadd.f32 %v1456_v57, %v1119_v12  ;;  %v356_v57 = vld [vmem:[%s4291_s30 + $0xfc] sm:$0x1] }
  0xe0   : > { %6282 = vst [vmem:[#allocation8_spill] sm:$0xff] %v4692_v11  ;;  %v832_v11 = vrot.slane %v498_v26, 1  ;;  %v500_v26 = vunpack.c.l.bf16 %v356_v57 }
  0xe1   : > { %3651 = vmatmul.msk.f32.gmra.mxu0 %vm946_vm0, %v4681_v31 }
  0xe2   : > { %v1693_v43 = vpop.f32.mrf.mxu2  ;;  %3843 = vmatmul.msk.f32.gmra.mxu3 %vm946_vm0, %v4699_v14  ;;  %v4717_v6 = vsel %vm749_vm1, %v831_v15, %v832_v11  ;;  %v835_v32 = vrot.slane %v500_v26, 1 }
  0xe3   : > { %v1867_v44 = vadd.f32 %v1693_v43, %v1457_v13  ;;  %6284 = vst [vmem:[#allocation10_spill] sm:$0xff] %v4717_v6  ;;  %v4719_v13 = vunpack.c.l.bf16 %v355_v19 }
  0xe4   : > { %v1459_v54 = vpop.f32.mrf.mxu1 }
  0xe5   : > { %v2018_v12 = vpop.f32.mrf.mxu3  ;;  %6285 = vst [vmem:[#allocation11_spill] sm:$0xff] %v4719_v13 }
  0xe6   : > { %v4710_v58 = vadd.f32 %v2018_v12, %v1867_v44  ;;  %v1122_v60 = vpop.f32.mrf.mxu0 }
  0xe7   : > { %3780 = vmatmul.msk.f32.gmra.mxu2 %vm946_vm0, %v4701_v20  ;;  %3716 = vmatmul.msk.f32.gmra.mxu1 %vm946_vm0, %v4683_v38  ;;  %v1460_v61 = vadd.f32 %v1459_v54, %v1122_v60  ;;  %v358_v54 = vld [vmem:[%s4291_s30 + $0x104] sm:$0x1] }
  0xe8   : > { %6283 = vst [vmem:[#allocation9_spill] sm:$0xff] %v4710_v58  ;;  %v834_v58 = vrot.slane %v4719_v13, 1  ;;  %v502_v26 = vunpack.c.l.bf16 %v358_v54 }
  0xe9   : > { %3652 = vmatmul.msk.f32.gmra.mxu0 %vm946_vm0, %v4699_v14 }
  0xea   : > { %v1696_v43 = vpop.f32.mrf.mxu2  ;;  %3844 = vmatmul.msk.f32.gmra.mxu3 %vm946_vm0, %v4717_v6  ;;  %v4735_v57 = vsel %vm749_vm1, %v834_v58, %v835_v32  ;;  %v838_v28 = vrot.slane %v502_v26, 1 }
  0xeb   : > { %v1868_v44 = vadd.f32 %v1696_v43, %v1460_v61  ;;  %6287 = vst [vmem:[#allocation13_spill] sm:$0xff] %v4735_v57  ;;  %v4737_v61 = vunpack.c.l.bf16 %v357_v59 }
  0xec   : > { %v1462_v12 = vpop.f32.mrf.mxu1 }
  0xed   : > { %v2021_v60 = vpop.f32.mrf.mxu3  ;;  %6288 = vst [vmem:[#allocation14_spill] sm:$0xff] %v4737_v61 }
  0xee   : > { %v4728_v11 = vadd.f32 %v2021_v60, %v1868_v44  ;;  %v1125_v19 = vpop.f32.mrf.mxu0 }
  0xef   : > { %3781 = vmatmul.msk.f32.gmra.mxu2 %vm946_vm0, %v4719_v13  ;;  %3717 = vmatmul.msk.f32.gmra.mxu1 %vm946_vm0, %v4701_v20  ;;  %v1463_v15 = vadd.f32 %v1462_v12, %v1125_v19  ;;  %v360_v12 = vld [vmem:[%s4291_s30 + $0x10c] sm:$0x1] }
  0xf0   : > { %6286 = vst [vmem:[#allocation12_spill] sm:$0xff] %v4728_v11  ;;  %v837_v11 = vrot.slane %v4737_v61, 1  ;;  %v504_v26 = vunpack.c.l.bf16 %v360_v12 }
  0xf1   : > { %3653 = vmatmul.msk.f32.gmra.mxu0 %vm946_vm0, %v4717_v6 }
  0xf2   : > { %v1699_v43 = vpop.f32.mrf.mxu2  ;;  %3845 = vmatmul.msk.f32.gmra.mxu3 %vm946_vm0, %v4735_v57  ;;  %v4753_v54 = vsel %vm749_vm1, %v837_v11, %v838_v28  ;;  %v3158_v28 = vld [vmem:[%s6136_s2 + $0xe8] sm:$0xff] }
  0xf3   : > { %v1869_v44 = vadd.f32 %v1699_v43, %v1463_v15  ;;  %6290 = vst [vmem:[#allocation16_spill] sm:$0xff] %v4753_v54  ;;  %v4755_v15 = vunpack.c.l.bf16 %v359_v2  ;;  %v2874_v43 = vld [vmem:[%s6136_s2 + $0xc8] sm:$0xff]  ;;  %3177 = vmatpush.msrb.mxu3 %v3158_v28 }
  0xf4   : > { %v1465_v60 = vpop.f32.mrf.mxu1  ;;  %2894 = vmatpush.msrb.mxu2 %v2874_v43  ;;  %v2248_v2 = vld [vmem:[%s6136_s2 + $0x88] sm:$0xff]  ;;  %v362_v43 = vld [vmem:[%s4291_s30 + $0x114] sm:$0x1] }
  0xf5   : > { %v2024_v19 = vpop.f32.mrf.mxu3  ;;  %6291 = vst [vmem:[#allocation17_spill] sm:$0xff] %v4755_v15  ;;  %v2581_v11 = vld [vmem:[%s6136_s2 + $0xa8] sm:$0xff]  ;;  %v840_v12 = vrot.slane %v4755_v15, 1  ;;  %2289 = vmatpush.msrb.mxu0 %v2248_v2  ;;  %v506_v28 = vunpack.c.l.bf16 %v362_v43 }
  0xf6   : > { %v4746_v32 = vadd.f32 %v2024_v19, %v1869_v44  ;;  %v1128_v59 = vpop.f32.mrf.mxu0  ;;  %2614 = vmatpush.msrb.mxu1 %v2581_v11 }
  0xf7   : > { %3782 = vmatmul.msk.f32.gmra.mxu2 %vm946_vm0, %v4737_v61  ;;  %3718 = vmatmul.msk.f32.gmra.mxu1 %vm946_vm0, %v4719_v13  ;;  %v1466_v58 = vadd.f32 %v1465_v60, %v1128_v59  ;;  %v841_v59 = vrot.slane %v504_v26, 1  ;;  %v844_v6 = vrot.slane %v506_v28, 1 }
  0xf8   : > { %6289 = vst [vmem:[#allocation15_spill] sm:$0xff] %v4746_v32 }
  0xf9   : > { %3654 = vmatmul.msk.f32.gmra.mxu0 %vm946_vm0, %v4735_v57  ;;  %v4783_v26 = vsel %vm749_vm1, %v840_v12, %v841_v59 }
  0xfa   : > { %v1702_v44 = vpop.f32.mrf.mxu2  ;;  %3846 = vmatmul.msk.f32.gmra.mxu3 %vm946_vm0, %v4753_v54  ;;  %6293 = vst [vmem:[#allocation19_spill] sm:$0xff] %v4783_v26 }
  0xfb   : > { %v1870_v19 = vadd.f32 %v1702_v44, %v1466_v58  ;;  %v361_v58 = vld [vmem:[%s4291_s30 + $0x110] sm:$0xf] }
  0xfc   : > { %v1468_v60 = vpop.f32.mrf.mxu1  ;;  %v4785_v2 = vunpack.c.l.bf16 %v361_v58 }
  0xfd   : > { %v2027_v44 = vpop.f32.mrf.mxu3 }
  0xfe   : > { %v4776_v32 = vadd.f32 %v2027_v44, %v1870_v19  ;;  %v1131_v57 = vpop.f32.mrf.mxu0  ;;  %6294 = vst [vmem:[#allocation20_spill] sm:$0xff] %v4785_v2 }
  0xff   : > { %3783 = vmatmul.msk.f32.gmra.mxu2 %vm946_vm0, %v4755_v15  ;;  %3719 = vmatmul.msk.f32.gmra.mxu1 %vm946_vm0, %v4737_v61  ;;  %v1469_v13 = vadd.f32 %v1468_v60, %v1131_v57  ;;  %v363_v61 = vld [vmem:[%s4291_s30 + $0x118] sm:$0xf]  ;;  %v364_v57 = vld [vmem:[%s4291_s30 + $0x11c] sm:$0x1] }
 0x100   : > { %6292 = vst [vmem:[#allocation18_spill] sm:$0xff] %v4776_v32  ;;  %v843_v32 = vrot.slane %v4785_v2, 1  ;;  %v4803_v43 = vunpack.c.l.bf16 %v363_v61  ;;  %v508_v28 = vunpack.c.l.bf16 %v364_v57 }
 0x101   : > { %3655 = vmatmul.msk.f32.gmra.mxu0 %vm946_vm0, %v4753_v54 }
 0x102   : > { %v1705_v19 = vpop.f32.mrf.mxu2  ;;  %3847 = vmatmul.msk.f32.gmra.mxu3 %vm946_vm0, %v4783_v26  ;;  %v4801_v58 = vsel %vm749_vm1, %v843_v32, %v844_v6  ;;  %6297 = vst [vmem:[#allocation23_spill] sm:$0xff] %v4803_v43  ;;  %v1940_v54 = vrot.slane %v508_v28, 1  ;;  %v368_v6 = vld [vmem:[%s4291_s30 + $0x12c] sm:$0x1] }
 0x103   : > { %v1871_v11 = vadd.f32 %v1705_v19, %v1469_v13  ;;  %6296 = vst [vmem:[#allocation22_spill] sm:$0xff] %v4801_v58 }
 0x104   : > { %v1471_v44 = vpop.f32.mrf.mxu1 }
 0x105   : > { %v2030_v60 = vpop.f32.mrf.mxu3 }
 0x106   : > { %v4794_v12 = vadd.f32 %v2030_v60, %v1871_v11  ;;  %v1134_v59 = vpop.f32.mrf.mxu0 }
 0x107   : > { %3784 = vmatmul.msk.f32.gmra.mxu2 %vm946_vm0, %v4785_v2  ;;  %3720 = vmatmul.msk.f32.gmra.mxu1 %vm946_vm0, %v4755_v15  ;;  %v1472_v13 = vadd.f32 %v1471_v44, %v1134_v59  ;;  %v365_v15 = vld [vmem:[%s4291_s30 + $0x120] sm:$0xf]  ;;  %v366_v44 = vld [vmem:[%s4291_s30 + $0x124] sm:$0x1]  ;;  %v367_v59 = vld [vmem:[%s4291_s30 + $0x128] sm:$0xf] }
 0x108   : > { %6295 = vst [vmem:[#allocation21_spill] sm:$0xff] %v4794_v12  ;;  %v1939_v12 = vrot.slane %v4803_v43, 1  ;;  %v4825_v40 = vunpack.c.l.bf16 %v367_v59 }
 0x109   : > { %3656 = vmatmul.msk.f32.gmra.mxu0 %vm946_vm0, %v4783_v26 }
 0x10a   : > { %v1708_v19 = vpop.f32.mrf.mxu2  ;;  %3848 = vmatmul.msk.f32.gmra.mxu3 %vm946_vm0, %v4801_v58  ;;  %v4823_v26 = vsel %vm749_vm1, %v1939_v12, %v1940_v54  ;;  %6301 = vst [vmem:[#allocation27_spill] sm:$0xff] %v4825_v40  ;;  %v369_v54 = vld [vmem:[%s4291_s30 + $0x130] sm:$0xf]  ;;  %v370_v12 = vld [vmem:[%s4291_s30 + $0x134] sm:$0x1] }
 0x10b   : > { %v1872_v11 = vadd.f32 %v1708_v19, %v1472_v13  ;;  %v4820_v13 = vunpack.c.l.bf16 %v365_v15  ;;  %v510_v19 = vunpack.c.l.bf16 %v366_v44  ;;  %6300 = vst [vmem:[#allocation26_spill] sm:$0xff] %v4823_v26 }
 0x10c   : > { %v1474_v60 = vpop.f32.mrf.mxu1 }
 0x10d   : > { %v2033_v32 = vpop.f32.mrf.mxu3  ;;  %6299 = vst [vmem:[#allocation25_spill] sm:$0xff] %v4820_v13  ;;  %v846_v15 = vrot.slane %v4820_v13, 1 }
 0x10e   : > { %v4814_v61 = vadd.f32 %v2033_v32, %v1872_v11  ;;  %v1137_v57 = vpop.f32.mrf.mxu0  ;;  %v512_v11 = vunpack.c.l.bf16 %v368_v6 }
 0x10f   : > { %3785 = vmatmul.msk.f32.gmra.mxu2 %vm946_vm0, %v4803_v43  ;;  %3721 = vmatmul.msk.f32.gmra.mxu1 %vm946_vm0, %v4785_v2  ;;  %v1475_v28 = vadd.f32 %v1474_v60, %v1137_v57  ;;  %v847_v43 = vrot.slane %v510_v19, 1  ;;  %v849_v60 = vrot.slane %v4825_v40, 1 }
 0x110   : > { %6298 = vst [vmem:[#allocation24_spill] sm:$0xff] %v4814_v61  ;;  %v850_v44 = vrot.slane %v512_v11, 1 }
 0x111   : > { %3657 = vmatmul.msk.f32.gmra.mxu0 %vm946_vm0, %v4801_v58 }
 0x112   : > { %v1711_v32 = vpop.f32.mrf.mxu2  ;;  %3849 = vmatmul.msk.f32.gmra.mxu3 %vm946_vm0, %v4823_v26  ;;  %v4845_v11 = vsel %vm749_vm1, %v849_v60, %v850_v44 }
 0x113   : > { %v1873_v61 = vadd.f32 %v1711_v32, %v1475_v28  ;;  %v4840_v28 = vsel %vm749_vm1, %v846_v15, %v847_v43  ;;  %6304 = vst [vmem:[#allocation30_spill] sm:$0xff] %v4845_v11  ;;  %v4847_v32 = vunpack.c.l.bf16 %v369_v54 }
 0x114   : > { %v1477_v2 = vpop.f32.mrf.mxu1  ;;  %6303 = vst [vmem:[#allocation29_spill] sm:$0xff] %v4840_v28 }
 0x115   : > { %v2036_v59 = vpop.f32.mrf.mxu3  ;;  %6305 = vst [vmem:[#allocation31_spill] sm:$0xff] %v4847_v32  ;;  %v852_v15 = vrot.slane %v4847_v32, 1 }
 0x116   : > { %v4835_v57 = vadd.f32 %v2036_v59, %v1873_v61  ;;  %v1140_v6 = vpop.f32.mrf.mxu0  ;;  %v514_v61 = vunpack.c.l.bf16 %v370_v12 }
 0x117   : > { %3786 = vmatmul.msk.f32.gmra.mxu2 %vm946_vm0, %v4825_v40  ;;  %3722 = vmatmul.msk.f32.gmra.mxu1 %vm946_vm0, %v4820_v13  ;;  %v1478_v19 = vadd.f32 %v1477_v2, %v1140_v6  ;;  %v371_v13 = vld [vmem:[%s4291_s30 + $0x138] sm:$0xf]  ;;  %v372_v2 = vld [vmem:[%s4291_s30 + $0x13c] sm:$0x1] }
 0x118   : > { %6302 = vst [vmem:[#allocation28_spill] sm:$0xff] %v4835_v57  ;;  %v853_v26 = vrot.slane %v514_v61, 1  ;;  %v516_v61 = vunpack.c.l.bf16 %v372_v2 }
 0x119   : > { %3658 = vmatmul.msk.f32.gmra.mxu0 %vm946_vm0, %v4840_v28 }
 0x11a   : > { %v1714_v59 = vpop.f32.mrf.mxu2  ;;  %3850 = vmatmul.msk.f32.gmra.mxu3 %vm946_vm0, %v4845_v11  ;;  %v4863_v12 = vsel %vm749_vm1, %v852_v15, %v853_v26  ;;  %v856_v28 = vrot.slane %v516_v61, 1 }
 0x11b   : > { %v1874_v57 = vadd.f32 %v1714_v59, %v1478_v19  ;;  %6307 = vst [vmem:[#allocation33_spill] sm:$0xff] %v4863_v12  ;;  %v4865_v19 = vunpack.c.l.bf16 %v371_v13 }
 0x11c   : > { %v1480_v43 = vpop.f32.mrf.mxu1 }
 0x11d   : > { %v2039_v6 = vpop.f32.mrf.mxu3  ;;  %6308 = vst [vmem:[#allocation34_spill] sm:$0xff] %v4865_v19 }
 0x11e   : > { %v4856_v60 = vadd.f32 %v2039_v6, %v1874_v57  ;;  %v1143_v44 = vpop.f32.mrf.mxu0 }
 0x11f   : > { %3787 = vmatmul.msk.f32.gmra.mxu2 %vm946_vm0, %v4847_v32  ;;  %3723 = vmatmul.msk.f32.gmra.mxu1 %vm946_vm0, %v4825_v40  ;;  %v1481_v54 = vadd.f32 %v1480_v43, %v1143_v44  ;;  %v373_v40 = vld [vmem:[%s4291_s30 + $0x140] sm:$0xf]  ;;  %v374_v43 = vld [vmem:[%s4291_s30 + $0x144] sm:$0x1] }
 0x120   : > { %6306 = vst [vmem:[#allocation32_spill] sm:$0xff] %v4856_v60  ;;  %v855_v60 = vrot.slane %v4865_v19, 1  ;;  %v518_v61 = vunpack.c.l.bf16 %v374_v43 }
 0x121   : > { %3659 = vmatmul.msk.f32.gmra.mxu0 %vm946_vm0, %v4845_v11 }
 0x122   : > { %v1717_v57 = vpop.f32.mrf.mxu2  ;;  %3851 = vmatmul.msk.f32.gmra.mxu3 %vm946_vm0, %v4863_v12  ;;  %v4881_v2 = vsel %vm749_vm1, %v855_v60, %v856_v28  ;;  %v859_v11 = vrot.slane %v518_v61, 1 }
 0x123   : > { %v1875_v59 = vadd.f32 %v1717_v57, %v1481_v54  ;;  %6310 = vst [vmem:[#allocation36_spill] sm:$0xff] %v4881_v2  ;;  %v4883_v54 = vunpack.c.l.bf16 %v373_v40 }
 0x124   : > { %v1483_v6 = vpop.f32.mrf.mxu1 }
 0x125   : > { %v2042_v44 = vpop.f32.mrf.mxu3  ;;  %6311 = vst [vmem:[#allocation37_spill] sm:$0xff] %v4883_v54 }
 0x126   : > { %v4874_v26 = vadd.f32 %v2042_v44, %v1875_v59  ;;  %v1146_v13 = vpop.f32.mrf.mxu0 }
 0x127   : > { %3788 = vmatmul.msk.f32.gmra.mxu2 %vm946_vm0, %v4865_v19  ;;  %3724 = vmatmul.msk.f32.gmra.mxu1 %vm946_vm0, %v4847_v32  ;;  %v1484_v15 = vadd.f32 %v1483_v6, %v1146_v13  ;;  %v375_v32 = vld [vmem:[%s4291_s30 + $0x148] sm:$0xf]  ;;  %v376_v6 = vld [vmem:[%s4291_s30 + $0x14c] sm:$0x1] }
 0x128   : > { %6309 = vst [vmem:[#allocation35_spill] sm:$0xff] %v4874_v26  ;;  %v858_v26 = vrot.slane %v4883_v54, 1  ;;  %v520_v61 = vunpack.c.l.bf16 %v376_v6 }
 0x129   : > { %3660 = vmatmul.msk.f32.gmra.mxu0 %vm946_vm0, %v4863_v12 }
 0x12a   : > { %v1720_v57 = vpop.f32.mrf.mxu2  ;;  %3852 = vmatmul.msk.f32.gmra.mxu3 %vm946_vm0, %v4881_v2  ;;  %v4899_v43 = vsel %vm749_vm1, %v858_v26, %v859_v11  ;;  %v862_v12 = vrot.slane %v520_v61, 1 }
 0x12b   : > { %v1876_v59 = vadd.f32 %v1720_v57, %v1484_v15  ;;  %6313 = vst [vmem:[#allocation39_spill] sm:$0xff] %v4899_v43  ;;  %v4901_v15 = vunpack.c.l.bf16 %v375_v32 }
 0x12c   : > { %v1486_v44 = vpop.f32.mrf.mxu1 }
 0x12d   : > { %v2045_v13 = vpop.f32.mrf.mxu3  ;;  %6314 = vst [vmem:[#allocation40_spill] sm:$0xff] %v4901_v15 }
 0x12e   : > { %v4892_v28 = vadd.f32 %v2045_v13, %v1876_v59  ;;  %v1149_v40 = vpop.f32.mrf.mxu0 }
 0x12f   : > { %3789 = vmatmul.msk.f32.gmra.mxu2 %vm946_vm0, %v4883_v54  ;;  %3725 = vmatmul.msk.f32.gmra.mxu1 %vm946_vm0, %v4865_v19  ;;  %v1487_v60 = vadd.f32 %v1486_v44, %v1149_v40  ;;  %v377_v19 = vld [vmem:[%s4291_s30 + $0x150] sm:$0xf]  ;;  %v378_v44 = vld [vmem:[%s4291_s30 + $0x154] sm:$0x1] }
 0x130   : > { %6312 = vst [vmem:[#allocation38_spill] sm:$0xff] %v4892_v28  ;;  %v861_v28 = vrot.slane %v4901_v15, 1  ;;  %v522_v61 = vunpack.c.l.bf16 %v378_v44 }
 0x131   : > { %3661 = vmatmul.msk.f32.gmra.mxu0 %vm946_vm0, %v4881_v2 }
 0x132   : > { %v1723_v57 = vpop.f32.mrf.mxu2  ;;  %3853 = vmatmul.msk.f32.gmra.mxu3 %vm946_vm0, %v4899_v43  ;;  %v4917_v6 = vsel %vm749_vm1, %v861_v28, %v862_v12  ;;  %v865_v2 = vrot.slane %v522_v61, 1 }
 0x133   : > { %v1877_v59 = vadd.f32 %v1723_v57, %v1487_v60  ;;  %6316 = vst [vmem:[#allocation42_spill] sm:$0xff] %v4917_v6  ;;  %v4919_v60 = vunpack.c.l.bf16 %v377_v19 }
 0x134   : > { %v1489_v13 = vpop.f32.mrf.mxu1 }
 0x135   : > { %v2048_v40 = vpop.f32.mrf.mxu3  ;;  %6317 = vst [vmem:[#allocation43_spill] sm:$0xff] %v4919_v60 }
 0x136   : > { %v4910_v11 = vadd.f32 %v2048_v40, %v1877_v59  ;;  %v1152_v32 = vpop.f32.mrf.mxu0 }
 0x137   : > { %3790 = vmatmul.msk.f32.gmra.mxu2 %vm946_vm0, %v4901_v15  ;;  %3726 = vmatmul.msk.f32.gmra.mxu1 %vm946_vm0, %v4883_v54  ;;  %v1490_v26 = vadd.f32 %v1489_v13, %v1152_v32  ;;  %v379_v54 = vld [vmem:[%s4291_s30 + $0x158] sm:$0xf]  ;;  %v380_v13 = vld [vmem:[%s4291_s30 + $0x15c] sm:$0x1] }
 0x138   : > { %6315 = vst [vmem:[#allocation41_spill] sm:$0xff] %v4910_v11  ;;  %v864_v11 = vrot.slane %v4919_v60, 1  ;;  %v524_v61 = vunpack.c.l.bf16 %v380_v13 }
 0x139   : > { %3662 = vmatmul.msk.f32.gmra.mxu0 %vm946_vm0, %v4899_v43 }
 0x13a   : > { %v1726_v57 = vpop.f32.mrf.mxu2  ;;  %3854 = vmatmul.msk.f32.gmra.mxu3 %vm946_vm0, %v4917_v6  ;;  %v4935_v44 = vsel %vm749_vm1, %v864_v11, %v865_v2  ;;  %v868_v43 = vrot.slane %v524_v61, 1 }
 0x13b   : > { %v1878_v59 = vadd.f32 %v1726_v57, %v1490_v26  ;;  %6319 = vst [vmem:[#allocation45_spill] sm:$0xff] %v4935_v44  ;;  %v4937_v26 = vunpack.c.l.bf16 %v379_v54 }
 0x13c   : > { %v1492_v40 = vpop.f32.mrf.mxu1 }
 0x13d   : > { %v2051_v32 = vpop.f32.mrf.mxu3  ;;  %6320 = vst [vmem:[#allocation46_spill] sm:$0xff] %v4937_v26 }
 0x13e   : > { %v4928_v12 = vadd.f32 %v2051_v32, %v1878_v59  ;;  %v1155_v19 = vpop.f32.mrf.mxu0 }
 0x13f   : > { %3791 = vmatmul.msk.f32.gmra.mxu2 %vm946_vm0, %v4919_v60  ;;  %3727 = vmatmul.msk.f32.gmra.mxu1 %vm946_vm0, %v4901_v15  ;;  %v1493_v28 = vadd.f32 %v1492_v40, %v1155_v19  ;;  %v381_v15 = vld [vmem:[%s4291_s30 + $0x160] sm:$0xf]  ;;  %v382_v40 = vld [vmem:[%s4291_s30 + $0x164] sm:$0x1] }
 0x140   : > { %6318 = vst [vmem:[#allocation44_spill] sm:$0xff] %v4928_v12  ;;  %v867_v12 = vrot.slane %v4937_v26, 1  ;;  %v526_v61 = vunpack.c.l.bf16 %v382_v40 }
 0x141   : > { %3663 = vmatmul.msk.f32.gmra.mxu0 %vm946_vm0, %v4917_v6 }
 0x142   : > { %v1729_v57 = vpop.f32.mrf.mxu2  ;;  %3855 = vmatmul.msk.f32.gmra.mxu3 %vm946_vm0, %v4935_v44  ;;  %v4953_v13 = vsel %vm749_vm1, %v867_v12, %v868_v43  ;;  %v1943_v6 = vrot.slane %v526_v61, 1  ;;  %v386_v43 = vld [vmem:[%s4291_s30 + $0x174] sm:$0x1] }
 0x143   : > { %v1879_v59 = vadd.f32 %v1729_v57, %v1493_v28  ;;  %6322 = vst [vmem:[#allocation48_spill] sm:$0xff] %v4953_v13  ;;  %v4955_v28 = vunpack.c.l.bf16 %v381_v15 }
 0x144   : > { %v1495_v32 = vpop.f32.mrf.mxu1 }
 0x145   : > { %v2054_v19 = vpop.f32.mrf.mxu3  ;;  %6323 = vst [vmem:[#allocation49_spill] sm:$0xff] %v4955_v28 }
 0x146   : > { %v4946_v2 = vadd.f32 %v2054_v19, %v1879_v59  ;;  %v1158_v54 = vpop.f32.mrf.mxu0 }
 0x147   : > { %3792 = vmatmul.msk.f32.gmra.mxu2 %vm946_vm0, %v4937_v26  ;;  %3728 = vmatmul.msk.f32.gmra.mxu1 %vm946_vm0, %v4919_v60  ;;  %v1496_v11 = vadd.f32 %v1495_v32, %v1158_v54  ;;  %v383_v60 = vld [vmem:[%s4291_s30 + $0x168] sm:$0xf]  ;;  %v384_v32 = vld [vmem:[%s4291_s30 + $0x16c] sm:$0x1]  ;;  %v385_v54 = vld [vmem:[%s4291_s30 + $0x170] sm:$0xf] }
 0x148   : > { %6321 = vst [vmem:[#allocation47_spill] sm:$0xff] %v4946_v2  ;;  %v1942_v2 = vrot.slane %v4955_v28, 1  ;;  %v4977_v58 = vunpack.c.l.bf16 %v385_v54 }
 0x149   : > { %3664 = vmatmul.msk.f32.gmra.mxu0 %vm946_vm0, %v4935_v44 }
 0x14a   : > { %v1732_v57 = vpop.f32.mrf.mxu2  ;;  %3856 = vmatmul.msk.f32.gmra.mxu3 %vm946_vm0, %v4953_v13  ;;  %v4975_v44 = vsel %vm749_vm1, %v1942_v2, %v1943_v6  ;;  %6327 = vst [vmem:[#allocation53_spill] sm:$0xff] %v4977_v58  ;;  %v387_v6 = vld [vmem:[%s4291_s30 + $0x178] sm:$0xf]  ;;  %v388_v2 = vld [vmem:[%s4291_s30 + $0x17c] sm:$0x1] }
 0x14b   : > { %v1880_v59 = vadd.f32 %v1732_v57, %v1496_v11  ;;  %v4972_v11 = vunpack.c.l.bf16 %v383_v60  ;;  %v528_v57 = vunpack.c.l.bf16 %v384_v32  ;;  %6326 = vst [vmem:[#allocation52_spill] sm:$0xff] %v4975_v44 }
 0x14c   : > { %v1498_v19 = vpop.f32.mrf.mxu1 }
 0x14d   : > { %v2057_v12 = vpop.f32.mrf.mxu3  ;;  %6325 = vst [vmem:[#allocation51_spill] sm:$0xff] %v4972_v11  ;;  %v870_v60 = vrot.slane %v4972_v11, 1 }
 0x14e   : > { %v4966_v15 = vadd.f32 %v2057_v12, %v1880_v59  ;;  %v1161_v40 = vpop.f32.mrf.mxu0  ;;  %v530_v59 = vunpack.c.l.bf16 %v386_v43 }
 0x14f   : > { %3793 = vmatmul.msk.f32.gmra.mxu2 %vm946_vm0, %v4955_v28  ;;  %3729 = vmatmul.msk.f32.gmra.mxu1 %vm946_vm0, %v4937_v26  ;;  %v1499_v61 = vadd.f32 %v1498_v19, %v1161_v40  ;;  %v871_v28 = vrot.slane %v528_v57, 1  ;;  %v873_v19 = vrot.slane %v4977_v58, 1 }
 0x150   : > { %6324 = vst [vmem:[#allocation50_spill] sm:$0xff] %v4966_v15  ;;  %v874_v32 = vrot.slane %v530_v59, 1 }
 0x151   : > { %3665 = vmatmul.msk.f32.gmra.mxu0 %vm946_vm0, %v4953_v13 }
 0x152   : > { %v1735_v12 = vpop.f32.mrf.mxu2  ;;  %3857 = vmatmul.msk.f32.gmra.mxu3 %vm946_vm0, %v4975_v44  ;;  %v4997_v59 = vsel %vm749_vm1, %v873_v19, %v874_v32 }
 0x153   : > { %v1881_v15 = vadd.f32 %v1735_v12, %v1499_v61  ;;  %v4992_v61 = vsel %vm749_vm1, %v870_v60, %v871_v28  ;;  %6330 = vst [vmem:[#allocation56_spill] sm:$0xff] %v4997_v59  ;;  %v4999_v12 = vunpack.c.l.bf16 %v387_v6 }
 0x154   : > { %v1501_v26 = vpop.f32.mrf.mxu1  ;;  %6329 = vst [vmem:[#allocation55_spill] sm:$0xff] %v4992_v61 }
 0x155   : > { %v2060_v54 = vpop.f32.mrf.mxu3  ;;  %6331 = vst [vmem:[#allocation57_spill] sm:$0xff] %v4999_v12  ;;  %v876_v60 = vrot.slane %v4999_v12, 1 }
 0x156   : > { %v4987_v40 = vadd.f32 %v2060_v54, %v1881_v15  ;;  %v1164_v43 = vpop.f32.mrf.mxu0  ;;  %v532_v15 = vunpack.c.l.bf16 %v388_v2 }
 0x157   : > { %3794 = vmatmul.msk.f32.gmra.mxu2 %vm946_vm0, %v4977_v58  ;;  %3730 = vmatmul.msk.f32.gmra.mxu1 %vm946_vm0, %v4972_v11  ;;  %v1502_v57 = vadd.f32 %v1501_v26, %v1164_v43  ;;  %v389_v11 = vld [vmem:[%s4291_s30 + $0x180] sm:$0xf]  ;;  %v390_v26 = vld [vmem:[%s4291_s30 + $0x184] sm:$0x1] }
 0x158   : > { %6328 = vst [vmem:[#allocation54_spill] sm:$0xff] %v4987_v40  ;;  %v877_v44 = vrot.slane %v532_v15, 1  ;;  %v534_v15 = vunpack.c.l.bf16 %v390_v26 }
 0x159   : > { %3666 = vmatmul.msk.f32.gmra.mxu0 %vm946_vm0, %v4992_v61 }
 0x15a   : > { %v1738_v54 = vpop.f32.mrf.mxu2  ;;  %3858 = vmatmul.msk.f32.gmra.mxu3 %vm946_vm0, %v4997_v59  ;;  %v5015_v2 = vsel %vm749_vm1, %v876_v60, %v877_v44  ;;  %v880_v61 = vrot.slane %v534_v15, 1 }
 0x15b   : > { %v1882_v40 = vadd.f32 %v1738_v54, %v1502_v57  ;;  %6333 = vst [vmem:[#allocation59_spill] sm:$0xff] %v5015_v2  ;;  %v5017_v57 = vunpack.c.l.bf16 %v389_v11 }
 0x15c   : > { %v1504_v28 = vpop.f32.mrf.mxu1 }
 0x15d   : > { %v2063_v43 = vpop.f32.mrf.mxu3  ;;  %6334 = vst [vmem:[#allocation60_spill] sm:$0xff] %v5017_v57 }
 0x15e   : > { %v5008_v19 = vadd.f32 %v2063_v43, %v1882_v40  ;;  %v1167_v32 = vpop.f32.mrf.mxu0 }
 0x15f   : > { %3795 = vmatmul.msk.f32.gmra.mxu2 %vm946_vm0, %v4999_v12  ;;  %3731 = vmatmul.msk.f32.gmra.mxu1 %vm946_vm0, %v4977_v58  ;;  %v1505_v6 = vadd.f32 %v1504_v28, %v1167_v32  ;;  %v391_v58 = vld [vmem:[%s4291_s30 + $0x188] sm:$0xf]  ;;  %v392_v28 = vld [vmem:[%s4291_s30 + $0x18c] sm:$0x1] }
 0x160   : > { %6332 = vst [vmem:[#allocation58_spill] sm:$0xff] %v5008_v19  ;;  %v879_v19 = vrot.slane %v5017_v57, 1  ;;  %v536_v15 = vunpack.c.l.bf16 %v392_v28 }
 0x161   : > { %3667 = vmatmul.msk.f32.gmra.mxu0 %vm946_vm0, %v4997_v59 }
 0x162   : > { %v1741_v40 = vpop.f32.mrf.mxu2  ;;  %3859 = vmatmul.msk.f32.gmra.mxu3 %vm946_vm0, %v5015_v2  ;;  %v5033_v26 = vsel %vm749_vm1, %v879_v19, %v880_v61  ;;  %v883_v59 = vrot.slane %v536_v15, 1 }
 0x163   : > { %v1883_v54 = vadd.f32 %v1741_v40, %v1505_v6  ;;  %6336 = vst [vmem:[#allocation62_spill] sm:$0xff] %v5033_v26  ;;  %v5035_v6 = vunpack.c.l.bf16 %v391_v58 }
 0x164   : > { %v1507_v43 = vpop.f32.mrf.mxu1 }
 0x165   : > { %v2066_v32 = vpop.f32.mrf.mxu3  ;;  %6337 = vst [vmem:[#allocation63_spill] sm:$0xff] %v5035_v6 }
 0x166   : > { %v5026_v44 = vadd.f32 %v2066_v32, %v1883_v54  ;;  %v1170_v11 = vpop.f32.mrf.mxu0 }
 0x167   : > { %3796 = vmatmul.msk.f32.gmra.mxu2 %vm946_vm0, %v5017_v57  ;;  %3732 = vmatmul.msk.f32.gmra.mxu1 %vm946_vm0, %v4999_v12  ;;  %v1508_v60 = vadd.f32 %v1507_v43, %v1170_v11  ;;  %v393_v12 = vld [vmem:[%s4291_s30 + $0x190] sm:$0xf]  ;;  %v394_v43 = vld [vmem:[%s4291_s30 + $0x194] sm:$0x1] }
 0x168   : > { %6335 = vst [vmem:[#allocation61_spill] sm:$0xff] %v5026_v44  ;;  %v882_v44 = vrot.slane %v5035_v6, 1  ;;  %v538_v15 = vunpack.c.l.bf16 %v394_v43 }
 0x169   : > { %3668 = vmatmul.msk.f32.gmra.mxu0 %vm946_vm0, %v5015_v2 }
 0x16a   : > { %v1744_v40 = vpop.f32.mrf.mxu2  ;;  %3860 = vmatmul.msk.f32.gmra.mxu3 %vm946_vm0, %v5033_v26  ;;  %v5051_v28 = vsel %vm749_vm1, %v882_v44, %v883_v59  ;;  %v886_v2 = vrot.slane %v538_v15, 1 }
 0x16b   : > { %v1884_v54 = vadd.f32 %v1744_v40, %v1508_v60  ;;  %6339 = vst [vmem:[#allocation65_spill] sm:$0xff] %v5051_v28  ;;  %v5053_v60 = vunpack.c.l.bf16 %v393_v12 }
 0x16c   : > { %v1510_v32 = vpop.f32.mrf.mxu1 }
 0x16d   : > { %v2069_v11 = vpop.f32.mrf.mxu3  ;;  %6340 = vst [vmem:[#allocation66_spill] sm:$0xff] %v5053_v60 }
 0x16e   : > { %v5044_v61 = vadd.f32 %v2069_v11, %v1884_v54  ;;  %v1173_v58 = vpop.f32.mrf.mxu0 }
 0x16f   : > { %3797 = vmatmul.msk.f32.gmra.mxu2 %vm946_vm0, %v5035_v6  ;;  %3733 = vmatmul.msk.f32.gmra.mxu1 %vm946_vm0, %v5017_v57  ;;  %v1511_v19 = vadd.f32 %v1510_v32, %v1173_v58  ;;  %v395_v57 = vld [vmem:[%s4291_s30 + $0x198] sm:$0xf]  ;;  %v396_v32 = vld [vmem:[%s4291_s30 + $0x19c] sm:$0x1] }
 0x170   : > { %6338 = vst [vmem:[#allocation64_spill] sm:$0xff] %v5044_v61  ;;  %v885_v61 = vrot.slane %v5053_v60, 1  ;;  %v540_v15 = vunpack.c.l.bf16 %v396_v32 }
 0x171   : > { %3669 = vmatmul.msk.f32.gmra.mxu0 %vm946_vm0, %v5033_v26 }
 0x172   : > { %v1747_v40 = vpop.f32.mrf.mxu2  ;;  %3861 = vmatmul.msk.f32.gmra.mxu3 %vm946_vm0, %v5051_v28  ;;  %v5069_v43 = vsel %vm749_vm1, %v885_v61, %v886_v2  ;;  %v2247_v2 = vld [vmem:[%s6136_s2 + $0x80] sm:$0xff] }
 0x173   : > { %v1885_v54 = vadd.f32 %v1747_v40, %v1511_v19  ;;  %6342 = vst [vmem:[#allocation68_spill] sm:$0xff] %v5069_v43  ;;  %v5071_v19 = vunpack.c.l.bf16 %v395_v57  ;;  %v2873_v40 = vld [vmem:[%s6136_s2 + $0xc0] sm:$0xff]  ;;  %2290 = vmatpush.msrb.mxu0 %v2247_v2 }
 0x174   : > { %v1513_v11 = vpop.f32.mrf.mxu1  ;;  %2895 = vmatpush.msrb.mxu2 %v2873_v40  ;;  %v3157_v57 = vld [vmem:[%s6136_s2 + $0xe0] sm:$0xff] }
 0x175   : > { %v2072_v58 = vpop.f32.mrf.mxu3  ;;  %6343 = vst [vmem:[#allocation69_spill] sm:$0xff] %v5071_v19  ;;  %v2580_v61 = vld [vmem:[%s6136_s2 + $0xa0] sm:$0xff]  ;;  %v888_v32 = vrot.slane %v5071_v19, 1  ;;  %3178 = vmatpush.msrb.mxu3 %v3157_v57 }
 0x176   : > { %v5062_v59 = vadd.f32 %v2072_v58, %v1885_v54  ;;  %v1176_v12 = vpop.f32.mrf.mxu0  ;;  %v398_v40 = vld [vmem:[%s4291_s30 + $0x1a4] sm:$0x1]  ;;  %2615 = vmatpush.msrb.mxu1 %v2580_v61 }
 0x177   : > { %3798 = vmatmul.msk.f32.gmra.mxu2 %vm946_vm0, %v5053_v60  ;;  %3734 = vmatmul.msk.f32.gmra.mxu1 %vm946_vm0, %v5035_v6  ;;  %v1514_v44 = vadd.f32 %v1513_v11, %v1176_v12  ;;  %v889_v12 = vrot.slane %v540_v15, 1  ;;  %v542_v57 = vunpack.c.l.bf16 %v398_v40 }
 0x178   : > { %6341 = vst [vmem:[#allocation67_spill] sm:$0xff] %v5062_v59 }
 0x179   : > { %3670 = vmatmul.msk.f32.gmra.mxu0 %vm946_vm0, %v5051_v28  ;;  %v5099_v15 = vsel %vm749_vm1, %v888_v32, %v889_v12  ;;  %v892_v26 = vrot.slane %v542_v57, 1 }
 0x17a   : > { %v1750_v54 = vpop.f32.mrf.mxu2  ;;  %3862 = vmatmul.msk.f32.gmra.mxu3 %vm946_vm0, %v5069_v43  ;;  %6345 = vst [vmem:[#allocation71_spill] sm:$0xff] %v5099_v15 }
 0x17b   : > { %v1886_v58 = vadd.f32 %v1750_v54, %v1514_v44  ;;  %v397_v44 = vld [vmem:[%s4291_s30 + $0x1a0] sm:$0xf] }
 0x17c   : > { %v1516_v11 = vpop.f32.mrf.mxu1  ;;  %v5101_v2 = vunpack.c.l.bf16 %v397_v44 }
 0x17d   : > { %v2075_v54 = vpop.f32.mrf.mxu3 }
 0x17e   : > { %v5092_v59 = vadd.f32 %v2075_v54, %v1886_v58  ;;  %v1179_v28 = vpop.f32.mrf.mxu0  ;;  %6346 = vst [vmem:[#allocation72_spill] sm:$0xff] %v5101_v2 }
 0x17f   : > { %3799 = vmatmul.msk.f32.gmra.mxu2 %vm946_vm0, %v5071_v19  ;;  %3735 = vmatmul.msk.f32.gmra.mxu1 %vm946_vm0, %v5053_v60  ;;  %v1517_v6 = vadd.f32 %v1516_v11, %v1179_v28  ;;  %v399_v60 = vld [vmem:[%s4291_s30 + $0x1a8] sm:$0xf]  ;;  %v400_v28 = vld [vmem:[%s4291_s30 + $0x1ac] sm:$0x1] }
 0x180   : > { %6344 = vst [vmem:[#allocation70_spill] sm:$0xff] %v5092_v59  ;;  %v891_v59 = vrot.slane %v5101_v2, 1  ;;  %v5119_v40 = vunpack.c.l.bf16 %v399_v60  ;;  %v544_v57 = vunpack.c.l.bf16 %v400_v28 }
 0x181   : > { %3671 = vmatmul.msk.f32.gmra.mxu0 %vm946_vm0, %v5069_v43 }
 0x182   : > { %v1753_v58 = vpop.f32.mrf.mxu2  ;;  %3863 = vmatmul.msk.f32.gmra.mxu3 %vm946_vm0, %v5099_v15  ;;  %v5117_v44 = vsel %vm749_vm1, %v891_v59, %v892_v26  ;;  %6349 = vst [vmem:[#allocation75_spill] sm:$0xff] %v5119_v40  ;;  %v1946_v43 = vrot.slane %v544_v57, 1  ;;  %v404_v26 = vld [vmem:[%s4291_s30 + $0x1bc] sm:$0x1] }
 0x183   : > { %v1887_v61 = vadd.f32 %v1753_v58, %v1517_v6  ;;  %6348 = vst [vmem:[#allocation74_spill] sm:$0xff] %v5117_v44 }
 0x184   : > { %v1519_v54 = vpop.f32.mrf.mxu1 }
 0x185   : > { %v2078_v11 = vpop.f32.mrf.mxu3 }
 0x186   : > { %v5110_v32 = vadd.f32 %v2078_v11, %v1887_v61  ;;  %v1182_v12 = vpop.f32.mrf.mxu0 }
 0x187   : > { %3800 = vmatmul.msk.f32.gmra.mxu2 %vm946_vm0, %v5101_v2  ;;  %3736 = vmatmul.msk.f32.gmra.mxu1 %vm946_vm0, %v5071_v19  ;;  %v1520_v6 = vadd.f32 %v1519_v54, %v1182_v12  ;;  %v401_v19 = vld [vmem:[%s4291_s30 + $0x1b0] sm:$0xf]  ;;  %v402_v54 = vld [vmem:[%s4291_s30 + $0x1b4] sm:$0x1]  ;;  %v403_v12 = vld [vmem:[%s4291_s30 + $0x1b8] sm:$0xf] }
 0x188   : > { %6347 = vst [vmem:[#allocation73_spill] sm:$0xff] %v5110_v32  ;;  %v1945_v32 = vrot.slane %v5119_v40, 1  ;;  %v5141_v13 = vunpack.c.l.bf16 %v403_v12 }
 0x189   : > { %3672 = vmatmul.msk.f32.gmra.mxu0 %vm946_vm0, %v5099_v15 }
 0x18a   : > { %v1756_v58 = vpop.f32.mrf.mxu2  ;;  %3864 = vmatmul.msk.f32.gmra.mxu3 %vm946_vm0, %v5117_v44  ;;  %v5139_v15 = vsel %vm749_vm1, %v1945_v32, %v1946_v43  ;;  %6353 = vst [vmem:[#allocation79_spill] sm:$0xff] %v5141_v13  ;;  %v405_v43 = vld [vmem:[%s4291_s30 + $0x1c0] sm:$0xf]  ;;  %v406_v32 = vld [vmem:[%s4291_s30 + $0x1c4] sm:$0x1] }
 0x18b   : > { %v1888_v61 = vadd.f32 %v1756_v58, %v1520_v6  ;;  %v5136_v6 = vunpack.c.l.bf16 %v401_v19  ;;  %v546_v58 = vunpack.c.l.bf16 %v402_v54  ;;  %6352 = vst [vmem:[#allocation78_spill] sm:$0xff] %v5139_v15 }
 0x18c   : > { %v1522_v11 = vpop.f32.mrf.mxu1 }
 0x18d   : > { %v2081_v59 = vpop.f32.mrf.mxu3  ;;  %6351 = vst [vmem:[#allocation77_spill] sm:$0xff] %v5136_v6  ;;  %v894_v19 = vrot.slane %v5136_v6, 1 }
 0x18e   : > { %v5130_v60 = vadd.f32 %v2081_v59, %v1888_v61  ;;  %v1185_v28 = vpop.f32.mrf.mxu0  ;;  %v548_v61 = vunpack.c.l.bf16 %v404_v26 }
 0x18f   : > { %3801 = vmatmul.msk.f32.gmra.mxu2 %vm946_vm0, %v5119_v40  ;;  %3737 = vmatmul.msk.f32.gmra.mxu1 %vm946_vm0, %v5101_v2  ;;  %v1523_v57 = vadd.f32 %v1522_v11, %v1185_v28  ;;  %v895_v40 = vrot.slane %v546_v58, 1  ;;  %v897_v11 = vrot.slane %v5141_v13, 1 }
 0x190   : > { %6350 = vst [vmem:[#allocation76_spill] sm:$0xff] %v5130_v60  ;;  %v898_v54 = vrot.slane %v548_v61, 1 }
 0x191   : > { %3673 = vmatmul.msk.f32.gmra.mxu0 %vm946_vm0, %v5117_v44 }
 0x192   : > { %v1759_v59 = vpop.f32.mrf.mxu2  ;;  %3865 = vmatmul.msk.f32.gmra.mxu3 %vm946_vm0, %v5139_v15  ;;  %v5161_v61 = vsel %vm749_vm1, %v897_v11, %v898_v54 }
 0x193   : > { %v1889_v60 = vadd.f32 %v1759_v59, %v1523_v57  ;;  %v5156_v57 = vsel %vm749_vm1, %v894_v19, %v895_v40  ;;  %6356 = vst [vmem:[#allocation82_spill] sm:$0xff] %v5161_v61  ;;  %v5163_v59 = vunpack.c.l.bf16 %v405_v43 }
 0x194   : > { %v1525_v2 = vpop.f32.mrf.mxu1  ;;  %6355 = vst [vmem:[#allocation81_spill] sm:$0xff] %v5156_v57 }
 0x195   : > { %v2084_v12 = vpop.f32.mrf.mxu3  ;;  %6357 = vst [vmem:[#allocation83_spill] sm:$0xff] %v5163_v59  ;;  %v900_v19 = vrot.slane %v5163_v59, 1 }
 0x196   : > { %v5151_v28 = vadd.f32 %v2084_v12, %v1889_v60  ;;  %v1188_v26 = vpop.f32.mrf.mxu0  ;;  %v550_v60 = vunpack.c.l.bf16 %v406_v32 }
 0x197   : > { %3802 = vmatmul.msk.f32.gmra.mxu2 %vm946_vm0, %v5141_v13  ;;  %3738 = vmatmul.msk.f32.gmra.mxu1 %vm946_vm0, %v5136_v6  ;;  %v1526_v58 = vadd.f32 %v1525_v2, %v1188_v26  ;;  %v407_v6 = vld [vmem:[%s4291_s30 + $0x1c8] sm:$0xf]  ;;  %v408_v2 = vld [vmem:[%s4291_s30 + $0x1cc] sm:$0x1] }
 0x198   : > { %6354 = vst [vmem:[#allocation80_spill] sm:$0xff] %v5151_v28  ;;  %v901_v15 = vrot.slane %v550_v60, 1  ;;  %v552_v60 = vunpack.c.l.bf16 %v408_v2 }
 0x199   : > { %3674 = vmatmul.msk.f32.gmra.mxu0 %vm946_vm0, %v5156_v57 }
 0x19a   : > { %v1762_v12 = vpop.f32.mrf.mxu2  ;;  %3866 = vmatmul.msk.f32.gmra.mxu3 %vm946_vm0, %v5161_v61  ;;  %v5179_v32 = vsel %vm749_vm1, %v900_v19, %v901_v15  ;;  %v904_v57 = vrot.slane %v552_v60, 1 }
 0x19b   : > { %v1890_v28 = vadd.f32 %v1762_v12, %v1526_v58  ;;  %6359 = vst [vmem:[#allocation85_spill] sm:$0xff] %v5179_v32  ;;  %v5181_v58 = vunpack.c.l.bf16 %v407_v6 }
 0x19c   : > { %v1528_v40 = vpop.f32.mrf.mxu1 }
 0x19d   : > { %v2087_v26 = vpop.f32.mrf.mxu3  ;;  %6360 = vst [vmem:[#allocation86_spill] sm:$0xff] %v5181_v58 }
 0x19e   : > { %v5172_v11 = vadd.f32 %v2087_v26, %v1890_v28  ;;  %v1191_v54 = vpop.f32.mrf.mxu0 }
 0x19f   : > { %3803 = vmatmul.msk.f32.gmra.mxu2 %vm946_vm0, %v5163_v59  ;;  %3739 = vmatmul.msk.f32.gmra.mxu1 %vm946_vm0, %v5141_v13  ;;  %v1529_v43 = vadd.f32 %v1528_v40, %v1191_v54  ;;  %v409_v13 = vld [vmem:[%s4291_s30 + $0x1d0] sm:$0xf]  ;;  %v410_v40 = vld [vmem:[%s4291_s30 + $0x1d4] sm:$0x1] }
 0x1a0   : > { %6358 = vst [vmem:[#allocation84_spill] sm:$0xff] %v5172_v11  ;;  %v903_v11 = vrot.slane %v5181_v58, 1  ;;  %v554_v60 = vunpack.c.l.bf16 %v410_v40 }
 0x1a1   : > { %3675 = vmatmul.msk.f32.gmra.mxu0 %vm946_vm0, %v5161_v61 }
 0x1a2   : > { %v1765_v28 = vpop.f32.mrf.mxu2  ;;  %3867 = vmatmul.msk.f32.gmra.mxu3 %vm946_vm0, %v5179_v32  ;;  %v5197_v2 = vsel %vm749_vm1, %v903_v11, %v904_v57  ;;  %v907_v61 = vrot.slane %v554_v60, 1 }
 0x1a3   : > { %v1891_v12 = vadd.f32 %v1765_v28, %v1529_v43  ;;  %6362 = vst [vmem:[#allocation88_spill] sm:$0xff] %v5197_v2  ;;  %v5199_v43 = vunpack.c.l.bf16 %v409_v13 }
 0x1a4   : > { %v1531_v26 = vpop.f32.mrf.mxu1 }
 0x1a5   : > { %v2090_v54 = vpop.f32.mrf.mxu3  ;;  %6363 = vst [vmem:[#allocation89_spill] sm:$0xff] %v5199_v43 }
 0x1a6   : > { %v5190_v15 = vadd.f32 %v2090_v54, %v1891_v12  ;;  %v1194_v6 = vpop.f32.mrf.mxu0 }
 0x1a7   : > { %3804 = vmatmul.msk.f32.gmra.mxu2 %vm946_vm0, %v5181_v58  ;;  %3740 = vmatmul.msk.f32.gmra.mxu1 %vm946_vm0, %v5163_v59  ;;  %v1532_v19 = vadd.f32 %v1531_v26, %v1194_v6  ;;  %v411_v59 = vld [vmem:[%s4291_s30 + $0x1d8] sm:$0xf]  ;;  %v412_v26 = vld [vmem:[%s4291_s30 + $0x1dc] sm:$0x1] }
 0x1a8   : > { %6361 = vst [vmem:[#allocation87_spill] sm:$0xff] %v5190_v15  ;;  %v906_v15 = vrot.slane %v5199_v43, 1  ;;  %v556_v60 = vunpack.c.l.bf16 %v412_v26 }
 0x1a9   : > { %3676 = vmatmul.msk.f32.gmra.mxu0 %vm946_vm0, %v5179_v32 }
 0x1aa   : > { %v1768_v28 = vpop.f32.mrf.mxu2  ;;  %3868 = vmatmul.msk.f32.gmra.mxu3 %vm946_vm0, %v5197_v2  ;;  %v5215_v40 = vsel %vm749_vm1, %v906_v15, %v907_v61  ;;  %v910_v32 = vrot.slane %v556_v60, 1 }
 0x1ab   : > { %v1892_v12 = vadd.f32 %v1768_v28, %v1532_v19  ;;  %6365 = vst [vmem:[#allocation91_spill] sm:$0xff] %v5215_v40  ;;  %v5217_v19 = vunpack.c.l.bf16 %v411_v59 }
 0x1ac   : > { %v1534_v54 = vpop.f32.mrf.mxu1 }
 0x1ad   : > { %v2093_v6 = vpop.f32.mrf.mxu3  ;;  %6366 = vst [vmem:[#allocation92_spill] sm:$0xff] %v5217_v19 }
 0x1ae   : > { %v5208_v57 = vadd.f32 %v2093_v6, %v1892_v12  ;;  %v1197_v13 = vpop.f32.mrf.mxu0 }
 0x1af   : > { %3805 = vmatmul.msk.f32.gmra.mxu2 %vm946_vm0, %v5199_v43  ;;  %3741 = vmatmul.msk.f32.gmra.mxu1 %vm946_vm0, %v5181_v58  ;;  %v1535_v11 = vadd.f32 %v1534_v54, %v1197_v13  ;;  %v413_v58 = vld [vmem:[%s4291_s30 + $0x1e0] sm:$0xf]  ;;  %v414_v54 = vld [vmem:[%s4291_s30 + $0x1e4] sm:$0x1] }
 0x1b0   : > { %6364 = vst [vmem:[#allocation90_spill] sm:$0xff] %v5208_v57  ;;  %v909_v57 = vrot.slane %v5217_v19, 1  ;;  %v558_v60 = vunpack.c.l.bf16 %v414_v54 }
 0x1b1   : > { %3677 = vmatmul.msk.f32.gmra.mxu0 %vm946_vm0, %v5197_v2 }
 0x1b2   : > { %v1771_v28 = vpop.f32.mrf.mxu2  ;;  %3869 = vmatmul.msk.f32.gmra.mxu3 %vm946_vm0, %v5215_v40  ;;  %v5233_v26 = vsel %vm749_vm1, %v909_v57, %v910_v32  ;;  %v913_v2 = vrot.slane %v558_v60, 1 }
 0x1b3   : > { %v1893_v12 = vadd.f32 %v1771_v28, %v1535_v11  ;;  %6368 = vst [vmem:[#allocation94_spill] sm:$0xff] %v5233_v26  ;;  %v5235_v11 = vunpack.c.l.bf16 %v413_v58 }
 0x1b4   : > { %v1537_v6 = vpop.f32.mrf.mxu1 }
 0x1b5   : > { %v2096_v13 = vpop.f32.mrf.mxu3  ;;  %6369 = vst [vmem:[#allocation95_spill] sm:$0xff] %v5235_v11 }
 0x1b6   : > { %v5226_v61 = vadd.f32 %v2096_v13, %v1893_v12  ;;  %v1200_v59 = vpop.f32.mrf.mxu0 }
 0x1b7   : > { %3806 = vmatmul.msk.f32.gmra.mxu2 %vm946_vm0, %v5217_v19  ;;  %3742 = vmatmul.msk.f32.gmra.mxu1 %vm946_vm0, %v5199_v43  ;;  %v1538_v15 = vadd.f32 %v1537_v6, %v1200_v59  ;;  %v415_v43 = vld [vmem:[%s4291_s30 + $0x1e8] sm:$0xf]  ;;  %v416_v6 = vld [vmem:[%s4291_s30 + $0x1ec] sm:$0x1] }
 0x1b8   : > { %6367 = vst [vmem:[#allocation93_spill] sm:$0xff] %v5226_v61  ;;  %v912_v61 = vrot.slane %v5235_v11, 1  ;;  %v560_v60 = vunpack.c.l.bf16 %v416_v6 }
 0x1b9   : > { %3678 = vmatmul.msk.f32.gmra.mxu0 %vm946_vm0, %v5215_v40 }
 0x1ba   : > { %v1774_v28 = vpop.f32.mrf.mxu2  ;;  %3870 = vmatmul.msk.f32.gmra.mxu3 %vm946_vm0, %v5233_v26  ;;  %v5251_v54 = vsel %vm749_vm1, %v912_v61, %v913_v2  ;;  %v916_v40 = vrot.slane %v560_v60, 1 }
 0x1bb   : > { %v1894_v12 = vadd.f32 %v1774_v28, %v1538_v15  ;;  %6371 = vst [vmem:[#allocation97_spill] sm:$0xff] %v5251_v54  ;;  %v5253_v15 = vunpack.c.l.bf16 %v415_v43 }
 0x1bc   : > { %v1540_v13 = vpop.f32.mrf.mxu1 }
 0x1bd   : > { %v2099_v59 = vpop.f32.mrf.mxu3  ;;  %6372 = vst [vmem:[#allocation98_spill] sm:$0xff] %v5253_v15 }
 0x1be   : > { %v5244_v32 = vadd.f32 %v2099_v59, %v1894_v12  ;;  %v1203_v58 = vpop.f32.mrf.mxu0 }
 0x1bf   : > { %3807 = vmatmul.msk.f32.gmra.mxu2 %vm946_vm0, %v5235_v11  ;;  %3743 = vmatmul.msk.f32.gmra.mxu1 %vm946_vm0, %v5217_v19  ;;  %v1541_v57 = vadd.f32 %v1540_v13, %v1203_v58  ;;  %v417_v19 = vld [vmem:[%s4291_s30 + $0x1f0] sm:$0xf]  ;;  %v418_v13 = vld [vmem:[%s4291_s30 + $0x1f4] sm:$0x1] }
 0x1c0   : > { %6370 = vst [vmem:[#allocation96_spill] sm:$0xff] %v5244_v32  ;;  %v915_v32 = vrot.slane %v5253_v15, 1  ;;  %v562_v60 = vunpack.c.l.bf16 %v418_v13 }
 0x1c1   : > { %3679 = vmatmul.msk.f32.gmra.mxu0 %vm946_vm0, %v5233_v26 }
 0x1c2   : > { %v1777_v28 = vpop.f32.mrf.mxu2  ;;  %3871 = vmatmul.msk.f32.gmra.mxu3 %vm946_vm0, %v5251_v54  ;;  %v5269_v6 = vsel %vm749_vm1, %v915_v32, %v916_v40  ;;  %v1949_v26 = vrot.slane %v562_v60, 1  ;;  %v422_v40 = vld [vmem:[%s4291_s30 + $0x204] sm:$0x1] }
 0x1c3   : > { %v1895_v12 = vadd.f32 %v1777_v28, %v1541_v57  ;;  %v5271_v57 = vunpack.c.l.bf16 %v417_v19 }
 0x1c4   : > { %v1543_v59 = vpop.f32.mrf.mxu1 }
 0x1c5   : > { %v2102_v58 = vpop.f32.mrf.mxu3  ;;  %6374 = vst [vmem:[#allocation100_spill] sm:$0xff] %v5271_v57 }
 0x1c6   : > { %v5262_v2 = vadd.f32 %v2102_v58, %v1895_v12  ;;  %v1206_v43 = vpop.f32.mrf.mxu0 }
 0x1c7   : > { %3808 = vmatmul.msk.f32.gmra.mxu2 %vm946_vm0, %v5253_v15  ;;  %3744 = vmatmul.msk.f32.gmra.mxu1 %vm946_vm0, %v5235_v11  ;;  %v1544_v61 = vadd.f32 %v1543_v59, %v1206_v43  ;;  %v419_v11 = vld [vmem:[%s4291_s30 + $0x1f8] sm:$0xf]  ;;  %v420_v59 = vld [vmem:[%s4291_s30 + $0x1fc] sm:$0x1]  ;;  %v421_v43 = vld [vmem:[%s4291_s30 + $0x200] sm:$0xf] }
 0x1c8   : > { %6373 = vst [vmem:[#allocation99_spill] sm:$0xff] %v5262_v2  ;;  %v1948_v2 = vrot.slane %v5271_v57, 1  ;;  %v5293_v44 = vunpack.c.l.bf16 %v421_v43 }
 0x1c9   : > { %3680 = vmatmul.msk.f32.gmra.mxu0 %vm946_vm0, %v5251_v54 }
 0x1ca   : > { %v1780_v28 = vpop.f32.mrf.mxu2  ;;  %3872 = vmatmul.msk.f32.gmra.mxu3 %vm946_vm0, %v5269_v6  ;;  %v5291_v54 = vsel %vm749_vm1, %v1948_v2, %v1949_v26  ;;  %6378 = vst [vmem:[#allocation104_spill] sm:$0xff] %v5293_v44  ;;  %v423_v26 = vld [vmem:[%s4291_s30 + $0x208] sm:$0xf]  ;;  %v424_v2 = vld [vmem:[%s4291_s30 + $0x20c] sm:$0x1] }
 0x1cb   : > { %v1896_v12 = vadd.f32 %v1780_v28, %v1544_v61  ;;  %v5288_v61 = vunpack.c.l.bf16 %v419_v11  ;;  %v564_v28 = vunpack.c.l.bf16 %v420_v59  ;;  %6377 = vst [vmem:[#allocation103_spill] sm:$0xff] %v5291_v54 }
 0x1cc   : > { %v1546_v58 = vpop.f32.mrf.mxu1 }
 0x1cd   : > { %v2105_v32 = vpop.f32.mrf.mxu3  ;;  %6376 = vst [vmem:[#allocation102_spill] sm:$0xff] %v5288_v61  ;;  %v918_v11 = vrot.slane %v5288_v61, 1 }
 0x1ce   : > { %v5282_v19 = vadd.f32 %v2105_v32, %v1896_v12  ;;  %v1209_v13 = vpop.f32.mrf.mxu0  ;;  %v566_v12 = vunpack.c.l.bf16 %v422_v40 }
 0x1cf   : > { %3809 = vmatmul.msk.f32.gmra.mxu2 %vm946_vm0, %v5271_v57  ;;  %3745 = vmatmul.msk.f32.gmra.mxu1 %vm946_vm0, %v5253_v15  ;;  %v1547_v60 = vadd.f32 %v1546_v58, %v1209_v13  ;;  %v919_v57 = vrot.slane %v564_v28, 1  ;;  %v921_v58 = vrot.slane %v5293_v44, 1 }
 0x1d0   : > { %6375 = vst [vmem:[#allocation101_spill] sm:$0xff] %v5282_v19  ;;  %v922_v59 = vrot.slane %v566_v12, 1 }
 0x1d1   : > { %3681 = vmatmul.msk.f32.gmra.mxu0 %vm946_vm0, %v5269_v6 }
 0x1d2   : > { %v1783_v32 = vpop.f32.mrf.mxu2  ;;  %3873 = vmatmul.msk.f32.gmra.mxu3 %vm946_vm0, %v5291_v54  ;;  %v5313_v12 = vsel %vm749_vm1, %v921_v58, %v922_v59 }
 0x1d3   : > { %v1897_v19 = vadd.f32 %v1783_v32, %v1547_v60  ;;  %v5308_v60 = vsel %vm749_vm1, %v918_v11, %v919_v57  ;;  %6381 = vst [vmem:[#allocation107_spill] sm:$0xff] %v5313_v12  ;;  %v5315_v32 = vunpack.c.l.bf16 %v423_v26 }
 0x1d4   : > { %v1549_v15 = vpop.f32.mrf.mxu1  ;;  %6380 = vst [vmem:[#allocation106_spill] sm:$0xff] %v5308_v60 }
 0x1d5   : > { %v2108_v43 = vpop.f32.mrf.mxu3  ;;  %6382 = vst [vmem:[#allocation108_spill] sm:$0xff] %v5315_v32  ;;  %v924_v11 = vrot.slane %v5315_v32, 1 }
 0x1d6   : > { %v5303_v13 = vadd.f32 %v2108_v43, %v1897_v19  ;;  %v1212_v40 = vpop.f32.mrf.mxu0  ;;  %v568_v19 = vunpack.c.l.bf16 %v424_v2 }
 0x1d7   : > { %3810 = vmatmul.msk.f32.gmra.mxu2 %vm946_vm0, %v5293_v44  ;;  %3746 = vmatmul.msk.f32.gmra.mxu1 %vm946_vm0, %v5288_v61  ;;  %v1550_v28 = vadd.f32 %v1549_v15, %v1212_v40  ;;  %v425_v61 = vld [vmem:[%s4291_s30 + $0x210] sm:$0xf]  ;;  %v426_v15 = vld [vmem:[%s4291_s30 + $0x214] sm:$0x1] }
 0x1d8   : > { %6379 = vst [vmem:[#allocation105_spill] sm:$0xff] %v5303_v13  ;;  %v925_v54 = vrot.slane %v568_v19, 1  ;;  %v570_v19 = vunpack.c.l.bf16 %v426_v15 }
 0x1d9   : > { %3682 = vmatmul.msk.f32.gmra.mxu0 %vm946_vm0, %v5308_v60 }
 0x1da   : > { %v1786_v43 = vpop.f32.mrf.mxu2  ;;  %3874 = vmatmul.msk.f32.gmra.mxu3 %vm946_vm0, %v5313_v12  ;;  %v5331_v2 = vsel %vm749_vm1, %v924_v11, %v925_v54  ;;  %v928_v60 = vrot.slane %v570_v19, 1 }
 0x1db   : > { %v1898_v13 = vadd.f32 %v1786_v43, %v1550_v28  ;;  %6384 = vst [vmem:[#allocation110_spill] sm:$0xff] %v5331_v2  ;;  %v5333_v28 = vunpack.c.l.bf16 %v425_v61 }
 0x1dc   : > { %v1552_v57 = vpop.f32.mrf.mxu1 }
 0x1dd   : > { %v2111_v40 = vpop.f32.mrf.mxu3  ;;  %6385 = vst [vmem:[#allocation111_spill] sm:$0xff] %v5333_v28 }
 0x1de   : > { %v5324_v58 = vadd.f32 %v2111_v40, %v1898_v13  ;;  %v1215_v59 = vpop.f32.mrf.mxu0 }
 0x1df   : > { %3811 = vmatmul.msk.f32.gmra.mxu2 %vm946_vm0, %v5315_v32  ;;  %3747 = vmatmul.msk.f32.gmra.mxu1 %vm946_vm0, %v5293_v44  ;;  %v1553_v26 = vadd.f32 %v1552_v57, %v1215_v59  ;;  %v427_v44 = vld [vmem:[%s4291_s30 + $0x218] sm:$0xf]  ;;  %v428_v57 = vld [vmem:[%s4291_s30 + $0x21c] sm:$0x1] }
 0x1e0   : > { %6383 = vst [vmem:[#allocation109_spill] sm:$0xff] %v5324_v58  ;;  %v927_v58 = vrot.slane %v5333_v28, 1  ;;  %v572_v19 = vunpack.c.l.bf16 %v428_v57 }
 0x1e1   : > { %3683 = vmatmul.msk.f32.gmra.mxu0 %vm946_vm0, %v5313_v12 }
 0x1e2   : > { %v1789_v13 = vpop.f32.mrf.mxu2  ;;  %3875 = vmatmul.msk.f32.gmra.mxu3 %vm946_vm0, %v5331_v2  ;;  %v5349_v15 = vsel %vm749_vm1, %v927_v58, %v928_v60  ;;  %v931_v12 = vrot.slane %v572_v19, 1 }
 0x1e3   : > { %v1899_v43 = vadd.f32 %v1789_v13, %v1553_v26  ;;  %6387 = vst [vmem:[#allocation113_spill] sm:$0xff] %v5349_v15  ;;  %v5351_v26 = vunpack.c.l.bf16 %v427_v44 }
 0x1e4   : > { %v1555_v40 = vpop.f32.mrf.mxu1 }
 0x1e5   : > { %v2114_v59 = vpop.f32.mrf.mxu3  ;;  %6388 = vst [vmem:[#allocation114_spill] sm:$0xff] %v5351_v26 }
 0x1e6   : > { %v5342_v54 = vadd.f32 %v2114_v59, %v1899_v43  ;;  %v1218_v61 = vpop.f32.mrf.mxu0 }
 0x1e7   : > { %3812 = vmatmul.msk.f32.gmra.mxu2 %vm946_vm0, %v5333_v28  ;;  %3748 = vmatmul.msk.f32.gmra.mxu1 %vm946_vm0, %v5315_v32  ;;  %v1556_v11 = vadd.f32 %v1555_v40, %v1218_v61  ;;  %v429_v32 = vld [vmem:[%s4291_s30 + $0x220] sm:$0xf]  ;;  %v430_v40 = vld [vmem:[%s4291_s30 + $0x224] sm:$0x1] }
 0x1e8   : > { %6386 = vst [vmem:[#allocation112_spill] sm:$0xff] %v5342_v54  ;;  %v930_v54 = vrot.slane %v5351_v26, 1  ;;  %v574_v19 = vunpack.c.l.bf16 %v430_v40 }
 0x1e9   : > { %3684 = vmatmul.msk.f32.gmra.mxu0 %vm946_vm0, %v5331_v2 }
 0x1ea   : > { %v1792_v13 = vpop.f32.mrf.mxu2  ;;  %3876 = vmatmul.msk.f32.gmra.mxu3 %vm946_vm0, %v5349_v15  ;;  %v5367_v57 = vsel %vm749_vm1, %v930_v54, %v931_v12  ;;  %v934_v2 = vrot.slane %v574_v19, 1 }
 0x1eb   : > { %v1900_v43 = vadd.f32 %v1792_v13, %v1556_v11  ;;  %6390 = vst [vmem:[#allocation116_spill] sm:$0xff] %v5367_v57  ;;  %v5369_v11 = vunpack.c.l.bf16 %v429_v32 }
 0x1ec   : > { %v1558_v59 = vpop.f32.mrf.mxu1 }
 0x1ed   : > { %v2117_v61 = vpop.f32.mrf.mxu3  ;;  %6391 = vst [vmem:[#allocation117_spill] sm:$0xff] %v5369_v11 }
 0x1ee   : > { %v5360_v60 = vadd.f32 %v2117_v61, %v1900_v43  ;;  %v1221_v44 = vpop.f32.mrf.mxu0 }
 0x1ef   : > { %3813 = vmatmul.msk.f32.gmra.mxu2 %vm946_vm0, %v5351_v26  ;;  %3749 = vmatmul.msk.f32.gmra.mxu1 %vm946_vm0, %v5333_v28  ;;  %v1559_v58 = vadd.f32 %v1558_v59, %v1221_v44  ;;  %v431_v28 = vld [vmem:[%s4291_s30 + $0x228] sm:$0xf]  ;;  %v432_v59 = vld [vmem:[%s4291_s30 + $0x22c] sm:$0x1] }
 0x1f0   : > { %6389 = vst [vmem:[#allocation115_spill] sm:$0xff] %v5360_v60  ;;  %v933_v60 = vrot.slane %v5369_v11, 1  ;;  %v576_v19 = vunpack.c.l.bf16 %v432_v59 }
 0x1f1   : > { %3685 = vmatmul.msk.f32.gmra.mxu0 %vm946_vm0, %v5349_v15 }
 0x1f2   : > { %v1795_v13 = vpop.f32.mrf.mxu2  ;;  %3877 = vmatmul.msk.f32.gmra.mxu3 %vm946_vm0, %v5367_v57  ;;  %v5385_v40 = vsel %vm749_vm1, %v933_v60, %v934_v2  ;;  %v937_v15 = vrot.slane %v576_v19, 1 }
 0x1f3   : > { %v1901_v43 = vadd.f32 %v1795_v13, %v1559_v58  ;;  %6393 = vst [vmem:[#allocation119_spill] sm:$0xff] %v5385_v40  ;;  %v5387_v58 = vunpack.c.l.bf16 %v431_v28 }
 0x1f4   : > { %v1561_v61 = vpop.f32.mrf.mxu1 }
 0x1f5   : > { %v2120_v44 = vpop.f32.mrf.mxu3  ;;  %6394 = vst [vmem:[#allocation120_spill] sm:$0xff] %v5387_v58 }
 0x1f6   : > { %v5378_v12 = vadd.f32 %v2120_v44, %v1901_v43  ;;  %v1224_v32 = vpop.f32.mrf.mxu0 }
 0x1f7   : > { %3814 = vmatmul.msk.f32.gmra.mxu2 %vm946_vm0, %v5369_v11  ;;  %3750 = vmatmul.msk.f32.gmra.mxu1 %vm946_vm0, %v5351_v26  ;;  %v1562_v54 = vadd.f32 %v1561_v61, %v1224_v32  ;;  %v433_v26 = vld [vmem:[%s4291_s30 + $0x230] sm:$0xf]  ;;  %v434_v61 = vld [vmem:[%s4291_s30 + $0x234] sm:$0x1] }
 0x1f8   : > { %6392 = vst [vmem:[#allocation118_spill] sm:$0xff] %v5378_v12  ;;  %v936_v12 = vrot.slane %v5387_v58, 1  ;;  %v578_v19 = vunpack.c.l.bf16 %v434_v61 }
 0x1f9   : > { %3686 = vmatmul.msk.f32.gmra.mxu0 %vm946_vm0, %v5367_v57 }
 0x1fa   : > { %v1798_v13 = vpop.f32.mrf.mxu2  ;;  %3878 = vmatmul.msk.f32.gmra.mxu3 %vm946_vm0, %v5385_v40  ;;  %v5403_v59 = vsel %vm749_vm1, %v936_v12, %v937_v15  ;;  %v940_v57 = vrot.slane %v578_v19, 1 }
 0x1fb   : > { %v1902_v43 = vadd.f32 %v1798_v13, %v1562_v54  ;;  %v5405_v54 = vunpack.c.l.bf16 %v433_v26 }
 0x1fc   : > { %v1564_v44 = vpop.f32.mrf.mxu1 }
 0x1fd   : > { %v2123_v32 = vpop.f32.mrf.mxu3 }
 0x1fe   : > { %v5396_v2 = vadd.f32 %v2123_v32, %v1902_v43  ;;  %v1227_v28 = vpop.f32.mrf.mxu0 }
 0x1ff   : > { %3815 = vmatmul.msk.f32.gmra.mxu2 %vm946_vm0, %v5387_v58  ;;  %3751 = vmatmul.msk.f32.gmra.mxu1 %vm946_vm0, %v5369_v11  ;;  %v1565_v60 = vadd.f32 %v1564_v44, %v1227_v28  ;;  %v435_v11 = vld [vmem:[%s4291_s30 + $0x238] sm:$0xf]  ;;  %v436_v44 = vld [vmem:[%s4291_s30 + $0x23c] sm:$0x1]  ;;  %s4142_s30 = sshll.u32 %s6523_s12, 9 }
 0x200   : > { %6395 = vst [vmem:[#allocation121_spill] sm:$0xff] %v5396_v2  ;;  %v939_v2 = vrot.slane %v5405_v54, 1  ;;  %s5618_s20 = scalar_lea.vmem %s6137_s3, %s4142_s30 }
 0x201   : > { %3687 = vmatmul.msk.f32.gmra.mxu0 %vm946_vm0, %v5385_v40 }
 0x202   : > { %v1801_v13 = vpop.f32.mrf.mxu2  ;;  %3879 = vmatmul.msk.f32.gmra.mxu3 %vm946_vm0, %v5403_v59  ;;  %v5421_v61 = vsel %vm749_vm1, %v939_v2, %v940_v57 }
 0x203   : > { %v1903_v43 = vadd.f32 %v1801_v13, %v1565_v60  ;;  %v5423_v60 = vunpack.c.l.bf16 %v435_v11  ;;  %v580_v13 = vunpack.c.l.bf16 %v436_v44 }
 0x204   : > { %v1567_v32 = vpop.f32.mrf.mxu1 }
 0x205   : > { %v2126_v28 = vpop.f32.mrf.mxu3  ;;  %v1952_v40 = vrot.slane %v580_v13, 1 }
 0x206   : > { %v5414_v15 = vadd.f32 %v2126_v28, %v1903_v43  ;;  %v1230_v26 = vpop.f32.mrf.mxu0 }
 0x207   : > { %3816 = vmatmul.msk.f32.gmra.mxu2 %vm946_vm0, %v5405_v54  ;;  %3752 = vmatmul.msk.f32.gmra.mxu1 %vm946_vm0, %v5387_v58  ;;  %v1568_v12 = vadd.f32 %v1567_v32, %v1230_v26 }
 0x208   : > { %6396 = vst [vmem:[#allocation122_spill] sm:$0xff] %v5414_v15  ;;  %v1951_v15 = vrot.slane %v5423_v60, 1 }
 0x209   : > { %3688 = vmatmul.msk.f32.gmra.mxu0 %vm946_vm0, %v5403_v59 }
 0x20a   : > { %v1804_v19 = vpop.f32.mrf.mxu2  ;;  %3880 = vmatmul.msk.f32.gmra.mxu3 %vm946_vm0, %v5421_v61  ;;  %v5437_v2 = vsel %vm749_vm1, %v1951_v15, %v1952_v40 }
 0x20b   : > { %v1904_v43 = vadd.f32 %v1804_v19, %v1568_v12 }
 0x20c   : > { %v1570_v28 = vpop.f32.mrf.mxu1 }
 0x20d   : > { %v2129_v58 = vpop.f32.mrf.mxu3 }
 0x20e   : > { %v5430_v32 = vadd.f32 %v2129_v58, %v1904_v43  ;;  %v1233_v57 = vpop.f32.mrf.mxu0 }
 0x20f   : > { %3817 = vmatmul.msk.f32.gmra.mxu2 %vm946_vm0, %v5423_v60  ;;  %3753 = vmatmul.msk.f32.gmra.mxu1 %vm946_vm0, %v5405_v54  ;;  %v1571_v11 = vadd.f32 %v1570_v28, %v1233_v57 }
 0x211   : > { %3689 = vmatmul.msk.f32.gmra.mxu0 %vm946_vm0, %v5421_v61 }
 0x212   : > { %v1807_v44 = vpop.f32.mrf.mxu2  ;;  %3881 = vmatmul.msk.f32.gmra.mxu3 %vm946_vm0, %v5437_v2 }
 0x213   : > { %v1905_v26 = vadd.f32 %v1807_v44, %v1571_v11 }
 0x214   : > { %v1573_v58 = vpop.f32.mrf.mxu1 }
 0x215   : > { %v2132_v12 = vpop.f32.mrf.mxu3 }
 0x216   : > { %v5443_v13 = vadd.f32 %v2132_v12, %v1905_v26  ;;  %v1236_v19 = vpop.f32.mrf.mxu0 }
 0x217   : > { %4010 = vmatmul.msk.f32.vlgmr.msrb.gmra.mxu2 %vm946_vm0, %v4365_v25  ;;  %3946 = vmatmul.msk.f32.vlgmr.msrb.gmra.mxu1 %vm946_vm0, %v4376_v33  ;;  %v1574_v40 = vadd.f32 %v1573_v58, %v1236_v19 }
 0x219   : > { %3882 = vmatmul.msk.f32.vlgmr.msrb.gmra.mxu0 %vm946_vm0, %v4362_v22 }
 0x21a   : > { %v1810_v15 = vpop.f32.mrf.mxu2  ;;  %4074 = vmatmul.msk.f32.vlgmr.msrb.gmra.mxu3 %vm946_vm0, %v4381_v34 }
 0x21b   : > { %v1906_v43 = vadd.f32 %v1810_v15, %v1574_v40 }
 0x21c   : > { %v1576_v28 = vpop.f32.mrf.mxu1 }
 0x21d   : > { %v2135_v57 = vpop.f32.mrf.mxu3 }
 0x21e   : > { %v5453_v11 = vadd.f32 %v2135_v57, %v1906_v43  ;;  %v1239_v44 = vpop.f32.mrf.mxu0 }
 0x21f   : > { %4011 = vmatmul.msk.f32.gmra.mxu2 %vm946_vm0, %v4383_v35  ;;  %3947 = vmatmul.msk.f32.gmra.mxu1 %vm946_vm0, %v4381_v34  ;;  %v1577_v33 = vadd.f32 %v1576_v28, %v1239_v44 }
 0x221   : > { %3883 = vmatmul.msk.f32.gmra.mxu0 %vm946_vm0, %v4365_v25 }
 0x222   : > { %v1813_v26 = vpop.f32.mrf.mxu2  ;;  %4075 = vmatmul.msk.f32.gmra.mxu3 %vm946_vm0, %v4397_v41 }
 0x223   : > { %v1907_v22 = vadd.f32 %v1813_v26, %v1577_v33 }
 0x224   : > { %v1579_v58 = vpop.f32.mrf.mxu1 }
 0x225   : > { %v2138_v12 = vpop.f32.mrf.mxu3 }
 0x226   : > { %v5463_v19 = vadd.f32 %v2138_v12, %v1907_v22  ;;  %v1242_v40 = vpop.f32.mrf.mxu0 }
 0x227   : > { %4012 = vmatmul.msk.f32.gmra.mxu2 %vm946_vm0, %v4399_v42  ;;  %3948 = vmatmul.msk.f32.gmra.mxu1 %vm946_vm0, %v4397_v41  ;;  %v1580_v34 = vadd.f32 %v1579_v58, %v1242_v40 }
 0x229   : > { %3884 = vmatmul.msk.f32.gmra.mxu0 %vm946_vm0, %v4383_v35 }
 0x22a   : > { %v1816_v15 = vpop.f32.mrf.mxu2  ;;  %4076 = vmatmul.msk.f32.gmra.mxu3 %vm946_vm0, %v4413_v48 }
 0x22b   : > { %v1908_v25 = vadd.f32 %v1816_v15, %v1580_v34 }
 0x22c   : > { %v1582_v43 = vpop.f32.mrf.mxu1 }
 0x22d   : > { %v2141_v28 = vpop.f32.mrf.mxu3 }
 0x22e   : > { %v5473_v57 = vadd.f32 %v2141_v28, %v1908_v25  ;;  %v1245_v44 = vpop.f32.mrf.mxu0 }
 0x22f   : > { %4013 = vmatmul.msk.f32.gmra.mxu2 %vm946_vm0, %v4415_v49  ;;  %3949 = vmatmul.msk.f32.gmra.mxu1 %vm946_vm0, %v4413_v48  ;;  %v1583_v41 = vadd.f32 %v1582_v43, %v1245_v44 }
 0x231   : > { %3885 = vmatmul.msk.f32.gmra.mxu0 %vm946_vm0, %v4399_v42 }
 0x232   : > { %v1819_v33 = vpop.f32.mrf.mxu2  ;;  %4077 = vmatmul.msk.f32.gmra.mxu3 %vm946_vm0, %v4429_v55 }
 0x233   : > { %v1909_v35 = vadd.f32 %v1819_v33, %v1583_v41 }
 0x234   : > { %v1585_v26 = vpop.f32.mrf.mxu1 }
 0x235   : > { %v2144_v22 = vpop.f32.mrf.mxu3 }
 0x236   : > { %v5483_v58 = vadd.f32 %v2144_v22, %v1909_v35  ;;  %v1248_v12 = vpop.f32.mrf.mxu0 }
 0x237   : > { %4014 = vmatmul.msk.f32.gmra.mxu2 %vm946_vm0, %v4431_v56  ;;  %3950 = vmatmul.msk.f32.gmra.mxu1 %vm946_vm0, %v4429_v55  ;;  %v1586_v48 = vadd.f32 %v1585_v26, %v1248_v12 }
 0x239   : > { %3886 = vmatmul.msk.f32.gmra.mxu0 %vm946_vm0, %v4415_v49 }
 0x23a   : > { %v1822_v40 = vpop.f32.mrf.mxu2  ;;  %4078 = vmatmul.msk.f32.gmra.mxu3 %vm946_vm0, %v4445_v62 }
 0x23b   : > { %v1910_v42 = vadd.f32 %v1822_v40, %v1586_v48 }
 0x23c   : > { %v1588_v34 = vpop.f32.mrf.mxu1 }
 0x23d   : > { %v2147_v15 = vpop.f32.mrf.mxu3 }
 0x23e   : > { %v5493_v25 = vadd.f32 %v2147_v15, %v1910_v42  ;;  %v1251_v43 = vpop.f32.mrf.mxu0 }
 0x23f   : > { %4015 = vmatmul.msk.f32.gmra.mxu2 %vm946_vm0, %v4447_v63  ;;  %3951 = vmatmul.msk.f32.gmra.mxu1 %vm946_vm0, %v4445_v62  ;;  %v1589_v55 = vadd.f32 %v1588_v34, %v1251_v43 }
 0x241   : > { %3887 = vmatmul.msk.f32.gmra.mxu0 %vm946_vm0, %v4431_v56 }
 0x242   : > { %v1825_v28 = vpop.f32.mrf.mxu2  ;;  %4079 = vmatmul.msk.f32.gmra.mxu3 %vm946_vm0, %v4473_v9 }
 0x243   : > { %v1911_v49 = vadd.f32 %v1825_v28, %v1589_v55 }
 0x244   : > { %v1591_v44 = vpop.f32.mrf.mxu1 }
 0x245   : > { %v2150_v41 = vpop.f32.mrf.mxu3 }
 0x246   : > { %v5503_v33 = vadd.f32 %v2150_v41, %v1911_v49  ;;  %v1254_v35 = vpop.f32.mrf.mxu0 }
 0x247   : > { %4016 = vmatmul.msk.f32.gmra.mxu2 %vm946_vm0, %v4475_v10  ;;  %3952 = vmatmul.msk.f32.gmra.mxu1 %vm946_vm0, %v4473_v9  ;;  %v1592_v62 = vadd.f32 %v1591_v44, %v1254_v35 }
 0x249   : > { %3888 = vmatmul.msk.f32.gmra.mxu0 %vm946_vm0, %v4447_v63 }
 0x24a   : > { %v1828_v26 = vpop.f32.mrf.mxu2  ;;  %4080 = vmatmul.msk.f32.gmra.mxu3 %vm946_vm0, %v4489_v16 }
 0x24b   : > { %v1912_v56 = vadd.f32 %v1828_v26, %v1592_v62 }
 0x24c   : > { %v1594_v22 = vpop.f32.mrf.mxu1 }
 0x24d   : > { %v2153_v12 = vpop.f32.mrf.mxu3 }
 0x24e   : > { %v5513_v48 = vadd.f32 %v2153_v12, %v1912_v56  ;;  %v1257_v40 = vpop.f32.mrf.mxu0 }
 0x24f   : > { %4017 = vmatmul.msk.f32.gmra.mxu2 %vm946_vm0, %v4491_v17  ;;  %3953 = vmatmul.msk.f32.gmra.mxu1 %vm946_vm0, %v4489_v16  ;;  %v1595_v9 = vadd.f32 %v1594_v22, %v1257_v40 }
 0x251   : > { %3889 = vmatmul.msk.f32.gmra.mxu0 %vm946_vm0, %v4475_v10 }
 0x252   : > { %v1831_v42 = vpop.f32.mrf.mxu2  ;;  %4081 = vmatmul.msk.f32.gmra.mxu3 %vm946_vm0, %v4509_v29 }
 0x253   : > { %v1913_v63 = vadd.f32 %v1831_v42, %v1595_v9 }
 0x254   : > { %v1597_v34 = vpop.f32.mrf.mxu1 }
 0x255   : > { %v2156_v15 = vpop.f32.mrf.mxu3 }
 0x256   : > { %v5523_v43 = vadd.f32 %v2156_v15, %v1913_v63  ;;  %v1260_v55 = vpop.f32.mrf.mxu0 }
 0x257   : > { %4018 = vmatmul.msk.f32.gmra.mxu2 %vm946_vm0, %v4511_v30  ;;  %3954 = vmatmul.msk.f32.gmra.mxu1 %vm946_vm0, %v4524_v45  ;;  %v1598_v16 = vadd.f32 %v1597_v34, %v1260_v55 }
 0x259   : > { %3890 = vmatmul.msk.f32.gmra.mxu0 %vm946_vm0, %v4506_v27 }
 0x25a   : > { %v1834_v17 = vpop.f32.mrf.mxu2  ;;  %4082 = vmatmul.msk.f32.gmra.mxu3 %vm946_vm0, %v4529_v47 }
 0x25b   : > { %v1914_v10 = vadd.f32 %v1834_v17, %v1598_v16 }
 0x25c   : > { %v1600_v29 = vpop.f32.mrf.mxu1 }
 0x25d   : > { %v2159_v28 = vpop.f32.mrf.mxu3 }
 0x25e   : > { %v5533_v49 = vadd.f32 %v2159_v28, %v1914_v10  ;;  %v1263_v44 = vpop.f32.mrf.mxu0 }
 0x25f   : > { %4019 = vmatmul.msk.f32.gmra.mxu2 %vm946_vm0, %v4531_v50  ;;  %3955 = vmatmul.msk.f32.gmra.mxu1 %vm946_vm0, %v4529_v47  ;;  %v1601_v45 = vadd.f32 %v1600_v29, %v1263_v44 }
 0x261   : > { %3891 = vmatmul.msk.f32.gmra.mxu0 %vm946_vm0, %v4511_v30 }
 0x262   : > { %v1837_v41 = vpop.f32.mrf.mxu2  ;;  %4083 = vmatmul.msk.f32.gmra.mxu3 %vm946_vm0, %v4547_v3 }
 0x263   : > { %v1915_v27 = vadd.f32 %v1837_v41, %v1601_v45 }
 0x264   : > { %v1603_v35 = vpop.f32.mrf.mxu1 }
 0x265   : > { %v2162_v62 = vpop.f32.mrf.mxu3 }
 0x266   : > { %v5543_v26 = vadd.f32 %v2162_v62, %v1915_v27  ;;  %v1266_v56 = vpop.f32.mrf.mxu0 }
 0x267   : > { %4020 = vmatmul.msk.f32.gmra.mxu2 %vm946_vm0, %v4549_v4  ;;  %3956 = vmatmul.msk.f32.gmra.mxu1 %vm946_vm0, %v4547_v3  ;;  %v1604_v47 = vadd.f32 %v1603_v35, %v1266_v56 }
 0x269   : > { %3892 = vmatmul.msk.f32.gmra.mxu0 %vm946_vm0, %v4531_v50 }
 0x26a   : > { %v1840_v22 = vpop.f32.mrf.mxu2  ;;  %4084 = vmatmul.msk.f32.gmra.mxu3 %vm946_vm0, %v4565_v21 }
 0x26b   : > { %v1916_v30 = vadd.f32 %v1840_v22, %v1604_v47 }
 0x26c   : > { %v1606_v12 = vpop.f32.mrf.mxu1 }
 0x26d   : > { %v2165_v40 = vpop.f32.mrf.mxu3 }
 0x26e   : > { %v5553_v9 = vadd.f32 %v2165_v40, %v1916_v30  ;;  %v1269_v42 = vpop.f32.mrf.mxu0 }
 0x26f   : > { %4021 = vmatmul.msk.f32.gmra.mxu2 %vm946_vm0, %v4567_v23  ;;  %3957 = vmatmul.msk.f32.gmra.mxu1 %vm946_vm0, %v4565_v21  ;;  %v1607_v3 = vadd.f32 %v1606_v12, %v1269_v42 }
 0x271   : > { %3893 = vmatmul.msk.f32.gmra.mxu0 %vm946_vm0, %v4549_v4 }
 0x272   : > { %v1843_v63 = vpop.f32.mrf.mxu2  ;;  %4085 = vmatmul.msk.f32.gmra.mxu3 %vm946_vm0, %v4583_v46 }
 0x273   : > { %v1917_v50 = vadd.f32 %v1843_v63, %v1607_v3 }
 0x274   : > { %v1609_v34 = vpop.f32.mrf.mxu1 }
 0x275   : > { %v2168_v15 = vpop.f32.mrf.mxu3 }
 0x276   : > { %v5563_v55 = vadd.f32 %v2168_v15, %v1917_v50  ;;  %v1272_v16 = vpop.f32.mrf.mxu0 }
 0x277   : > { %4022 = vmatmul.msk.f32.gmra.mxu2 %vm946_vm0, %v4585_v51  ;;  %3958 = vmatmul.msk.f32.gmra.mxu1 %vm946_vm0, %v4583_v46  ;;  %v1610_v21 = vadd.f32 %v1609_v34, %v1272_v16 }
 0x279   : > { %3894 = vmatmul.msk.f32.gmra.mxu0 %vm946_vm0, %v4567_v23 }
 0x27a   : > { %v1846_v17 = vpop.f32.mrf.mxu2  ;;  %4086 = vmatmul.msk.f32.gmra.mxu3 %vm946_vm0, %v4601_v7 }
 0x27b   : > { %v1918_v4 = vadd.f32 %v1846_v17, %v1610_v21 }
 0x27c   : > { %v1612_v10 = vpop.f32.mrf.mxu1 }
 0x27d   : > { %v2171_v29 = vpop.f32.mrf.mxu3 }
 0x27e   : > { %v5573_v28 = vadd.f32 %v2171_v29, %v1918_v4  ;;  %v1275_v44 = vpop.f32.mrf.mxu0 }
 0x27f   : > { %4023 = vmatmul.msk.f32.gmra.mxu2 %vm946_vm0, %v4603_v8  ;;  %3959 = vmatmul.msk.f32.gmra.mxu1 %vm946_vm0, %v4601_v7  ;;  %v1613_v46 = vadd.f32 %v1612_v10, %v1275_v44 }
 0x281   : > { %3895 = vmatmul.msk.f32.gmra.mxu0 %vm946_vm0, %v4585_v51 }
 0x282   : > { %v1849_v45 = vpop.f32.mrf.mxu2  ;;  %4087 = vmatmul.msk.f32.gmra.mxu3 %vm946_vm0, %v4619_v36 }
 0x283   : > { %v1919_v23 = vadd.f32 %v1849_v45, %v1613_v46  ;;  %v6398_v45 = vld [vmem:[#allocation10_spill] sm:$0xff] }
 0x284   : > { %v1615_v41 = vpop.f32.mrf.mxu1 }
 0x285   : > { %v2174_v27 = vpop.f32.mrf.mxu3 }
 0x286   : > { %v5583_v35 = vadd.f32 %v2174_v27, %v1919_v23  ;;  %v1278_v62 = vpop.f32.mrf.mxu0 }
 0x287   : > { %4024 = vmatmul.msk.f32.gmra.mxu2 %vm946_vm0, %v4621_v37  ;;  %3960 = vmatmul.msk.f32.gmra.mxu1 %vm946_vm0, %v4619_v36  ;;  %v1616_v7 = vadd.f32 %v1615_v41, %v1278_v62 }
 0x289   : > { %3896 = vmatmul.msk.f32.gmra.mxu0 %vm946_vm0, %v4603_v8 }
 0x28a   : > { %v1852_v56 = vpop.f32.mrf.mxu2  ;;  %4088 = vmatmul.msk.f32.gmra.mxu3 %vm946_vm0, %v4637_v1 }
 0x28b   : > { %v1920_v51 = vadd.f32 %v1852_v56, %v1616_v7  ;;  %v6399_v56 = vld [vmem:[#allocation11_spill] sm:$0xff] }
 0x28c   : > { %v1618_v47 = vpop.f32.mrf.mxu1 }
 0x28d   : > { %v2177_v22 = vpop.f32.mrf.mxu3 }
 0x28e   : > { %v5593_v30 = vadd.f32 %v2177_v22, %v1920_v51  ;;  %v1281_v12 = vpop.f32.mrf.mxu0  ;;  %v6401_v22 = vld [vmem:[#allocation13_spill] sm:$0xff] }
 0x28f   : > { %4025 = vmatmul.msk.f32.gmra.mxu2 %vm946_vm0, %v4639_v5  ;;  %3961 = vmatmul.msk.f32.gmra.mxu1 %vm946_vm0, %v4637_v1  ;;  %v1619_v36 = vadd.f32 %v1618_v47, %v1281_v12 }
 0x291   : > { %3897 = vmatmul.msk.f32.gmra.mxu0 %vm946_vm0, %v4621_v37 }
 0x292   : > { %v1855_v40 = vpop.f32.mrf.mxu2  ;;  %4089 = vmatmul.msk.f32.gmra.mxu3 %vm946_vm0, %v4659_v52 }
 0x293   : > { %v1921_v8 = vadd.f32 %v1855_v40, %v1619_v36 }
 0x294   : > { %v2617_v42 = vpop.f32.mrf.mxu1 }
 0x295   : > { %v2180_v3 = vpop.f32.mrf.mxu3 }
 0x296   : > { %v5603_v63 = vadd.f32 %v2180_v3, %v1921_v8  ;;  %v2292_v50 = vpop.f32.mrf.mxu0  ;;  %v6402_v3 = vld [vmem:[#allocation14_spill] sm:$0xff] }
 0x297   : > { %4026 = vmatmul.msk.f32.gmra.mxu2 %vm946_vm0, %v4661_v53  ;;  %3962 = vmatmul.msk.f32.gmra.mxu1 %vm946_vm0, %v4676_v24  ;;  %v2484_v1 = vadd.f32 %v2292_v50, %v4540_v0  ;;  %v6403_v50 = vld [vmem:[#allocation4_spill] sm:$0xff] }
 0x299   : > { %v2809_v5 = vadd.f32 %v2617_v42, %v2484_v1  ;;  %3898 = vmatmul.msk.f32.gmra.mxu0 %vm946_vm0, %v4656_v39 }
 0x29a   : > { %v2897_v37 = vpop.f32.mrf.mxu2  ;;  %4090 = vmatmul.msk.f32.gmra.mxu3 %vm946_vm0, %v4681_v31 }
 0x29b   : > { %v3089_v52 = vadd.f32 %v2897_v37, %v2809_v5  ;;  %v6404_v37 = vld [vmem:[#allocation16_spill] sm:$0xff] }
 0x29c   : > { %v2620_v34 = vpop.f32.mrf.mxu1 }
 0x29d   : > { %v3180_v24 = vpop.f32.mrf.mxu3 }
 0x29e   : > { %v3372_v15 = vadd.f32 %v3180_v24, %v3089_v52  ;;  %v2295_v0 = vpop.f32.mrf.mxu0 }
 0x29f   : > { %4027 = vmatmul.msk.f32.gmra.mxu2 %vm946_vm0, %v4683_v38  ;;  %3963 = vmatmul.msk.f32.gmra.mxu1 %vm946_vm0, %v4681_v31  ;;  %v2485_v39 = vadd.f32 %v2295_v0, %v4558_v18  ;;  %v6397_v18 = vld [vmem:[#allocation2_spill] sm:$0xff] }
 0x2a0   : > { %3436 = vst [vmem:[%s5618_s20] sm:$0xff] %v3372_v15 }
 0x2a1   : > { %v2810_v16 = vadd.f32 %v2620_v34, %v2485_v39  ;;  %3899 = vmatmul.msk.f32.gmra.mxu0 %vm946_vm0, %v4661_v53  ;;  %v6405_v39 = vld [vmem:[#allocation17_spill] sm:$0xff] }
 0x2a2   : > { %v2900_v21 = vpop.f32.mrf.mxu2  ;;  %4091 = vmatmul.msk.f32.gmra.mxu3 %vm946_vm0, %v4699_v14 }
 0x2a3   : > { %v3090_v17 = vadd.f32 %v2900_v21, %v2810_v16  ;;  %v6406_v16 = vld [vmem:[#allocation5_spill] sm:$0xff] }
 0x2a4   : > { %v2623_v4 = vpop.f32.mrf.mxu1 }
 0x2a5   : > { %v3183_v10 = vpop.f32.mrf.mxu3 }
 0x2a6   : > { %v3373_v29 = vadd.f32 %v3183_v10, %v3090_v17  ;;  %v2298_v44 = vpop.f32.mrf.mxu0  ;;  %v6407_v10 = vld [vmem:[#allocation19_spill] sm:$0xff] }
 0x2a7   : > { %4028 = vmatmul.msk.f32.gmra.mxu2 %vm946_vm0, %v4701_v20  ;;  %3964 = vmatmul.msk.f32.gmra.mxu1 %vm946_vm0, %v4699_v14  ;;  %v2486_v31 = vadd.f32 %v2298_v44, %v6397_v18  ;;  %v6400_v14 = vld [vmem:[#allocation3_spill] sm:$0xff] }
 0x2a8   : > { %3437 = vst [vmem:[%s5618_s20 + $0x8] sm:$0xff] %v3373_v29 }
 0x2a9   : > { %v2811_v53 = vadd.f32 %v2623_v4, %v2486_v31  ;;  %3900 = vmatmul.msk.f32.gmra.mxu0 %vm946_vm0, %v4683_v38 }
 0x2aa   : > { %v2903_v46 = vpop.f32.mrf.mxu2  ;;  %4092 = vmatmul.msk.f32.gmra.mxu3 %vm946_vm0, %v6398_v45 }
 0x2ab   : > { %v3091_v23 = vadd.f32 %v2903_v46, %v2811_v53  ;;  %v6408_v46 = vld [vmem:[#allocation20_spill] sm:$0xff] }
 0x2ac   : > { %v2626_v41 = vpop.f32.mrf.mxu1 }
 0x2ad   : > { %v3186_v27 = vpop.f32.mrf.mxu3 }
 0x2ae   : > { %v3374_v62 = vadd.f32 %v3186_v27, %v3091_v23  ;;  %v2301_v7 = vpop.f32.mrf.mxu0 }
 0x2af   : > { %4029 = vmatmul.msk.f32.gmra.mxu2 %vm946_vm0, %v6399_v56  ;;  %3965 = vmatmul.msk.f32.gmra.mxu1 %vm946_vm0, %v6398_v45  ;;  %v2487_v51 = vadd.f32 %v2301_v7, %v6400_v14  ;;  %v6409_v45 = vld [vmem:[#allocation6_spill] sm:$0xff] }
 0x2b0   : > { %3438 = vst [vmem:[%s5618_s20 + $0x10] sm:$0xff] %v3374_v62  ;;  %v6410_v62 = vld [vmem:[#allocation22_spill] sm:$0xff] }
 0x2b1   : > { %v2812_v38 = vadd.f32 %v2626_v41, %v2487_v51  ;;  %3901 = vmatmul.msk.f32.gmra.mxu0 %vm946_vm0, %v4701_v20 }
 0x2b2   : > { %v2906_v47 = vpop.f32.mrf.mxu2  ;;  %4093 = vmatmul.msk.f32.gmra.mxu3 %vm946_vm0, %v6401_v22 }
 0x2b3   : > { %v3092_v12 = vadd.f32 %v2906_v47, %v2812_v38  ;;  %v6411_v47 = vld [vmem:[#allocation23_spill] sm:$0xff] }
 0x2b4   : > { %v2629_v36 = vpop.f32.mrf.mxu1 }
 0x2b5   : > { %v3189_v40 = vpop.f32.mrf.mxu3 }
 0x2b6   : > { %v3375_v8 = vadd.f32 %v3189_v40, %v3092_v12  ;;  %v2304_v42 = vpop.f32.mrf.mxu0 }
 0x2b7   : > { %4030 = vmatmul.msk.f32.gmra.mxu2 %vm946_vm0, %v6402_v3  ;;  %3966 = vmatmul.msk.f32.gmra.mxu1 %vm946_vm0, %v6401_v22  ;;  %v2488_v1 = vadd.f32 %v2304_v42, %v6403_v50  ;;  %v6412_v22 = vld [vmem:[#allocation7_spill] sm:$0xff] }
 0x2b8   : > { %3439 = vst [vmem:[%s5618_s20 + $0x18] sm:$0xff] %v3375_v8  ;;  %v6413_v8 = vld [vmem:[#allocation26_spill] sm:$0xff] }
 0x2b9   : > { %v2813_v20 = vadd.f32 %v2629_v36, %v2488_v1  ;;  %3902 = vmatmul.msk.f32.gmra.mxu0 %vm946_vm0, %v6399_v56 }
 0x2ba   : > { %v2909_v5 = vpop.f32.mrf.mxu2  ;;  %4094 = vmatmul.msk.f32.gmra.mxu3 %vm946_vm0, %v6404_v37 }
 0x2bb   : > { %v3093_v52 = vadd.f32 %v2909_v5, %v2813_v20  ;;  %v6414_v5 = vld [vmem:[#allocation27_spill] sm:$0xff] }
 0x2bc   : > { %v2632_v34 = vpop.f32.mrf.mxu1 }
 0x2bd   : > { %v3192_v24 = vpop.f32.mrf.mxu3 }
 0x2be   : > { %v3376_v15 = vadd.f32 %v3192_v24, %v3093_v52  ;;  %v2307_v0 = vpop.f32.mrf.mxu0  ;;  %v6416_v52 = vld [vmem:[#allocation8_spill] sm:$0xff] }
 0x2bf   : > { %4031 = vmatmul.msk.f32.gmra.mxu2 %vm946_vm0, %v6405_v39  ;;  %3967 = vmatmul.msk.f32.gmra.mxu1 %vm946_vm0, %v6404_v37  ;;  %v2489_v21 = vadd.f32 %v2307_v0, %v6406_v16  ;;  %v6415_v37 = vld [vmem:[#allocation29_spill] sm:$0xff] }
 0x2c0   : > { %3440 = vst [vmem:[%s5618_s20 + $0x20] sm:$0xff] %v3376_v15  ;;  %v6417_v15 = vld [vmem:[#allocation25_spill] sm:$0xff] }
 0x2c1   : > { %v2814_v17 = vadd.f32 %v2632_v34, %v2489_v21  ;;  %3903 = vmatmul.msk.f32.gmra.mxu0 %vm946_vm0, %v6402_v3 }
 0x2c2   : > { %v2912_v4 = vpop.f32.mrf.mxu2  ;;  %4095 = vmatmul.msk.f32.gmra.mxu3 %vm946_vm0, %v6407_v10 }
 0x2c3   : > { %v3094_v29 = vadd.f32 %v2912_v4, %v2814_v17 }
 0x2c4   : > { %v2635_v44 = vpop.f32.mrf.mxu1 }
 0x2c5   : > { %v3195_v18 = vpop.f32.mrf.mxu3 }
 0x2c6   : > { %v3377_v31 = vadd.f32 %v3195_v18, %v3094_v29  ;;  %v2310_v53 = vpop.f32.mrf.mxu0  ;;  %v6419_v29 = vld [vmem:[#allocation31_spill] sm:$0xff] }
 0x2c7   : > { %4032 = vmatmul.msk.f32.gmra.mxu2 %vm946_vm0, %v6408_v46  ;;  %3968 = vmatmul.msk.f32.gmra.mxu1 %vm946_vm0, %v6407_v10  ;;  %v2490_v23 = vadd.f32 %v2310_v53, %v6409_v45 }
 0x2c8   : > { %3441 = vst [vmem:[%s5618_s20 + $0x28] sm:$0xff] %v3377_v31 }
 0x2c9   : > { %v2815_v41 = vadd.f32 %v2635_v44, %v2490_v23  ;;  %3904 = vmatmul.msk.f32.gmra.mxu0 %vm946_vm0, %v6405_v39  ;;  %v6418_v39 = vld [vmem:[#allocation30_spill] sm:$0xff]  ;;  %v6420_v44 = vld [vmem:[#allocation9_spill] sm:$0xff] }
 0x2ca   : > { %v2915_v27 = vpop.f32.mrf.mxu2  ;;  %4096 = vmatmul.msk.f32.gmra.mxu3 %vm946_vm0, %v6410_v62 }
 0x2cb   : > { %v3095_v7 = vadd.f32 %v2915_v27, %v2815_v41 }
 0x2cc   : > { %v2638_v56 = vpop.f32.mrf.mxu1 }
 0x2cd   : > { %v3198_v14 = vpop.f32.mrf.mxu3 }
 0x2ce   : > { %v3378_v51 = vadd.f32 %v3198_v14, %v3095_v7  ;;  %v2313_v38 = vpop.f32.mrf.mxu0  ;;  %v6422_v7 = vld [vmem:[#allocation34_spill] sm:$0xff] }
 0x2cf   : > { %4033 = vmatmul.msk.f32.gmra.mxu2 %vm946_vm0, %v6411_v47  ;;  %3969 = vmatmul.msk.f32.gmra.mxu1 %vm946_vm0, %v6410_v62  ;;  %v2491_v12 = vadd.f32 %v2313_v38, %v6412_v22  ;;  %v6424_v47 = vld [vmem:[#allocation36_spill] sm:$0xff] }
 0x2d0   : > { %3442 = vst [vmem:[%s5618_s20 + $0x30] sm:$0xff] %v3378_v51 }
 0x2d1   : > { %v2816_v36 = vadd.f32 %v2638_v56, %v2491_v12  ;;  %3905 = vmatmul.msk.f32.gmra.mxu0 %vm946_vm0, %v6408_v46  ;;  %v6421_v46 = vld [vmem:[#allocation33_spill] sm:$0xff]  ;;  %v6423_v56 = vld [vmem:[#allocation12_spill] sm:$0xff] }
 0x2d2   : > { %v2918_v40 = vpop.f32.mrf.mxu2  ;;  %4097 = vmatmul.msk.f32.gmra.mxu3 %vm946_vm0, %v6413_v8 }
 0x2d3   : > { %v3096_v42 = vadd.f32 %v2918_v40, %v2816_v36 }
 0x2d4   : > { %v2641_v3 = vpop.f32.mrf.mxu1 }
 0x2d5   : > { %v3201_v50 = vpop.f32.mrf.mxu3 }
 0x2d6   : > { %v3379_v1 = vadd.f32 %v3201_v50, %v3096_v42  ;;  %v2316_v20 = vpop.f32.mrf.mxu0  ;;  %v6425_v42 = vld [vmem:[#allocation37_spill] sm:$0xff] }
 0x2d7   : > { %4034 = vmatmul.msk.f32.gmra.mxu2 %vm946_vm0, %v6414_v5  ;;  %3970 = vmatmul.msk.f32.gmra.mxu1 %vm946_vm0, %v6415_v37  ;;  %v2492_v34 = vadd.f32 %v2316_v20, %v6416_v52 }
 0x2d8   : > { %3443 = vst [vmem:[%s5618_s20 + $0x38] sm:$0xff] %v3379_v1 }
 0x2d9   : > { %v2817_v24 = vadd.f32 %v2641_v3, %v2492_v34  ;;  %3906 = vmatmul.msk.f32.gmra.mxu0 %vm946_vm0, %v6417_v15  ;;  %v6426_v3 = vld [vmem:[#allocation15_spill] sm:$0xff] }
 0x2da   : > { %v2921_v0 = vpop.f32.mrf.mxu2  ;;  %4098 = vmatmul.msk.f32.gmra.mxu3 %vm946_vm0, %v6418_v39 }
 0x2db   : > { %v3097_v16 = vadd.f32 %v2921_v0, %v2817_v24  ;;  %v6428_v0 = vld [vmem:[#allocation40_spill] sm:$0xff] }
 0x2dc   : > { %v2644_v21 = vpop.f32.mrf.mxu1 }
 0x2dd   : > { %v3204_v17 = vpop.f32.mrf.mxu3 }
 0x2de   : > { %v3380_v4 = vadd.f32 %v3204_v17, %v3097_v16  ;;  %v2319_v10 = vpop.f32.mrf.mxu0 }
 0x2df   : > { %4035 = vmatmul.msk.f32.gmra.mxu2 %vm946_vm0, %v6419_v29  ;;  %3971 = vmatmul.msk.f32.gmra.mxu1 %vm946_vm0, %v6418_v39  ;;  %v2493_v18 = vadd.f32 %v2319_v10, %v6420_v44  ;;  %v6429_v39 = vld [vmem:[#allocation18_spill] sm:$0xff] }
 0x2e0   : > { %3444 = vst [vmem:[%s5618_s20 + $0x40] sm:$0xff] %v3380_v4  ;;  %v6430_v4 = vld [vmem:[#allocation42_spill] sm:$0xff] }
 0x2e1   : > { %v2818_v31 = vadd.f32 %v2644_v21, %v2493_v18  ;;  %3907 = vmatmul.msk.f32.gmra.mxu0 %vm946_vm0, %v6414_v5  ;;  %v6427_v5 = vld [vmem:[#allocation39_spill] sm:$0xff] }
 0x2e2   : > { %v2924_v53 = vpop.f32.mrf.mxu2  ;;  %4099 = vmatmul.msk.f32.gmra.mxu3 %vm946_vm0, %v6421_v46 }
 0x2e3   : > { %v3098_v45 = vadd.f32 %v2924_v53, %v2818_v31  ;;  %v6431_v53 = vld [vmem:[#allocation43_spill] sm:$0xff] }
 0x2e4   : > { %v2647_v23 = vpop.f32.mrf.mxu1 }
 0x2e5   : > { %v3207_v41 = vpop.f32.mrf.mxu3 }
 0x2e6   : > { %v3381_v27 = vadd.f32 %v3207_v41, %v3098_v45  ;;  %v2322_v62 = vpop.f32.mrf.mxu0 }
 0x2e7   : > { %4036 = vmatmul.msk.f32.gmra.mxu2 %vm946_vm0, %v6422_v7  ;;  %3972 = vmatmul.msk.f32.gmra.mxu1 %vm946_vm0, %v6421_v46  ;;  %v2494_v14 = vadd.f32 %v2322_v62, %v6423_v56  ;;  %v6432_v46 = vld [vmem:[#allocation21_spill] sm:$0xff] }
 0x2e8   : > { %3445 = vst [vmem:[%s5618_s20 + $0x48] sm:$0xff] %v3381_v27  ;;  %v6433_v27 = vld [vmem:[#allocation45_spill] sm:$0xff] }
 0x2e9   : > { %v2819_v51 = vadd.f32 %v2647_v23, %v2494_v14  ;;  %3908 = vmatmul.msk.f32.gmra.mxu0 %vm946_vm0, %v6419_v29 }
 0x2ea   : > { %v2927_v38 = vpop.f32.mrf.mxu2  ;;  %4100 = vmatmul.msk.f32.gmra.mxu3 %vm946_vm0, %v6424_v47 }
 0x2eb   : > { %v3099_v22 = vadd.f32 %v2927_v38, %v2819_v51  ;;  %v6434_v38 = vld [vmem:[#allocation46_spill] sm:$0xff] }
 0x2ec   : > { %v2650_v12 = vpop.f32.mrf.mxu1 }
 0x2ed   : > { %v3210_v36 = vpop.f32.mrf.mxu3 }
 0x2ee   : > { %v3382_v40 = vadd.f32 %v3210_v36, %v3099_v22  ;;  %v2325_v8 = vpop.f32.mrf.mxu0 }
 0x2ef   : > { %4037 = vmatmul.msk.f32.gmra.mxu2 %vm946_vm0, %v6425_v42  ;;  %3973 = vmatmul.msk.f32.gmra.mxu1 %vm946_vm0, %v6424_v47  ;;  %v2495_v50 = vadd.f32 %v2325_v8, %v6426_v3  ;;  %v6435_v47 = vld [vmem:[#allocation24_spill] sm:$0xff] }
 0x2f0   : > { %3446 = vst [vmem:[%s5618_s20 + $0x50] sm:$0xff] %v3382_v40  ;;  %v6436_v40 = vld [vmem:[#allocation48_spill] sm:$0xff] }
 0x2f1   : > { %v2820_v1 = vadd.f32 %v2650_v12, %v2495_v50  ;;  %3909 = vmatmul.msk.f32.gmra.mxu0 %vm946_vm0, %v6422_v7 }
 0x2f2   : > { %v2930_v20 = vpop.f32.mrf.mxu2  ;;  %4101 = vmatmul.msk.f32.gmra.mxu3 %vm946_vm0, %v6427_v5 }
 0x2f3   : > { %v3100_v37 = vadd.f32 %v2930_v20, %v2820_v1  ;;  %v6437_v20 = vld [vmem:[#allocation49_spill] sm:$0xff] }
 0x2f4   : > { %v2653_v52 = vpop.f32.mrf.mxu1 }
 0x2f5   : > { %v3213_v34 = vpop.f32.mrf.mxu3 }
 0x2f6   : > { %v3383_v24 = vadd.f32 %v3213_v34, %v3100_v37  ;;  %v2328_v15 = vpop.f32.mrf.mxu0 }
 0x2f7   : > { %4038 = vmatmul.msk.f32.gmra.mxu2 %vm946_vm0, %v6428_v0  ;;  %3974 = vmatmul.msk.f32.gmra.mxu1 %vm946_vm0, %v6427_v5  ;;  %v2496_v16 = vadd.f32 %v2328_v15, %v6429_v39  ;;  %v6438_v5 = vld [vmem:[#allocation28_spill] sm:$0xff] }
 0x2f8   : > { %3447 = vst [vmem:[%s5618_s20 + $0x58] sm:$0xff] %v3383_v24  ;;  %v6439_v24 = vld [vmem:[#allocation52_spill] sm:$0xff] }
 0x2f9   : > { %v2821_v21 = vadd.f32 %v2653_v52, %v2496_v16  ;;  %3910 = vmatmul.msk.f32.gmra.mxu0 %vm946_vm0, %v6425_v42 }
 0x2fa   : > { %v2933_v17 = vpop.f32.mrf.mxu2  ;;  %4102 = vmatmul.msk.f32.gmra.mxu3 %vm946_vm0, %v6430_v4 }
 0x2fb   : > { %v3101_v10 = vadd.f32 %v2933_v17, %v2821_v21  ;;  %v6440_v17 = vld [vmem:[#allocation53_spill] sm:$0xff] }
 0x2fc   : > { %v2656_v29 = vpop.f32.mrf.mxu1 }
 0x2fd   : > { %v3216_v44 = vpop.f32.mrf.mxu3 }
 0x2fe   : > { %v3384_v18 = vadd.f32 %v3216_v44, %v3101_v10  ;;  %v2331_v31 = vpop.f32.mrf.mxu0  ;;  %v6442_v10 = vld [vmem:[#allocation32_spill] sm:$0xff] }
 0x2ff   : > { %4039 = vmatmul.msk.f32.gmra.mxu2 %vm946_vm0, %v6431_v53  ;;  %3975 = vmatmul.msk.f32.gmra.mxu1 %vm946_vm0, %v6430_v4  ;;  %v2497_v45 = vadd.f32 %v2331_v31, %v6432_v46  ;;  %v6441_v4 = vld [vmem:[#allocation55_spill] sm:$0xff] }
 0x300   : > { %3448 = vst [vmem:[%s5618_s20 + $0x60] sm:$0xff] %v3384_v18  ;;  %v6443_v18 = vld [vmem:[#allocation51_spill] sm:$0xff] }
 0x301   : > { %v2822_v23 = vadd.f32 %v2656_v29, %v2497_v45  ;;  %3911 = vmatmul.msk.f32.gmra.mxu0 %vm946_vm0, %v6428_v0 }
 0x302   : > { %v2936_v41 = vpop.f32.mrf.mxu2  ;;  %4103 = vmatmul.msk.f32.gmra.mxu3 %vm946_vm0, %v6433_v27 }
 0x303   : > { %v3102_v62 = vadd.f32 %v2936_v41, %v2822_v23 }
 0x304   : > { %v2659_v7 = vpop.f32.mrf.mxu1 }
 0x305   : > { %v3219_v56 = vpop.f32.mrf.mxu3 }
 0x306   : > { %v3385_v14 = vadd.f32 %v3219_v56, %v3102_v62  ;;  %v2334_v51 = vpop.f32.mrf.mxu0  ;;  %v6445_v62 = vld [vmem:[#allocation57_spill] sm:$0xff] }
 0x307   : > { %4040 = vmatmul.msk.f32.gmra.mxu2 %vm946_vm0, %v6434_v38  ;;  %3976 = vmatmul.msk.f32.gmra.mxu1 %vm946_vm0, %v6433_v27  ;;  %v2498_v22 = vadd.f32 %v2334_v51, %v6435_v47 }
 0x308   : > { %3449 = vst [vmem:[%s5618_s20 + $0x68] sm:$0xff] %v3385_v14 }
 0x309   : > { %v2823_v12 = vadd.f32 %v2659_v7, %v2498_v22  ;;  %3912 = vmatmul.msk.f32.gmra.mxu0 %vm946_vm0, %v6431_v53  ;;  %v6444_v53 = vld [vmem:[#allocation56_spill] sm:$0xff]  ;;  %v6446_v7 = vld [vmem:[#allocation35_spill] sm:$0xff] }
 0x30a   : > { %v2939_v36 = vpop.f32.mrf.mxu2  ;;  %4104 = vmatmul.msk.f32.gmra.mxu3 %vm946_vm0, %v6436_v40 }
 0x30b   : > { %v3103_v8 = vadd.f32 %v2939_v36, %v2823_v12 }
 0x30c   : > { %v2662_v42 = vpop.f32.mrf.mxu1 }
 0x30d   : > { %v3222_v3 = vpop.f32.mrf.mxu3 }
 0x30e   : > { %v3386_v50 = vadd.f32 %v3222_v3, %v3103_v8  ;;  %v2337_v1 = vpop.f32.mrf.mxu0  ;;  %v6448_v8 = vld [vmem:[#allocation60_spill] sm:$0xff] }
 0x30f   : > { %4041 = vmatmul.msk.f32.gmra.mxu2 %vm946_vm0, %v6437_v20  ;;  %3977 = vmatmul.msk.f32.gmra.mxu1 %vm946_vm0, %v6436_v40  ;;  %v2499_v37 = vadd.f32 %v2337_v1, %v6438_v5  ;;  %v6450_v20 = vld [vmem:[#allocation62_spill] sm:$0xff] }
 0x310   : > { %3450 = vst [vmem:[%s5618_s20 + $0x70] sm:$0xff] %v3386_v50 }
 0x311   : > { %v2824_v52 = vadd.f32 %v2662_v42, %v2499_v37  ;;  %3913 = vmatmul.msk.f32.gmra.mxu0 %vm946_vm0, %v6434_v38  ;;  %v6447_v38 = vld [vmem:[#allocation59_spill] sm:$0xff]  ;;  %v6449_v42 = vld [vmem:[#allocation38_spill] sm:$0xff] }
 0x312   : > { %v2942_v34 = vpop.f32.mrf.mxu2  ;;  %4105 = vmatmul.msk.f32.gmra.mxu3 %vm946_vm0, %v6439_v24 }
 0x313   : > { %v3104_v15 = vadd.f32 %v2942_v34, %v2824_v52 }
 0x314   : > { %v2665_v0 = vpop.f32.mrf.mxu1 }
 0x315   : > { %v3225_v39 = vpop.f32.mrf.mxu3 }
 0x316   : > { %v3387_v16 = vadd.f32 %v3225_v39, %v3104_v15  ;;  %v2340_v21 = vpop.f32.mrf.mxu0  ;;  %v6451_v15 = vld [vmem:[#allocation63_spill] sm:$0xff] }
 0x317   : > { %4042 = vmatmul.msk.f32.gmra.mxu2 %vm946_vm0, %v6440_v17  ;;  %3978 = vmatmul.msk.f32.gmra.mxu1 %vm946_vm0, %v6441_v4  ;;  %v2500_v29 = vadd.f32 %v2340_v21, %v6442_v10 }
 0x318   : > { %3451 = vst [vmem:[%s5618_s20 + $0x78] sm:$0xff] %v3387_v16 }
 0x319   : > { %v2825_v44 = vadd.f32 %v2665_v0, %v2500_v29  ;;  %3914 = vmatmul.msk.f32.gmra.mxu0 %vm946_vm0, %v6443_v18  ;;  %v6452_v0 = vld [vmem:[#allocation41_spill] sm:$0xff] }
 0x31a   : > { %v2945_v31 = vpop.f32.mrf.mxu2  ;;  %4106 = vmatmul.msk.f32.gmra.mxu3 %vm946_vm0, %v6444_v53 }
 0x31b   : > { %v3105_v46 = vadd.f32 %v2945_v31, %v2825_v44  ;;  %v6454_v31 = vld [vmem:[#allocation66_spill] sm:$0xff] }
 0x31c   : > { %v2668_v45 = vpop.f32.mrf.mxu1 }
 0x31d   : > { %v3228_v23 = vpop.f32.mrf.mxu3 }
 0x31e   : > { %v3388_v41 = vadd.f32 %v3228_v23, %v3105_v46  ;;  %v2343_v27 = vpop.f32.mrf.mxu0 }
 0x31f   : > { %4043 = vmatmul.msk.f32.gmra.mxu2 %vm946_vm0, %v6445_v62  ;;  %3979 = vmatmul.msk.f32.gmra.mxu1 %vm946_vm0, %v6444_v53  ;;  %v2501_v56 = vadd.f32 %v2343_v27, %v6446_v7  ;;  %v6455_v53 = vld [vmem:[#allocation44_spill] sm:$0xff] }
 0x320   : > { %3452 = vst [vmem:[%s5618_s20 + $0x80] sm:$0xff] %v3388_v41  ;;  %v6456_v41 = vld [vmem:[#allocation68_spill] sm:$0xff] }
 0x321   : > { %v2826_v14 = vadd.f32 %v2668_v45, %v2501_v56  ;;  %3915 = vmatmul.msk.f32.gmra.mxu0 %vm946_vm0, %v6440_v17  ;;  %v6453_v17 = vld [vmem:[#allocation65_spill] sm:$0xff] }
 0x322   : > { %v2948_v51 = vpop.f32.mrf.mxu2  ;;  %4107 = vmatmul.msk.f32.gmra.mxu3 %vm946_vm0, %v6447_v38 }
 0x323   : > { %v3106_v47 = vadd.f32 %v2948_v51, %v2826_v14  ;;  %v6457_v51 = vld [vmem:[#allocation69_spill] sm:$0xff] }
 0x324   : > { %v2671_v22 = vpop.f32.mrf.mxu1 }
 0x325   : > { %v3231_v12 = vpop.f32.mrf.mxu3 }
 0x326   : > { %v3389_v36 = vadd.f32 %v3231_v12, %v3106_v47  ;;  %v2346_v40 = vpop.f32.mrf.mxu0 }
 0x327   : > { %4044 = vmatmul.msk.f32.gmra.mxu2 %vm946_vm0, %v6448_v8  ;;  %3980 = vmatmul.msk.f32.gmra.mxu1 %vm946_vm0, %v6447_v38  ;;  %v2502_v3 = vadd.f32 %v2346_v40, %v6449_v42  ;;  %v6458_v38 = vld [vmem:[#allocation47_spill] sm:$0xff] }
 0x328   : > { %3453 = vst [vmem:[%s5618_s20 + $0x88] sm:$0xff] %v3389_v36  ;;  %v6459_v36 = vld [vmem:[#allocation71_spill] sm:$0xff] }
 0x329   : > { %v2827_v50 = vadd.f32 %v2671_v22, %v2502_v3  ;;  %3916 = vmatmul.msk.f32.gmra.mxu0 %vm946_vm0, %v6445_v62 }
 0x32a   : > { %v2951_v1 = vpop.f32.mrf.mxu2  ;;  %4108 = vmatmul.msk.f32.gmra.mxu3 %vm946_vm0, %v6450_v20 }
 0x32b   : > { %v3107_v5 = vadd.f32 %v2951_v1, %v2827_v50  ;;  %v6460_v1 = vld [vmem:[#allocation72_spill] sm:$0xff] }
 0x32c   : > { %v2674_v37 = vpop.f32.mrf.mxu1 }
 0x32d   : > { %v3234_v52 = vpop.f32.mrf.mxu3 }
 0x32e   : > { %v3390_v34 = vadd.f32 %v3234_v52, %v3107_v5  ;;  %v2349_v24 = vpop.f32.mrf.mxu0 }
 0x32f   : > { %4045 = vmatmul.msk.f32.gmra.mxu2 %vm946_vm0, %v6451_v15  ;;  %3981 = vmatmul.msk.f32.gmra.mxu1 %vm946_vm0, %v6450_v20  ;;  %v2503_v39 = vadd.f32 %v2349_v24, %v6452_v0  ;;  %v6461_v20 = vld [vmem:[#allocation50_spill] sm:$0xff] }
 0x330   : > { %3454 = vst [vmem:[%s5618_s20 + $0x90] sm:$0xff] %v3390_v34  ;;  %v6462_v34 = vld [vmem:[#allocation74_spill] sm:$0xff] }
 0x331   : > { %v2828_v16 = vadd.f32 %v2674_v37, %v2503_v39  ;;  %3917 = vmatmul.msk.f32.gmra.mxu0 %vm946_vm0, %v6448_v8 }
 0x332   : > { %v2954_v21 = vpop.f32.mrf.mxu2  ;;  %4109 = vmatmul.msk.f32.gmra.mxu3 %vm946_vm0, %v6453_v17 }
 0x333   : > { %v3108_v4 = vadd.f32 %v2954_v21, %v2828_v16  ;;  %v6463_v21 = vld [vmem:[#allocation75_spill] sm:$0xff] }
 0x334   : > { %v2677_v10 = vpop.f32.mrf.mxu1 }
 0x335   : > { %v3237_v29 = vpop.f32.mrf.mxu3 }
 0x336   : > { %v3391_v44 = vadd.f32 %v3237_v29, %v3108_v4  ;;  %v2352_v18 = vpop.f32.mrf.mxu0 }
 0x337   : > { %4046 = vmatmul.msk.f32.gmra.mxu2 %vm946_vm0, %v6454_v31  ;;  %3982 = vmatmul.msk.f32.gmra.mxu1 %vm946_vm0, %v6453_v17  ;;  %v2504_v46 = vadd.f32 %v2352_v18, %v6455_v53  ;;  %v6464_v17 = vld [vmem:[#allocation54_spill] sm:$0xff] }
 0x338   : > { %3455 = vst [vmem:[%s5618_s20 + $0x98] sm:$0xff] %v3391_v44  ;;  %v6465_v44 = vld [vmem:[#allocation78_spill] sm:$0xff] }
 0x339   : > { %v2829_v45 = vadd.f32 %v2677_v10, %v2504_v46  ;;  %3918 = vmatmul.msk.f32.gmra.mxu0 %vm946_vm0, %v6451_v15 }
 0x33a   : > { %v2957_v23 = vpop.f32.mrf.mxu2  ;;  %4110 = vmatmul.msk.f32.gmra.mxu3 %vm946_vm0, %v6456_v41 }
 0x33b   : > { %v3109_v27 = vadd.f32 %v2957_v23, %v2829_v45  ;;  %v6466_v23 = vld [vmem:[#allocation79_spill] sm:$0xff] }
 0x33c   : > { %v2680_v62 = vpop.f32.mrf.mxu1 }
 0x33d   : > { %v3240_v7 = vpop.f32.mrf.mxu3 }
 0x33e   : > { %v3392_v56 = vadd.f32 %v3240_v7, %v3109_v27  ;;  %v2355_v14 = vpop.f32.mrf.mxu0  ;;  %v6468_v27 = vld [vmem:[#allocation58_spill] sm:$0xff] }
 0x33f   : > { %4047 = vmatmul.msk.f32.gmra.mxu2 %vm946_vm0, %v6457_v51  ;;  %3983 = vmatmul.msk.f32.gmra.mxu1 %vm946_vm0, %v6456_v41  ;;  %v2505_v47 = vadd.f32 %v2355_v14, %v6458_v38  ;;  %v6467_v41 = vld [vmem:[#allocation81_spill] sm:$0xff] }
 0x340   : > { %3456 = vst [vmem:[%s5618_s20 + $0xa0] sm:$0xff] %v3392_v56  ;;  %v6469_v56 = vld [vmem:[#allocation77_spill] sm:$0xff] }
 0x341   : > { %v2830_v22 = vadd.f32 %v2680_v62, %v2505_v47  ;;  %3919 = vmatmul.msk.f32.gmra.mxu0 %vm946_vm0, %v6454_v31 }
 0x342   : > { %v2960_v12 = vpop.f32.mrf.mxu2  ;;  %4111 = vmatmul.msk.f32.gmra.mxu3 %vm946_vm0, %v6459_v36 }
 0x343   : > { %v3110_v40 = vadd.f32 %v2960_v12, %v2830_v22 }
 0x344   : > { %v2683_v8 = vpop.f32.mrf.mxu1 }
 0x345   : > { %v3243_v42 = vpop.f32.mrf.mxu3 }
 0x346   : > { %v3393_v3 = vadd.f32 %v3243_v42, %v3110_v40  ;;  %v2358_v50 = vpop.f32.mrf.mxu0  ;;  %v6471_v40 = vld [vmem:[#allocation83_spill] sm:$0xff] }
 0x347   : > { %4048 = vmatmul.msk.f32.gmra.mxu2 %vm946_vm0, %v6460_v1  ;;  %3984 = vmatmul.msk.f32.gmra.mxu1 %vm946_vm0, %v6459_v36  ;;  %v2506_v5 = vadd.f32 %v2358_v50, %v6461_v20 }
 0x348   : > { %3457 = vst [vmem:[%s5618_s20 + $0xa8] sm:$0xff] %v3393_v3 }
 0x349   : > { %v2831_v37 = vadd.f32 %v2683_v8, %v2506_v5  ;;  %3920 = vmatmul.msk.f32.gmra.mxu0 %vm946_vm0, %v6457_v51  ;;  %v6470_v51 = vld [vmem:[#allocation82_spill] sm:$0xff]  ;;  %v6472_v8 = vld [vmem:[#allocation61_spill] sm:$0xff] }
 0x34a   : > { %v2963_v52 = vpop.f32.mrf.mxu2  ;;  %4112 = vmatmul.msk.f32.gmra.mxu3 %vm946_vm0, %v6462_v34 }
 0x34b   : > { %v3111_v24 = vadd.f32 %v2963_v52, %v2831_v37 }
 0x34c   : > { %v2686_v15 = vpop.f32.mrf.mxu1 }
 0x34d   : > { %v3246_v0 = vpop.f32.mrf.mxu3 }
 0x34e   : > { %v3394_v39 = vadd.f32 %v3246_v0, %v3111_v24  ;;  %v2361_v16 = vpop.f32.mrf.mxu0  ;;  %v6474_v24 = vld [vmem:[#allocation86_spill] sm:$0xff] }
 0x34f   : > { %4049 = vmatmul.msk.f32.gmra.mxu2 %vm946_vm0, %v6463_v21  ;;  %3985 = vmatmul.msk.f32.gmra.mxu1 %vm946_vm0, %v6462_v34  ;;  %v2507_v4 = vadd.f32 %v2361_v16, %v6464_v17  ;;  %v6476_v21 = vld [vmem:[#allocation88_spill] sm:$0xff] }
 0x350   : > { %3458 = vst [vmem:[%s5618_s20 + $0xb0] sm:$0xff] %v3394_v39 }
 0x351   : > { %v2832_v10 = vadd.f32 %v2686_v15, %v2507_v4  ;;  %3921 = vmatmul.msk.f32.gmra.mxu0 %vm946_vm0, %v6460_v1  ;;  %v6473_v1 = vld [vmem:[#allocation85_spill] sm:$0xff]  ;;  %v6475_v15 = vld [vmem:[#allocation64_spill] sm:$0xff] }
 0x352   : > { %v2966_v29 = vpop.f32.mrf.mxu2  ;;  %4113 = vmatmul.msk.f32.gmra.mxu3 %vm946_vm0, %v6465_v44 }
 0x353   : > { %v3112_v18 = vadd.f32 %v2966_v29, %v2832_v10 }
 0x354   : > { %v2689_v31 = vpop.f32.mrf.mxu1 }
 0x355   : > { %v3249_v53 = vpop.f32.mrf.mxu3 }
 0x356   : > { %v3395_v46 = vadd.f32 %v3249_v53, %v3112_v18  ;;  %v2364_v45 = vpop.f32.mrf.mxu0  ;;  %v6477_v18 = vld [vmem:[#allocation89_spill] sm:$0xff] }
 0x357   : > { %4050 = vmatmul.msk.f32.gmra.mxu2 %vm946_vm0, %v6466_v23  ;;  %3986 = vmatmul.msk.f32.gmra.mxu1 %vm946_vm0, %v6467_v41  ;;  %v2508_v62 = vadd.f32 %v2364_v45, %v6468_v27 }
 0x358   : > { %3459 = vst [vmem:[%s5618_s20 + $0xb8] sm:$0xff] %v3395_v46 }
 0x359   : > { %v2833_v7 = vadd.f32 %v2689_v31, %v2508_v62  ;;  %3922 = vmatmul.msk.f32.gmra.mxu0 %vm946_vm0, %v6469_v56  ;;  %v6478_v31 = vld [vmem:[#allocation67_spill] sm:$0xff] }
 0x35a   : > { %v2969_v14 = vpop.f32.mrf.mxu2  ;;  %4114 = vmatmul.msk.f32.gmra.mxu3 %vm946_vm0, %v6470_v51 }
 0x35b   : > { %v3113_v38 = vadd.f32 %v2969_v14, %v2833_v7  ;;  %v6480_v14 = vld [vmem:[#allocation92_spill] sm:$0xff] }
 0x35c   : > { %v2692_v47 = vpop.f32.mrf.mxu1 }
 0x35d   : > { %v3252_v22 = vpop.f32.mrf.mxu3 }
 0x35e   : > { %v3396_v12 = vadd.f32 %v3252_v22, %v3113_v38  ;;  %v2367_v36 = vpop.f32.mrf.mxu0 }
 0x35f   : > { %4051 = vmatmul.msk.f32.gmra.mxu2 %vm946_vm0, %v6471_v40  ;;  %3987 = vmatmul.msk.f32.gmra.mxu1 %vm946_vm0, %v6470_v51  ;;  %v2509_v42 = vadd.f32 %v2367_v36, %v6472_v8  ;;  %v6481_v51 = vld [vmem:[#allocation70_spill] sm:$0xff] }
 0x360   : > { %3460 = vst [vmem:[%s5618_s20 + $0xc0] sm:$0xff] %v3396_v12  ;;  %v6482_v12 = vld [vmem:[#allocation94_spill] sm:$0xff] }
 0x361   : > { %v2834_v3 = vadd.f32 %v2692_v47, %v2509_v42  ;;  %3923 = vmatmul.msk.f32.gmra.mxu0 %vm946_vm0, %v6466_v23  ;;  %v6479_v23 = vld [vmem:[#allocation91_spill] sm:$0xff] }
 0x362   : > { %v2972_v50 = vpop.f32.mrf.mxu2  ;;  %4115 = vmatmul.msk.f32.gmra.mxu3 %vm946_vm0, %v6473_v1 }
 0x363   : > { %v3114_v20 = vadd.f32 %v2972_v50, %v2834_v3  ;;  %v6483_v50 = vld [vmem:[#allocation95_spill] sm:$0xff] }
 0x364   : > { %v2695_v5 = vpop.f32.mrf.mxu1 }
 0x365   : > { %v3255_v37 = vpop.f32.mrf.mxu3 }
 0x366   : > { %v3397_v52 = vadd.f32 %v3255_v37, %v3114_v20  ;;  %v2370_v34 = vpop.f32.mrf.mxu0 }
 0x367   : > { %4052 = vmatmul.msk.f32.gmra.mxu2 %vm946_vm0, %v6474_v24  ;;  %3988 = vmatmul.msk.f32.gmra.mxu1 %vm946_vm0, %v6473_v1  ;;  %v2510_v0 = vadd.f32 %v2370_v34, %v6475_v15  ;;  %v6484_v1 = vld [vmem:[#allocation73_spill] sm:$0xff] }
 0x368   : > { %3461 = vst [vmem:[%s5618_s20 + $0xc8] sm:$0xff] %v3397_v52  ;;  %v6485_v52 = vld [vmem:[#allocation97_spill] sm:$0xff] }
 0x369   : > { %v2835_v39 = vadd.f32 %v2695_v5, %v2510_v0  ;;  %3924 = vmatmul.msk.f32.gmra.mxu0 %vm946_vm0, %v6471_v40 }
 0x36a   : > { %v2975_v16 = vpop.f32.mrf.mxu2  ;;  %4116 = vmatmul.msk.f32.gmra.mxu3 %vm946_vm0, %v6476_v21 }
 0x36b   : > { %v3115_v17 = vadd.f32 %v2975_v16, %v2835_v39  ;;  %v6486_v16 = vld [vmem:[#allocation98_spill] sm:$0xff] }
 0x36c   : > { %v2698_v4 = vpop.f32.mrf.mxu1 }
 0x36d   : > { %v3258_v10 = vpop.f32.mrf.mxu3 }
 0x36e   : > { %v3398_v29 = vadd.f32 %v3258_v10, %v3115_v17  ;;  %v2373_v44 = vpop.f32.mrf.mxu0 }
 0x36f   : > { %4053 = vmatmul.msk.f32.gmra.mxu2 %vm946_vm0, %v6477_v18  ;;  %3989 = vmatmul.msk.f32.gmra.mxu1 %vm946_vm0, %v6476_v21  ;;  %v2511_v53 = vadd.f32 %v2373_v44, %v6478_v31  ;;  %v6487_v21 = vld [vmem:[#allocation76_spill] sm:$0xff] }
 0x370   : > { %3462 = vst [vmem:[%s5618_s20 + $0xd0] sm:$0xff] %v3398_v29 }
 0x371   : > { %v2836_v46 = vadd.f32 %v2698_v4, %v2511_v53  ;;  %3925 = vmatmul.msk.f32.gmra.mxu0 %vm946_vm0, %v6474_v24 }
 0x372   : > { %v2978_v45 = vpop.f32.mrf.mxu2  ;;  %4117 = vmatmul.msk.f32.gmra.mxu3 %vm946_vm0, %v6479_v23 }
 0x373   : > { %v3116_v41 = vadd.f32 %v2978_v45, %v2836_v46  ;;  %v6488_v46 = vld [vmem:[#allocation100_spill] sm:$0xff] }
 0x374   : > { %v2701_v27 = vpop.f32.mrf.mxu1  ;;  %v6489_v45 = vld [vmem:[#allocation80_spill] sm:$0xff] }
 0x375   : > { %v3261_v62 = vpop.f32.mrf.mxu3 }
 0x376   : > { %v3399_v7 = vadd.f32 %v3261_v62, %v3116_v41  ;;  %v2376_v56 = vpop.f32.mrf.mxu0  ;;  %v6490_v62 = vld [vmem:[#allocation103_spill] sm:$0xff] }
 0x377   : > { %4054 = vmatmul.msk.f32.gmra.mxu2 %vm946_vm0, %v6480_v14  ;;  %3990 = vmatmul.msk.f32.gmra.mxu1 %vm946_vm0, %v6479_v23  ;;  %v2512_v38 = vadd.f32 %v2376_v56, %v6481_v51 }
 0x378   : > { %3463 = vst [vmem:[%s5618_s20 + $0xd8] sm:$0xff] %v3399_v7 }
 0x379   : > { %v2837_v47 = vadd.f32 %v2701_v27, %v2512_v38  ;;  %3926 = vmatmul.msk.f32.gmra.mxu0 %vm946_vm0, %v6477_v18 }
 0x37a   : > { %v2981_v22 = vpop.f32.mrf.mxu2  ;;  %4118 = vmatmul.msk.f32.gmra.mxu3 %vm946_vm0, %v6482_v12 }
 0x37b   : > { %v3117_v36 = vadd.f32 %v2981_v22, %v2837_v47  ;;  %v6491_v47 = vld [vmem:[#allocation104_spill] sm:$0xff] }
 0x37c   : > { %v2704_v40 = vpop.f32.mrf.mxu1  ;;  %v6493_v22 = vld [vmem:[#allocation84_spill] sm:$0xff] }
 0x37d   : > { %v3264_v8 = vpop.f32.mrf.mxu3 }
 0x37e   : > { %v3400_v42 = vadd.f32 %v3264_v8, %v3117_v36  ;;  %v2379_v3 = vpop.f32.mrf.mxu0 }
 0x37f   : > { %4055 = vmatmul.msk.f32.gmra.mxu2 %vm946_vm0, %v6483_v50  ;;  %3991 = vmatmul.msk.f32.gmra.mxu1 %vm946_vm0, %v6482_v12  ;;  %v2513_v20 = vadd.f32 %v2379_v3, %v6484_v1 }
 0x380   : > { %3464 = vst [vmem:[%s5618_s20 + $0xe0] sm:$0xff] %v3400_v42  ;;  %v6495_v42 = vld [vmem:[#allocation107_spill] sm:$0xff] }
 0x381   : > { %v2838_v5 = vadd.f32 %v2704_v40, %v2513_v20  ;;  %3927 = vmatmul.msk.f32.gmra.mxu0 %vm946_vm0, %v6480_v14  ;;  %v6494_v40 = vld [vmem:[#allocation102_spill] sm:$0xff] }
 0x382   : > { %v2984_v37 = vpop.f32.mrf.mxu2  ;;  %4119 = vmatmul.msk.f32.gmra.mxu3 %vm946_vm0, %v6485_v52 }
 0x383   : > { %v3118_v34 = vadd.f32 %v2984_v37, %v2838_v5  ;;  %v6496_v37 = vld [vmem:[#allocation108_spill] sm:$0xff] }
 0x384   : > { %v2707_v24 = vpop.f32.mrf.mxu1 }
 0x385   : > { %v3267_v15 = vpop.f32.mrf.mxu3 }
 0x386   : > { %v3401_v0 = vadd.f32 %v3267_v15, %v3118_v34  ;;  %v2382_v39 = vpop.f32.mrf.mxu0 }
 0x387   : > { %4056 = vmatmul.msk.f32.gmra.mxu2 %vm946_vm0, %v6486_v16  ;;  %3992 = vmatmul.msk.f32.gmra.mxu1 %vm946_vm0, %v6485_v52  ;;  %v2514_v17 = vadd.f32 %v2382_v39, %v6487_v21  ;;  %v6497_v52 = vld [vmem:[#allocation87_spill] sm:$0xff] }
 0x388   : > { %3465 = vst [vmem:[%s5618_s20 + $0xe8] sm:$0xff] %v3401_v0  ;;  %v6498_v0 = vld [vmem:[#allocation110_spill] sm:$0xff] }
 0x389   : > { %v2839_v4 = vadd.f32 %v2707_v24, %v2514_v17  ;;  %3928 = vmatmul.msk.f32.gmra.mxu0 %vm946_vm0, %v6483_v50 }
 0x38a   : > { %v2987_v10 = vpop.f32.mrf.mxu2  ;;  %4120 = vmatmul.msk.f32.gmra.mxu3 %vm946_vm0, %v5269_v6 }
 0x38b   : > { %v3119_v29 = vadd.f32 %v2987_v10, %v2839_v4  ;;  %v6499_v10 = vld [vmem:[#allocation111_spill] sm:$0xff] }
 0x38c   : > { %v2710_v44 = vpop.f32.mrf.mxu1 }
 0x38d   : > { %v3270_v18 = vpop.f32.mrf.mxu3 }
 0x38e   : > { %v3402_v31 = vadd.f32 %v3270_v18, %v3119_v29  ;;  %v2385_v53 = vpop.f32.mrf.mxu0  ;;  %v6500_v29 = vld [vmem:[#allocation90_spill] sm:$0xff] }
 0x38f   : > { %4057 = vmatmul.msk.f32.gmra.mxu2 %vm946_vm0, %v6488_v46  ;;  %3993 = vmatmul.msk.f32.gmra.mxu1 %vm946_vm0, %v5269_v6  ;;  %v2515_v23 = vadd.f32 %v2385_v53, %v6489_v45  ;;  %v6492_v6 = vld [vmem:[#allocation106_spill] sm:$0xff]  ;;  %v6501_v53 = vld [vmem:[#allocation113_spill] sm:$0xff] }
 0x390   : > { %3466 = vst [vmem:[%s5618_s20 + $0xf0] sm:$0xff] %v3402_v31 }
 0x391   : > { %v2840_v41 = vadd.f32 %v2710_v44, %v2515_v23  ;;  %3929 = vmatmul.msk.f32.gmra.mxu0 %vm946_vm0, %v6486_v16 }
 0x392   : > { %v2990_v27 = vpop.f32.mrf.mxu2  ;;  %4121 = vmatmul.msk.f32.gmra.mxu3 %vm946_vm0, %v6490_v62  ;;  %v6502_v62 = vld [vmem:[#allocation114_spill] sm:$0xff] }
 0x393   : > { %v3120_v7 = vadd.f32 %v2990_v27, %v2840_v41 }
 0x394   : > { %v2713_v56 = vpop.f32.mrf.mxu1 }
 0x395   : > { %v3273_v14 = vpop.f32.mrf.mxu3 }
 0x396   : > { %v3403_v51 = vadd.f32 %v3273_v14, %v3120_v7  ;;  %v2388_v38 = vpop.f32.mrf.mxu0  ;;  %v6503_v7 = vld [vmem:[#allocation93_spill] sm:$0xff] }
 0x397   : > { %4058 = vmatmul.msk.f32.gmra.mxu2 %vm946_vm0, %v6491_v47  ;;  %3994 = vmatmul.msk.f32.gmra.mxu1 %vm946_vm0, %v6492_v6  ;;  %v2516_v12 = vadd.f32 %v2388_v38, %v6493_v22  ;;  %v6504_v38 = vld [vmem:[#allocation116_spill] sm:$0xff] }
 0x398   : > { %3467 = vst [vmem:[%s5618_s20 + $0xf8] sm:$0xff] %v3403_v51 }
 0x399   : > { %v2841_v36 = vadd.f32 %v2713_v56, %v2516_v12  ;;  %3930 = vmatmul.msk.f32.gmra.mxu0 %vm946_vm0, %v6494_v40  ;;  %v6505_v40 = vld [vmem:[#allocation117_spill] sm:$0xff] }
 0x39a   : > { %v2993_v8 = vpop.f32.mrf.mxu2  ;;  %4122 = vmatmul.msk.f32.gmra.mxu3 %vm946_vm0, %v6495_v42 }
 0x39b   : > { %v3121_v3 = vadd.f32 %v2993_v8, %v2841_v36  ;;  %v6506_v8 = vld [vmem:[#allocation96_spill] sm:$0xff] }
 0x39c   : > { %v2716_v50 = vpop.f32.mrf.mxu1 }
 0x39d   : > { %v3276_v1 = vpop.f32.mrf.mxu3 }
 0x39e   : > { %v3404_v20 = vadd.f32 %v3276_v1, %v3121_v3  ;;  %v2391_v5 = vpop.f32.mrf.mxu0  ;;  %v6507_v1 = vld [vmem:[#allocation119_spill] sm:$0xff] }
 0x39f   : > { %4059 = vmatmul.msk.f32.gmra.mxu2 %vm946_vm0, %v6496_v37  ;;  %3995 = vmatmul.msk.f32.gmra.mxu1 %vm946_vm0, %v6495_v42  ;;  %v2517_v34 = vadd.f32 %v2391_v5, %v6497_v52 }
 0x3a0   : > { %3468 = vst [vmem:[%s5618_s20 + $0x100] sm:$0xff] %v3404_v20 }
 0x3a1   : > { %v2842_v24 = vadd.f32 %v2716_v50, %v2517_v34  ;;  %3931 = vmatmul.msk.f32.gmra.mxu0 %vm946_vm0, %v6491_v47 }
 0x3a2   : > { %v2996_v15 = vpop.f32.mrf.mxu2  ;;  %4123 = vmatmul.msk.f32.gmra.mxu3 %vm946_vm0, %v6498_v0 }
 0x3a3   : > { %v3122_v39 = vadd.f32 %v2996_v15, %v2842_v24  ;;  %v6508_v24 = vld [vmem:[#allocation120_spill] sm:$0xff]  ;;  %v6509_v15 = vld [vmem:[#allocation99_spill] sm:$0xff] }
 0x3a4   : > { %v2719_v16 = vpop.f32.mrf.mxu1 }
 0x3a5   : > { %v3279_v21 = vpop.f32.mrf.mxu3 }
 0x3a6   : > { %v3405_v17 = vadd.f32 %v3279_v21, %v3122_v39  ;;  %v2394_v4 = vpop.f32.mrf.mxu0 }
 0x3a7   : > { %4060 = vmatmul.msk.f32.gmra.mxu2 %vm946_vm0, %v6499_v10  ;;  %3996 = vmatmul.msk.f32.gmra.mxu1 %vm946_vm0, %v6498_v0  ;;  %v2518_v44 = vadd.f32 %v2394_v4, %v6500_v29 }
 0x3a8   : > { %3469 = vst [vmem:[%s5618_s20 + $0x108] sm:$0xff] %v3405_v17 }
 0x3a9   : > { %v2843_v18 = vadd.f32 %v2719_v16, %v2518_v44  ;;  %3932 = vmatmul.msk.f32.gmra.mxu0 %vm946_vm0, %v6496_v37  ;;  %v6510_v44 = vld [vmem:[#allocation101_spill] sm:$0xff] }
 0x3aa   : > { %v2999_v31 = vpop.f32.mrf.mxu2  ;;  %4124 = vmatmul.msk.f32.gmra.mxu3 %vm946_vm0, %v6501_v53 }
 0x3ab   : > { %v3123_v46 = vadd.f32 %v2999_v31, %v2843_v18  ;;  %v581_v31 = vld [vmem:[%s6000_s24] sm:$0xf] }
 0x3ac   : > { %v2722_v45 = vpop.f32.mrf.mxu1 }
 0x3ad   : > { %v3282_v23 = vpop.f32.mrf.mxu3 }
 0x3ae   : > { %v3406_v41 = vadd.f32 %v3282_v23, %v3123_v46  ;;  %v2397_v27 = vpop.f32.mrf.mxu0 }
 0x3af   : > { %4061 = vmatmul.msk.f32.gmra.mxu2 %vm946_vm0, %v6502_v62  ;;  %3997 = vmatmul.msk.f32.gmra.mxu1 %vm946_vm0, %v6501_v53  ;;  %v2519_v56 = vadd.f32 %v2397_v27, %v6503_v7  ;;  %v582_v53 = vld [vmem:[%s6000_s24 + $0x4] sm:$0x1]  ;;  %v599_v27 = vunpack.c.l.bf16 %v581_v31  ;;  %v584_v7 = vld [vmem:[%s6000_s24 + $0xc] sm:$0x1] }
 0x3b0   : > { %3470 = vst [vmem:[%s5618_s20 + $0x110] sm:$0xff] %v3406_v41  ;;  %v583_v41 = vld [vmem:[%s6000_s24 + $0x8] sm:$0xf] }
 0x3b1   : > { %v2844_v14 = vadd.f32 %v2722_v45, %v2519_v56  ;;  %3933 = vmatmul.msk.f32.gmra.mxu0 %vm946_vm0, %v6499_v10 }
 0x3b2   : > { %v3002_v51 = vpop.f32.mrf.mxu2  ;;  %4125 = vmatmul.msk.f32.gmra.mxu3 %vm946_vm0, %v6504_v38 }
 0x3b3   : > { %v3124_v47 = vadd.f32 %v3002_v51, %v2844_v14 }
 0x3b4   : > { %v2725_v6 = vpop.f32.mrf.mxu1 }
 0x3b5   : > { %v3285_v22 = vpop.f32.mrf.mxu3 }
 0x3b6   : > { %v3407_v12 = vadd.f32 %v3285_v22, %v3124_v47  ;;  %v2400_v36 = vpop.f32.mrf.mxu0  ;;  %v6511_v47 = vld [vmem:[#allocation105_spill] sm:$0xff]  ;;  %v602_v22 = vunpack.c.l.bf16 %v584_v7 }
 0x3b7   : > { %4062 = vmatmul.msk.f32.gmra.mxu2 %vm946_vm0, %v6505_v40  ;;  %3998 = vmatmul.msk.f32.gmra.mxu1 %vm946_vm0, %v6504_v38  ;;  %v2520_v42 = vadd.f32 %v2400_v36, %v6506_v8  ;;  %v601_v38 = vunpack.c.l.bf16 %v583_v41 }
 0x3b8   : > { %3471 = vst [vmem:[%s5618_s20 + $0x118] sm:$0xff] %v3407_v12  ;;  %v2556_v12 = vrot.slane %v599_v27, 1 }
 0x3b9   : > { %v2845_v3 = vadd.f32 %v2725_v6, %v2520_v42  ;;  %3934 = vmatmul.msk.f32.gmra.mxu0 %vm946_vm0, %v6502_v62  ;;  %v600_v62 = vunpack.c.l.bf16 %v582_v53  ;;  %v2559_v42 = vrot.slane %v601_v38, 1  ;;  %v6513_v53 = vld [vmem:[#allocation112_spill] sm:$0xff] }
 0x3ba   : > { %v3005_v50 = vpop.f32.mrf.mxu2  ;;  %4126 = vmatmul.msk.f32.gmra.mxu3 %vm946_vm0, %v6507_v1 }
 0x3bb   : > { %v3125_v20 = vadd.f32 %v3005_v50, %v2845_v3  ;;  %v2557_v36 = vrot.slane %v600_v62, 1  ;;  %v2560_v3 = vrot.slane %v602_v22, 1 }
 0x3bc   : > { %v2728_v5 = vpop.f32.mrf.mxu1 }
 0x3bd   : > { %v3288_v37 = vpop.f32.mrf.mxu3  ;;  %v2558_v50 = vsel %vm749_vm1, %v2556_v12, %v2557_v36 }
 0x3be   : > { %v3408_v52 = vadd.f32 %v3288_v37, %v3125_v20  ;;  %v2403_v34 = vpop.f32.mrf.mxu0  ;;  %v586_v20 = vld [vmem:[%s6000_s24 + $0x14] sm:$0x1] }
 0x3bf   : > { %4063 = vmatmul.msk.f32.gmra.mxu2 %vm946_vm0, %v6508_v24  ;;  %3999 = vmatmul.msk.f32.gmra.mxu1 %vm946_vm0, %v6507_v1  ;;  %v2521_v0 = vadd.f32 %v2403_v34, %v6509_v15  ;;  %v585_v1 = vld [vmem:[%s6000_s24 + $0x10] sm:$0xf]  ;;  %v2561_v34 = vsel %vm749_vm1, %v2559_v42, %v2560_v3  ;;  %v604_v15 = vunpack.c.l.bf16 %v586_v20 }
 0x3c0   : > { %3472 = vst [vmem:[%s5618_s20 + $0x120] sm:$0xff] %v3408_v52 }
 0x3c1   : > { %v2846_v39 = vadd.f32 %v2728_v5, %v2521_v0  ;;  %3935 = vmatmul.msk.f32.gmra.mxu0 %vm946_vm0, %v6505_v40 }
 0x3c2   : > { %v3008_v16 = vpop.f32.mrf.mxu2  ;;  %4127 = vmatmul.msk.f32.gmra.mxu3 %vm946_vm0, %v5403_v59 }
 0x3c3   : > { %v3126_v21 = vadd.f32 %v3008_v16, %v2846_v39 }
 0x3c4   : > { %v2731_v17 = vpop.f32.mrf.mxu1 }
 0x3c5   : > { %v3291_v4 = vpop.f32.mrf.mxu3 }
 0x3c6   : > { %v3409_v10 = vadd.f32 %v3291_v4, %v3126_v21  ;;  %v2406_v29 = vpop.f32.mrf.mxu0  ;;  %v2563_v4 = vrot.slane %v604_v15, 1 }
 0x3c7   : > { %4064 = vmatmul.msk.f32.gmra.mxu2 %vm946_vm0, %v5405_v54  ;;  %4000 = vmatmul.msk.f32.gmra.mxu1 %vm946_vm0, %v5403_v59  ;;  %v2522_v18 = vadd.f32 %v2406_v29, %v6510_v44  ;;  %v588_v29 = vld [vmem:[%s6000_s24 + $0x1c] sm:$0x1] }
 0x3c8   : > { %3473 = vst [vmem:[%s5618_s20 + $0x128] sm:$0xff] %v3409_v10  ;;  %v587_v10 = vld [vmem:[%s6000_s24 + $0x18] sm:$0xf] }
 0x3c9   : > { %v2847_v46 = vadd.f32 %v2731_v17, %v2522_v18  ;;  %3936 = vmatmul.msk.f32.gmra.mxu0 %vm946_vm0, %v6508_v24  ;;  %v603_v24 = vunpack.c.l.bf16 %v585_v1 }
 0x3ca   : > { %v3011_v45 = vpop.f32.mrf.mxu2  ;;  %4128 = vmatmul.msk.f32.gmra.mxu3 %vm946_vm0, %v5421_v61 }
 0x3cb   : > { %v3127_v59 = vadd.f32 %v3011_v45, %v2847_v46  ;;  %v2562_v17 = vrot.slane %v603_v24, 1 }
 0x3cc   : > { %v2734_v23 = vpop.f32.mrf.mxu1 }
 0x3cd   : > { %v3294_v56 = vpop.f32.mrf.mxu3  ;;  %v2564_v45 = vsel %vm749_vm1, %v2562_v17, %v2563_v4 }
 0x3ce   : > { %v3410_v14 = vadd.f32 %v3294_v56, %v3127_v59  ;;  %v2409_v51 = vpop.f32.mrf.mxu0  ;;  %v605_v59 = vunpack.c.l.bf16 %v587_v10 }
 0x3cf   : > { %4065 = vmatmul.msk.f32.gmra.mxu2 %vm946_vm0, %v5423_v60  ;;  %4001 = vmatmul.msk.f32.gmra.mxu1 %vm946_vm0, %v5421_v61  ;;  %v2523_v6 = vadd.f32 %v2409_v51, %v6511_v47  ;;  %v589_v51 = vld [vmem:[%s6000_s24 + $0x20] sm:$0xf]  ;;  %v590_v47 = vld [vmem:[%s6000_s24 + $0x24] sm:$0x1] }
 0x3d0   : > { %3474 = vst [vmem:[%s5618_s20 + $0x130] sm:$0xff] %v3410_v14  ;;  %v2565_v56 = vrot.slane %v605_v59, 1 }
 0x3d1   : > { %v2848_v40 = vadd.f32 %v2734_v23, %v2523_v6  ;;  %3937 = vmatmul.msk.f32.gmra.mxu0 %vm946_vm0, %v5405_v54  ;;  %v6512_v54 = vld [vmem:[#allocation109_spill] sm:$0xff]  ;;  %v606_v23 = vunpack.c.l.bf16 %v588_v29 }
 0x3d2   : > { %v3014_v8 = vpop.f32.mrf.mxu2  ;;  %4129 = vmatmul.msk.f32.gmra.mxu3 %vm946_vm0, %v5437_v2 }
 0x3d3   : > { %v3128_v60 = vadd.f32 %v3014_v8, %v2848_v40  ;;  %v2566_v14 = vrot.slane %v606_v23, 1  ;;  %v607_v8 = vunpack.c.l.bf16 %v589_v51 }
 0x3d4   : > { %v2737_v61 = vpop.f32.mrf.mxu1 }
 0x3d5   : > { %v3297_v5 = vpop.f32.mrf.mxu3  ;;  %v2567_v40 = vsel %vm749_vm1, %v2565_v56, %v2566_v14  ;;  %v2568_v1 = vrot.slane %v607_v8, 1 }
 0x3d6   : > { %v3411_v37 = vadd.f32 %v3297_v5, %v3128_v60  ;;  %v2412_v52 = vpop.f32.mrf.mxu0  ;;  %v608_v60 = vunpack.c.l.bf16 %v590_v47  ;;  %v591_v5 = vld [vmem:[%s6000_s24 + $0x28] sm:$0xf] }
 0x3d7   : > { %4066 = vmatmul.msk.f32.gmra.mxu2 %vm946_vm0, %v601_v38  ;;  %4002 = vmatmul.msk.f32.gmra.mxu1 %vm946_vm0, %v2558_v50  ;;  %v2524_v2 = vadd.f32 %v2412_v52, %v6512_v54 }
 0x3d8   : > { %3475 = vst [vmem:[%s5618_s20 + $0x138] sm:$0xff] %v3411_v37  ;;  %v2569_v20 = vrot.slane %v608_v60, 1  ;;  %v592_v37 = vld [vmem:[%s6000_s24 + $0x2c] sm:$0x1] }
 0x3d9   : > { %v2849_v0 = vadd.f32 %v2737_v61, %v2524_v2  ;;  %3938 = vmatmul.msk.f32.gmra.mxu0 %vm946_vm0, %v599_v27 }
 0x3da   : > { %v3017_v39 = vpop.f32.mrf.mxu2  ;;  %4130 = vmatmul.msk.f32.gmra.mxu3 %vm946_vm0, %v2561_v34  ;;  %v2570_v15 = vsel %vm749_vm1, %v2568_v1, %v2569_v20 }
 0x3db   : > { %v3129_v16 = vadd.f32 %v3017_v39, %v2849_v0  ;;  %v609_v0 = vunpack.c.l.bf16 %v591_v5  ;;  %v610_v39 = vunpack.c.l.bf16 %v592_v37 }
 0x3dc   : > { %v2740_v21 = vpop.f32.mrf.mxu1 }
 0x3dd   : > { %v3300_v44 = vpop.f32.mrf.mxu3  ;;  %v2571_v10 = vrot.slane %v609_v0, 1  ;;  %v2572_v29 = vrot.slane %v610_v39, 1 }
 0x3de   : > { %v3412_v18 = vadd.f32 %v3300_v44, %v3129_v16  ;;  %v2415_v31 = vpop.f32.mrf.mxu0  ;;  %v593_v44 = vld [vmem:[%s6000_s24 + $0x30] sm:$0xf] }
 0x3df   : > { %4067 = vmatmul.msk.f32.gmra.mxu2 %vm946_vm0, %v603_v24  ;;  %4003 = vmatmul.msk.f32.gmra.mxu1 %vm946_vm0, %v2561_v34  ;;  %v2525_v46 = vadd.f32 %v2415_v31, %v6513_v53  ;;  %v6515_v34 = vld [vmem:[#allocation118_spill] sm:$0xff]  ;;  %v2573_v23 = vsel %vm749_vm1, %v2571_v10, %v2572_v29 }
 0x3e0   : > { %3476 = vst [vmem:[%s5618_s20 + $0x140] sm:$0xff] %v3412_v18  ;;  %v594_v18 = vld [vmem:[%s6000_s24 + $0x34] sm:$0x1] }
 0x3e1   : > { %v2850_v41 = vadd.f32 %v2740_v21, %v2525_v46  ;;  %3939 = vmatmul.msk.f32.gmra.mxu0 %vm946_vm0, %v601_v38  ;;  %v6514_v38 = vld [vmem:[#allocation115_spill] sm:$0xff] }
 0x3e2   : > { %v3020_v27 = vpop.f32.mrf.mxu2  ;;  %4131 = vmatmul.msk.f32.gmra.mxu3 %vm946_vm0, %v2564_v45 }
 0x3e3   : > { %v3130_v62 = vadd.f32 %v3020_v27, %v2850_v41  ;;  %v611_v41 = vunpack.c.l.bf16 %v593_v44  ;;  %v612_v27 = vunpack.c.l.bf16 %v594_v18 }
 0x3e4   : > { %v2743_v7 = vpop.f32.mrf.mxu1 }
 0x3e5   : > { %v3303_v6 = vpop.f32.mrf.mxu3  ;;  %v2574_v51 = vrot.slane %v611_v41, 1  ;;  %v2575_v47 = vrot.slane %v612_v27, 1 }
 0x3e6   : > { %v3413_v22 = vadd.f32 %v3303_v6, %v3130_v62  ;;  %v2418_v12 = vpop.f32.mrf.mxu0  ;;  %v595_v6 = vld [vmem:[%s6000_s24 + $0x38] sm:$0xf] }
 0x3e7   : > { %4068 = vmatmul.msk.f32.gmra.mxu2 %vm946_vm0, %v605_v59  ;;  %4004 = vmatmul.msk.f32.gmra.mxu1 %vm946_vm0, %v2564_v45  ;;  %v2526_v36 = vadd.f32 %v2418_v12, %v6514_v38  ;;  %v6516_v45 = vld [vmem:[#allocation121_spill] sm:$0xff]  ;;  %v2576_v60 = vsel %vm749_vm1, %v2574_v51, %v2575_v47 }
 0x3e8   : > { %3477 = vst [vmem:[%s5618_s20 + $0x148] sm:$0xff] %v3413_v22  ;;  %v596_v22 = vld [vmem:[%s6000_s24 + $0x3c] sm:$0x1] }
 0x3e9   : > { %v2851_v61 = vadd.f32 %v2743_v7, %v2526_v36  ;;  %3940 = vmatmul.msk.f32.gmra.mxu0 %vm946_vm0, %v603_v24 }
 0x3ea   : > { %v3023_v42 = vpop.f32.mrf.mxu2  ;;  %4132 = vmatmul.msk.f32.gmra.mxu3 %vm946_vm0, %v2567_v40 }
 0x3eb   : > { %v3131_v3 = vadd.f32 %v3023_v42, %v2851_v61  ;;  %v613_v61 = vunpack.c.l.bf16 %v595_v6  ;;  %v614_v42 = vunpack.c.l.bf16 %v596_v22 }
 0x3ec   : > { %v2746_v50 = vpop.f32.mrf.mxu1 }
 0x3ed   : > { %v3306_v52 = vpop.f32.mrf.mxu3  ;;  %v2577_v5 = vrot.slane %v613_v61, 1  ;;  %v2578_v37 = vrot.slane %v614_v42, 1 }
 0x3ee   : > { %v3414_v54 = vadd.f32 %v3306_v52, %v3131_v3  ;;  %v2421_v2 = vpop.f32.mrf.mxu0  ;;  %v597_v52 = vld [vmem:[%s6000_s24 + $0x40] sm:$0xf] }
 0x3ef   : > { %4069 = vmatmul.msk.f32.gmra.mxu2 %vm946_vm0, %v607_v8  ;;  %4005 = vmatmul.msk.f32.gmra.mxu1 %vm946_vm0, %v2567_v40  ;;  %v2527_v24 = vadd.f32 %v2421_v2, %v6515_v34  ;;  %v6517_v40 = vld [vmem:[#allocation122_spill] sm:$0xff]  ;;  %v615_v39 = vunpack.c.l.bf16 %v597_v52 }
 0x3f0   : > { %3478 = vst [vmem:[%s5618_s20 + $0x150] sm:$0xff] %v3414_v54  ;;  %v598_v54 = vld [vmem:[%s6000_s24 + $0x44] sm:$0x1] }
 0x3f1   : > { %v2852_v16 = vadd.f32 %v2746_v50, %v2527_v24  ;;  %3941 = vmatmul.msk.f32.gmra.mxu0 %vm946_vm0, %v605_v59  ;;  %v3154_v29 = vrot.slane %v615_v39, 1 }
 0x3f2   : > { %v3026_v21 = vpop.f32.mrf.mxu2  ;;  %4133 = vmatmul.msk.f32.gmra.mxu3 %vm946_vm0, %v2570_v15 }
 0x3f3   : > { %v3132_v17 = vadd.f32 %v3026_v21, %v2852_v16  ;;  %v616_v16 = vunpack.c.l.bf16 %v598_v54 }
 0x3f4   : > { %v2749_v4 = vpop.f32.mrf.mxu1 }
 0x3f5   : > { %v3309_v31 = vpop.f32.mrf.mxu3  ;;  %v3155_v44 = vrot.slane %v616_v16, 1 }
 0x3f6   : > { %v3415_v53 = vadd.f32 %v3309_v31, %v3132_v17  ;;  %v2424_v46 = vpop.f32.mrf.mxu0 }
 0x3f7   : > { %4070 = vmatmul.msk.f32.gmra.mxu2 %vm946_vm0, %v609_v0  ;;  %4006 = vmatmul.msk.f32.gmra.mxu1 %vm946_vm0, %v2570_v15  ;;  %v2528_v59 = vadd.f32 %v2424_v46, %v6516_v45  ;;  %v3156_v46 = vsel %vm749_vm1, %v3154_v29, %v3155_v44 }
 0x3f8   : > { %3479 = vst [vmem:[%s5618_s20 + $0x158] sm:$0xff] %v3415_v53 }
 0x3f9   : > { %v2853_v62 = vadd.f32 %v2749_v4, %v2528_v59  ;;  %3942 = vmatmul.msk.f32.gmra.mxu0 %vm946_vm0, %v607_v8 }
 0x3fa   : > { %v3029_v7 = vpop.f32.mrf.mxu2  ;;  %4134 = vmatmul.msk.f32.gmra.mxu3 %vm946_vm0, %v2573_v23 }
 0x3fb   : > { %v3133_v56 = vadd.f32 %v3029_v7, %v2853_v62 }
 0x3fc   : > { %v2752_v14 = vpop.f32.mrf.mxu1 }
 0x3fd   : > { %v3312_v12 = vpop.f32.mrf.mxu3 }
 0x3fe   : > { %v3416_v38 = vadd.f32 %v3312_v12, %v3133_v56  ;;  %v2427_v36 = vpop.f32.mrf.mxu0 }
 0x3ff   : > { %4071 = vmatmul.msk.f32.gmra.mxu2 %vm946_vm0, %v611_v41  ;;  %4007 = vmatmul.msk.f32.gmra.mxu1 %vm946_vm0, %v2573_v23  ;;  %v2529_v8 = vadd.f32 %v2427_v36, %v6517_v40 }
 0x400   : > { %3480 = vst [vmem:[%s5618_s20 + $0x160] sm:$0xff] %v3416_v38 }
 0x401   : > { %v2854_v3 = vadd.f32 %v2752_v14, %v2529_v8  ;;  %3943 = vmatmul.msk.f32.gmra.mxu0 %vm946_vm0, %v609_v0  ;;  %v2579_v0 = vsel %vm749_vm1, %v2577_v5, %v2578_v37 }
 0x402   : > { %v3032_v50 = vpop.f32.mrf.mxu2  ;;  %4135 = vmatmul.msk.f32.gmra.mxu3 %vm946_vm0, %v2576_v60 }
 0x403   : > { %v3134_v1 = vadd.f32 %v3032_v50, %v2854_v3 }
 0x404   : > { %v2755_v20 = vpop.f32.mrf.mxu1 }
 0x405   : > { %v3315_v2 = vpop.f32.mrf.mxu3 }
 0x406   : > { %v3417_v34 = vadd.f32 %v3315_v2, %v3134_v1  ;;  %v2430_v24 = vpop.f32.mrf.mxu0 }
 0x407   : > { %4072 = vmatmul.msk.f32.gmra.mxu2 %vm946_vm0, %v613_v61  ;;  %4008 = vmatmul.msk.f32.gmra.mxu1 %vm946_vm0, %v2576_v60  ;;  %v2530_v15 = vadd.f32 %v2430_v24, %v5430_v32 }
 0x408   : > { %3481 = vst [vmem:[%s5618_s20 + $0x168] sm:$0xff] %v3417_v34 }
 0x409   : > { %v2855_v21 = vadd.f32 %v2755_v20, %v2530_v15  ;;  %3944 = vmatmul.msk.f32.gmra.mxu0 %vm946_vm0, %v611_v41 }
 0x40a   : > { %v3035_v17 = vpop.f32.mrf.mxu2  ;;  %4136 = vmatmul.msk.f32.gmra.mxu3 %vm946_vm0, %v2579_v0 }
 0x40b   : > { %v3135_v4 = vadd.f32 %v3035_v17, %v2855_v21 }
 0x40c   : > { %v2758_v10 = vpop.f32.mrf.mxu1 }
 0x40d   : > { %v3318_v18 = vpop.f32.mrf.mxu3 }
 0x40e   : > { %v3418_v31 = vadd.f32 %v3318_v18, %v3135_v4  ;;  %v2433_v53 = vpop.f32.mrf.mxu0 }
 0x40f   : > { %4073 = vmatmul.msk.f32.gmra.mxu2 %vm946_vm0, %v615_v39  ;;  %4009 = vmatmul.msk.f32.gmra.mxu1 %vm946_vm0, %v2579_v0  ;;  %v2531_v32 = vadd.f32 %v2433_v53, %v5443_v13 }
 0x410   : > { %3482 = vst [vmem:[%s5618_s20 + $0x170] sm:$0xff] %v3418_v31 }
 0x411   : > { %v2856_v45 = vadd.f32 %v2758_v10, %v2531_v32  ;;  %3945 = vmatmul.msk.f32.gmra.mxu0 %vm946_vm0, %v613_v61 }
 0x412   : > { %v3038_v59 = vpop.f32.mrf.mxu2  ;;  %4137 = vmatmul.msk.f32.gmra.mxu3 %vm946_vm0, %v3156_v46 }
 0x413   : > { %v3136_v23 = vadd.f32 %v3038_v59, %v2856_v45 }
 0x414   : > { %v2761_v41 = vpop.f32.mrf.mxu1 }
 0x415   : > { %v3321_v27 = vpop.f32.mrf.mxu3 }
 0x416   : > { %v3419_v62 = vadd.f32 %v3321_v27, %v3136_v23  ;;  %v2436_v7 = vpop.f32.mrf.mxu0 }
 0x417   : > { %v2532_v56 = vadd.f32 %v2436_v7, %v5453_v11 }
 0x418   : > { %3483 = vst [vmem:[%s5618_s20 + $0x178] sm:$0xff] %v3419_v62 }
 0x419   : > { %v2857_v14 = vadd.f32 %v2761_v41, %v2532_v56 }
 0x41a   : > { %v3041_v13 = vpop.f32.mrf.mxu2 }
 0x41b   : > { %v3137_v51 = vadd.f32 %v3041_v13, %v2857_v14 }
 0x41c   : > { %v2764_v47 = vpop.f32.mrf.mxu1 }
 0x41d   : > { %v3324_v6 = vpop.f32.mrf.mxu3 }
 0x41e   : > { %v3420_v22 = vadd.f32 %v3324_v6, %v3137_v51  ;;  %v2439_v12 = vpop.f32.mrf.mxu0 }
 0x41f   : > { %v2533_v38 = vadd.f32 %v2439_v12, %v5463_v19 }
 0x420   : > { %3484 = vst [vmem:[%s5618_s20 + $0x180] sm:$0xff] %v3420_v22 }
 0x421   : > { %v2858_v36 = vadd.f32 %v2764_v47, %v2533_v38 }
 0x422   : > { %v3044_v40 = vpop.f32.mrf.mxu2 }
 0x423   : > { %v3138_v8 = vadd.f32 %v3044_v40, %v2858_v36 }
 0x424   : > { %v2767_v60 = vpop.f32.mrf.mxu1 }
 0x425   : > { %v3327_v61 = vpop.f32.mrf.mxu3 }
 0x426   : > { %v3421_v42 = vadd.f32 %v3327_v61, %v3138_v8  ;;  %v2442_v11 = vpop.f32.mrf.mxu0 }
 0x427   : > { %v2534_v3 = vadd.f32 %v2442_v11, %v5473_v57 }
 0x428   : > { %3485 = vst [vmem:[%s5618_s20 + $0x188] sm:$0xff] %v3421_v42 }
 0x429   : > { %v2859_v50 = vadd.f32 %v2767_v60, %v2534_v3 }
 0x42a   : > { %v3047_v1 = vpop.f32.mrf.mxu2 }
 0x42b   : > { %v3139_v20 = vadd.f32 %v3047_v1, %v2859_v50 }
 0x42c   : > { %v2770_v5 = vpop.f32.mrf.mxu1 }
 0x42d   : > { %v3330_v37 = vpop.f32.mrf.mxu3 }
 0x42e   : > { %v3422_v52 = vadd.f32 %v3330_v37, %v3139_v20  ;;  %v2445_v19 = vpop.f32.mrf.mxu0 }
 0x42f   : > { %v2535_v54 = vadd.f32 %v2445_v19, %v5483_v58 }
 0x430   : > { %3486 = vst [vmem:[%s5618_s20 + $0x190] sm:$0xff] %v3422_v52 }
 0x431   : > { %v2860_v2 = vadd.f32 %v2770_v5, %v2535_v54 }
 0x432   : > { %v3050_v34 = vpop.f32.mrf.mxu2 }
 0x433   : > { %v3140_v24 = vadd.f32 %v3050_v34, %v2860_v2 }
 0x434   : > { %v2773_v15 = vpop.f32.mrf.mxu1 }
 0x435   : > { %v3333_v0 = vpop.f32.mrf.mxu3 }
 0x436   : > { %v3423_v39 = vadd.f32 %v3333_v0, %v3140_v24  ;;  %v2448_v57 = vpop.f32.mrf.mxu0 }
 0x437   : > { %v2536_v16 = vadd.f32 %v2448_v57, %v5493_v25 }
 0x438   : > { %3487 = vst [vmem:[%s5618_s20 + $0x198] sm:$0xff] %v3423_v39 }
 0x439   : > { %v2861_v21 = vadd.f32 %v2773_v15, %v2536_v16 }
 0x43a   : > { %v3053_v17 = vpop.f32.mrf.mxu2 }
 0x43b   : > { %v3141_v4 = vadd.f32 %v3053_v17, %v2861_v21 }
 0x43c   : > { %v2776_v10 = vpop.f32.mrf.mxu1 }
 0x43d   : > { %v3336_v29 = vpop.f32.mrf.mxu3 }
 0x43e   : > { %v3424_v44 = vadd.f32 %v3336_v29, %v3141_v4  ;;  %v2451_v58 = vpop.f32.mrf.mxu0 }
 0x43f   : > { %v2537_v18 = vadd.f32 %v2451_v58, %v5503_v33 }
 0x440   : > { %3488 = vst [vmem:[%s5618_s20 + $0x1a0] sm:$0xff] %v3424_v44 }
 0x441   : > { %v2862_v31 = vadd.f32 %v2776_v10, %v2537_v18 }
 0x442   : > { %v3056_v53 = vpop.f32.mrf.mxu2 }
 0x443   : > { %v3142_v32 = vadd.f32 %v3056_v53, %v2862_v31 }
 0x444   : > { %v2779_v46 = vpop.f32.mrf.mxu1 }
 0x445   : > { %v3339_v45 = vpop.f32.mrf.mxu3 }
 0x446   : > { %v3425_v59 = vadd.f32 %v3339_v45, %v3142_v32  ;;  %v2454_v25 = vpop.f32.mrf.mxu0 }
 0x447   : > { %v2538_v23 = vadd.f32 %v2454_v25, %v5513_v48 }
 0x448   : > { %3489 = vst [vmem:[%s5618_s20 + $0x1a8] sm:$0xff] %v3425_v59 }
 0x449   : > { %v2863_v41 = vadd.f32 %v2779_v46, %v2538_v23 }
 0x44a   : > { %v3059_v27 = vpop.f32.mrf.mxu2 }
 0x44b   : > { %v3143_v62 = vadd.f32 %v3059_v27, %v2863_v41 }
 0x44c   : > { %v2782_v7 = vpop.f32.mrf.mxu1 }
 0x44d   : > { %v3342_v56 = vpop.f32.mrf.mxu3 }
 0x44e   : > { %v3426_v14 = vadd.f32 %v3342_v56, %v3143_v62  ;;  %v2457_v33 = vpop.f32.mrf.mxu0 }
 0x44f   : > { %v2539_v13 = vadd.f32 %v2457_v33, %v5523_v43 }
 0x450   : > { %3490 = vst [vmem:[%s5618_s20 + $0x1b0] sm:$0xff] %v3426_v14 }
 0x451   : > { %v2864_v51 = vadd.f32 %v2782_v7, %v2539_v13 }
 0x452   : > { %v3062_v47 = vpop.f32.mrf.mxu2 }
 0x453   : > { %v3144_v6 = vadd.f32 %v3062_v47, %v2864_v51 }
 0x454   : > { %v2785_v22 = vpop.f32.mrf.mxu1 }
 0x455   : > { %v3345_v12 = vpop.f32.mrf.mxu3 }
 0x456   : > { %v3427_v38 = vadd.f32 %v3345_v12, %v3144_v6  ;;  %v2460_v48 = vpop.f32.mrf.mxu0 }
 0x457   : > { %v2540_v36 = vadd.f32 %v2460_v48, %v5533_v49 }
 0x458   : > { %3491 = vst [vmem:[%s5618_s20 + $0x1b8] sm:$0xff] %v3427_v38 }
 0x459   : > { %v2865_v40 = vadd.f32 %v2785_v22, %v2540_v36 }
 0x45a   : > { %v3065_v8 = vpop.f32.mrf.mxu2 }
 0x45b   : > { %v3145_v60 = vadd.f32 %v3065_v8, %v2865_v40 }
 0x45c   : > { %v2788_v61 = vpop.f32.mrf.mxu1 }
 0x45d   : > { %v3348_v42 = vpop.f32.mrf.mxu3 }
 0x45e   : > { %v3428_v11 = vadd.f32 %v3348_v42, %v3145_v60  ;;  %v2463_v43 = vpop.f32.mrf.mxu0 }
 0x45f   : > { %v2541_v3 = vadd.f32 %v2463_v43, %v5543_v26 }
 0x460   : > { %3492 = vst [vmem:[%s5618_s20 + $0x1c0] sm:$0xff] %v3428_v11 }
 0x461   : > { %v2866_v50 = vadd.f32 %v2788_v61, %v2541_v3 }
 0x462   : > { %v3068_v1 = vpop.f32.mrf.mxu2 }
 0x463   : > { %v3146_v20 = vadd.f32 %v3068_v1, %v2866_v50 }
 0x464   : > { %v2791_v5 = vpop.f32.mrf.mxu1 }
 0x465   : > { %v3351_v37 = vpop.f32.mrf.mxu3 }
 0x466   : > { %v3429_v52 = vadd.f32 %v3351_v37, %v3146_v20  ;;  %v2466_v49 = vpop.f32.mrf.mxu0 }
 0x467   : > { %v2542_v19 = vadd.f32 %v2466_v49, %v5553_v9 }
 0x468   : > { %3493 = vst [vmem:[%s5618_s20 + $0x1c8] sm:$0xff] %v3429_v52 }
 0x469   : > { %v2867_v54 = vadd.f32 %v2791_v5, %v2542_v19 }
 0x46a   : > { %v3071_v2 = vpop.f32.mrf.mxu2 }
 0x46b   : > { %v3147_v34 = vadd.f32 %v3071_v2, %v2867_v54 }
 0x46c   : > { %v2794_v24 = vpop.f32.mrf.mxu1 }
 0x46d   : > { %v3354_v15 = vpop.f32.mrf.mxu3 }
 0x46e   : > { %v3430_v0 = vadd.f32 %v3354_v15, %v3147_v34  ;;  %v2469_v26 = vpop.f32.mrf.mxu0 }
 0x46f   : > { %v2543_v39 = vadd.f32 %v2469_v26, %v5563_v55 }
 0x470   : > { %3494 = vst [vmem:[%s5618_s20 + $0x1d0] sm:$0xff] %v3430_v0 }
 0x471   : > { %v2868_v57 = vadd.f32 %v2794_v24, %v2543_v39 }
 0x472   : > { %v3074_v16 = vpop.f32.mrf.mxu2 }
 0x473   : > { %v3148_v21 = vadd.f32 %v3074_v16, %v2868_v57 }
 0x474   : > { %v2797_v17 = vpop.f32.mrf.mxu1 }
 0x475   : > { %v3357_v4 = vpop.f32.mrf.mxu3 }
 0x476   : > { %v3431_v10 = vadd.f32 %v3357_v4, %v3148_v21  ;;  %v2472_v9 = vpop.f32.mrf.mxu0 }
 0x477   : > { %v2544_v29 = vadd.f32 %v2472_v9, %v5573_v28 }
 0x478   : > { %3495 = vst [vmem:[%s5618_s20 + $0x1d8] sm:$0xff] %v3431_v10 }
 0x479   : > { %v2869_v44 = vadd.f32 %v2797_v17, %v2544_v29 }
 0x47a   : > { %v3077_v58 = vpop.f32.mrf.mxu2 }
 0x47b   : > { %v3149_v18 = vadd.f32 %v3077_v58, %v2869_v44 }
 0x47c   : > { %v2800_v31 = vpop.f32.mrf.mxu1 }
 0x47d   : > { %v3360_v53 = vpop.f32.mrf.mxu3 }
 0x47e   : > { %v3432_v32 = vadd.f32 %v3360_v53, %v3149_v18  ;;  %v2475_v55 = vpop.f32.mrf.mxu0 }
 0x47f   : > { %v2545_v46 = vadd.f32 %v2475_v55, %v5583_v35 }
 0x480   : > { %3496 = vst [vmem:[%s5618_s20 + $0x1e0] sm:$0xff] %v3432_v32 }
 0x481   : > { %v2870_v45 = vadd.f32 %v2800_v31, %v2545_v46 }
 0x482   : > { %v3080_v59 = vpop.f32.mrf.mxu2 }
 0x483   : > { %v3150_v25 = vadd.f32 %v3080_v59, %v2870_v45 }
 0x484   : > { %v2803_v23 = vpop.f32.mrf.mxu1 }
 0x485   : > { %v3363_v41 = vpop.f32.mrf.mxu3 }
 0x486   : > { %v3433_v27 = vadd.f32 %v3363_v41, %v3150_v25  ;;  %v2478_v28 = vpop.f32.mrf.mxu0 }
 0x487   : > { %v2546_v62 = vadd.f32 %v2478_v28, %v5593_v30 }
 0x488   : > { %3497 = vst [vmem:[%s5618_s20 + $0x1e8] sm:$0xff] %v3433_v27 }
 0x489   : > { %v2871_v7 = vadd.f32 %v2803_v23, %v2546_v62 }
 0x48a   : > { %v3083_v56 = vpop.f32.mrf.mxu2 }
 0x48b   : > { %v3151_v14 = vadd.f32 %v3083_v56, %v2871_v7 }
 0x48c   : > { %v2806_v35 = vpop.f32.mrf.mxu1 }
 0x48d   : > { %v3366_v33 = vpop.f32.mrf.mxu3 }
 0x48e   : > { %v3434_v13 = vadd.f32 %v3366_v33, %v3151_v14  ;;  %v2481_v51 = vpop.f32.mrf.mxu0 }
 0x48f   : > { %v2547_v47 = vadd.f32 %v2481_v51, %v5603_v63 }
 0x490   : > { %3498 = vst [vmem:[%s5618_s20 + $0x1f0] sm:$0xff] %v3434_v13 }
 0x491   : > { %v2872_v6 = vadd.f32 %v2806_v35, %v2547_v47 }
 0x492   : > { %v3086_v22 = vpop.f32.mrf.mxu2 }
 0x493   : > { %v3152_v12 = vadd.f32 %v3086_v22, %v2872_v6 }
 0x495   : > { %v3369_v38 = vpop.f32.mrf.mxu3 }
 0x496   : > { %v3435_v48 = vadd.f32 %v3369_v38, %v3152_v12 }
 0x498   : > { %3499 = vst [vmem:[%s5618_s20 + $0x1f8] sm:$0xff] %v3435_v48 }
 0x499 PF: > { %s13_s14 = sadd.s32 1, %s4192_s14   ;;  %s6518_s12 = smov %s4188_s13 }
 0x49a   : > { %p10_p5 = scmp.ge.s32.totalorder %s13_s14, 4   ;;  %s6519_s13 = smov %s6521_s15 }
 0x49c   :  { %12 = sbr.rel (!%p10_p5) target bundleno = 2 (0x2), region = 65 }

</bundles_post_ra>
